<compile_context>
chip_gen: v7x
topology: tpu7x:2x2x1
jax: 0.10.0
libtpu: 0.0.40
codegen_flags: <defaults>
</compile_context>

<pallas_src>
import jax
import jax.numpy as jnp
from jax.experimental import pallas as pl
from jax.experimental.pallas import tpu as pltpu

D = 512                 # feature dim hardcoded by the PyTorch module
SCALE = 2.0 ** (-0.5)   # query_attribute_value.scale (only the reference needs it)


def _round_up(x, m):
    return (x + m - 1) // m * m


# ----------------------------- Pallas kernel ------------------------------

def _decoder_fused_kernel(ess_ref, attr_ref, w_second_ref, w1a_ref, w2_ref,
                          b_fold_ref, b1_ref, b2_ref, out_ref):
    """One (essential, attribute) pair per grid step.

    ess:      (1, b, d)          essential (f32)
    attr:     (1, per_i_pad, d)  attribute zero-padded on rows >= b (f32)
    w_second: (d, 2d)            [ w1b | wv.T @ wo.T @ w1b ]   (compute dtype)
    w1a:      (d, d)             w1.T[:d, :]
    w2:       (d, d)             net[2].weight.T
    b_fold:   (1, d)             (bv @ wo.T + bo) @ w1b        (f32)
    b1, b2:   (1, d)             net biases                    (f32)
    out:      (1, b*per_i_pad, d) f32; row r = i*per_i_pad + j
    """
    _, b, d = ess_ref.shape
    per_i_pad = attr_ref.shape[1]
    cdt = w2_ref.dtype                        # MXU operand dtype (bf16 or f32)

    attr = attr_ref[0].astype(cdt)            # (per_i_pad, d), pad rows are 0
    ess = ess_ref[0].astype(cdt)              # (b, d)

    # One MXU pass gives both projections of `attribute`:
    #   left half  : attribute @ w1b          (per-row "second" projection)
    #   right half : attribute @ (wv.T wo.T w1b)  (feeds the folded query path)
    attr_both = jnp.dot(attr, w_second_ref[...],
                        preferred_element_type=jnp.float32)       # (per_i_pad, 2d)
    # Independent matmul for the essential half of the split-w1 trick.
    e_proj = jnp.dot(ess, w1a_ref[...],
                     preferred_element_type=jnp.float32)          # (b, d)

    attr_proj = attr_both[:, :d]                                  # (per_i_pad, d)
    # Degenerate attention + offline fold: res @ w1b == mean over the b valid
    # rows of the right half (pad rows are exactly zero) + folded bias.
    res_proj = jnp.sum(attr_both[:, d:], axis=0, keepdims=True) * (1.0 / b) \
        + b_fold_ref[...]                                         # (1, d)

    # second_proj[j] = attribute[j] @ w1b for j < b, res @ w1b for j >= b.
    # Pure VPU select over a row-index iota -- no sublane concats.
    row = jax.lax.broadcasted_iota(jnp.int32, (per_i_pad, 1), 0)
    second_proj = jnp.where(row < b, attr_proj, res_proj) + b1_ref[...]

    # Broadcast-add builds every pre-activation row (i-major / j-minor, same
    # ordering as sample_matrix.resize(b*(b+a), 1024) after padding per_i->8).
    h = jnp.maximum(e_proj[:, None, :] + second_proj[None, :, :], 0.0)
    h = h.reshape(b * per_i_pad, d).astype(cdt)                   # tile-aligned

    out_ref[0] = jnp.dot(h, w2_ref[...],
                         preferred_element_type=jnp.float32) + b2_ref[...]


# ------------------------------ JAX wrappers -------------------------------

def prepare_params(params, compute_dtype=jnp.bfloat16):
    """One-time weight prep: transpose, fold the query path (in f32), cast once."""
    qp, nt = params["query"], params["net"]
    d = qp["wv"].shape[0]
    w1_t = nt["w1"].T                         # (2d, d)
    w1a = w1_t[:d, :]                         # essential half
    w1b = w1_t[d:, :]                         # "second part" half

    # Offline query-path fold (all products in f32, single cast afterwards):
    #   res @ w1b = mean(attr) @ (wv.T @ wo.T @ w1b) + (bv @ wo.T + bo) @ w1b
    w_fold = qp["wv"].T @ qp["wo"].T @ w1b                                  # (d, d)
    b_fold = ((qp["bv"] @ qp["wo"].T + qp["bo"]) @ w1b).reshape(1, d)       # (1, d)

    return {
        "a": int(qp["prompt"].shape[0]),
        "d": int(d),
        "w_second": jnp.concatenate([w1b, w_fold], axis=1).astype(compute_dtype),  # (d, 2d)
        "w1a": w1a.astype(compute_dtype),
        "w2": nt["w2"].T.astype(compute_dtype),
        "b_fold": b_fold.astype(jnp.float32),
        "b1": nt["b1"].reshape(1, d).astype(jnp.float32),
        "b2": nt["b2"].reshape(1, d).astype(jnp.float32),
    }


def decoder_forward_batched(prepped, essential, attribute):
    """Batched Decoder.forward over P pairs.

    essential, attribute: (P, b, d)  ->  (P, b, b+a, d) float32.
    Weights are loaded into VMEM once (constant index_map) and reused for all
    grid steps; the pair axis is marked "parallel" (both TCs on v7x).
    """
    P, b, d = essential.shape
    a = prepped["a"]
    per_i = b + a
    per_i_pad = _round_up(per_i, 8)           # sublane-aligned row block
    n_rows_pad = b * per_i_pad

    # Zero-pad attribute rows to per_i_pad (pad rows contribute 0 to the mean).
    attr_pad = jnp.pad(attribute, ((0, 0), (0, per_i_pad - b), (0, 0)))

    args = (essential, attr_pad,
            prepped["w_second"], prepped["w1a"], prepped["w2"],
            prepped["b_fold"], prepped["b1"], prepped["b2"])

    flops = P * 2 * d * d * (2 * per_i_pad + b + b * per_i_pad)
    weight_bytes = sum(int(prepped[k].size) * prepped[k].dtype.itemsize
                       for k in ("w_second", "w1a", "w2", "b_fold", "b1", "b2"))
    act_bytes = P * (b * d + per_i_pad * d + n_rows_pad * d) * 4
    bytes_accessed = weight_bytes + act_bytes

    out = pl.pallas_call(
        _decoder_fused_kernel,
        grid=(P,),
        in_specs=[
            pl.BlockSpec((1, b, d), lambda p: (p, 0, 0)),
            pl.BlockSpec((1, per_i_pad, d), lambda p: (p, 0, 0)),
            pl.BlockSpec((d, 2 * d), lambda p: (0, 0)),   # weights: constant
            pl.BlockSpec((d, d), lambda p: (0, 0)),       # index_map -> DMA'd
            pl.BlockSpec((d, d), lambda p: (0, 0)),       # once, stay resident
            pl.BlockSpec((1, d), lambda p: (0, 0)),
            pl.BlockSpec((1, d), lambda p: (0, 0)),
            pl.BlockSpec((1, d), lambda p: (0, 0)),
        ],
        out_specs=pl.BlockSpec((1, n_rows_pad, d), lambda p: (p, 0, 0)),
        out_shape=jax.ShapeDtypeStruct((P, n_rows_pad, d), jnp.float32),
        compiler_params=pltpu.CompilerParams(
            dimension_semantics=("parallel",)),
        cost_estimate=pl.CostEstimate(flops=flops, transcendentals=0,
                                      bytes_accessed=bytes_accessed),
    )(*args)

    # Strip the sublane padding before exposing the module's (b, b+a, d) shape.
    return out.reshape(P, b, per_i_pad, d)[:, :, :per_i, :]


def decoder_forward(prepped, essential, attribute):
    """Decoder.forward(essential, attribute) -> (b, b+a, 512)."""
    return decoder_forward_batched(prepped, essential[None], attribute[None])[0]


# ---------------------- pure-JAX reference (literal) -----------------------

def decoder_reference(params, essential, attribute):
    """Literal f32 translation of the PyTorch module (incl. q/k/softmax path)."""
    qp, nt = params["query"], params["net"]
    d = essential.shape[1]

    def linear(x, w, bias):
        return x @ w.T + bias

    b = attribute.shape[0]
    q = linear(qp["prompt"], qp["wq"], qp["bq"])            # (a, d)
    k = linear(attribute, qp["wk"], qp["bk"])               # (b, d)
    v = linear(attribute, qp["wv"], qp["bv"])               # (b, d)
    k_rep = jnp.broadcast_to(k[:, None, :], (b, b, d))      # k.unsqueeze(1).repeat(1,b,1)
    sim = jnp.einsum('ad,nbd->nab', q, k_rep) * SCALE
    attn = jax.nn.softmax(sim, axis=-1)
    out = jnp.einsum('nab,bd->nad', attn, v)
    vav = linear(out, qp["wo"], qp["bo"])                   # (b, a, d)
    a = vav.shape[1]

    ess = jnp.broadcast_to(essential[:, None, :], (b, b + a, d))
    second = jnp.concatenate(
        [jnp.broadcast_to(attribute[None, :, :], (b, b, d)), vav], axis=1)
    sample = jnp.concatenate([ess, second], axis=-1).reshape(b * (b + a), 2 * d)

    h = jnp.maximum(linear(sample, nt["w1"], nt["b1"]), 0.0)
    return linear(h, nt["w2"], nt["b2"]).reshape(b, b + a, d)


# ------------------------------ init (synthetic) ----------------------------

def init_params(key, a_prompt):
    keys = jax.random.split(key, 7)

    def lin(k, out_f, in_f):
        # weights_init: weight ~ N(0, 0.02), bias = 0
        w = jax.random.normal(k, (out_f, in_f), jnp.float32) * 0.02
        b = jnp.zeros((out_f,), jnp.float32)
        return w, b

    w1, b1 = lin(keys[0], D, 2 * D)
    w2, b2 = lin(keys[1], D, D)
    wq, bq = lin(keys[2], D, D)
    wk, bk = lin(keys[3], D, D)
    wv, bv = lin(keys[4], D, D)
    wo, bo = lin(keys[5], D, D)
    hard_prompt = jax.random.normal(keys[6], (a_prompt, D), jnp.float32)

    return {
        "net": {"w1": w1, "b1": b1, "w2": w2, "b2": b2},
        "query": {"prompt": hard_prompt,
                  "wq": wq, "bq": bq, "wk": wk, "bk": bk,
                  "wv": wv, "bv": bv, "wo": wo, "bo": bo},
    }


if __name__ == "__main__":
    key = jax.random.PRNGKey(0)
    kp, ke, ka = jax.random.split(key, 3)

    b, a = 2, 4                            # batch and number of hard prompts
    params = init_params(kp, a)
    essential = jax.random.normal(ke, (b, D), jnp.float32)
    attribute = jax.random.normal(ka, (b, D), jnp.float32)

    ref = decoder_reference(params, essential, attribute)

    # f32 path: checks the fused/folded kernel against the literal module.
    out_f32 = decoder_forward(prepare_params(params, jnp.float32),
                              essential, attribute)
    out_f32 = jax.block_until_ready(out_f32)

    # bf16 weight path (recommended perf config, f32 MXU accumulation).
    prepped_bf16 = prepare_params(params, jnp.bfloat16)
    out_bf16 = decoder_forward(prepped_bf16, essential, attribute)
    out_bf16 = jax.block_until_ready(out_bf16)

    assert out_f32.shape == (b, b + a, D), out_f32.shape
    assert out_bf16.shape == (b, b + a, D), out_bf16.shape
    assert bool(jnp.all(jnp.isfinite(out_f32)))
    assert bool(jnp.all(jnp.isfinite(out_bf16)))

    err_f32 = float(jnp.max(jnp.abs(out_f32 - ref)))
    err_bf16 = float(jnp.max(jnp.abs(out_bf16 - ref)))
    assert err_f32 < 5e-2, ("f32 mismatch", err_f32)
    assert err_bf16 < 5e-2, ("bf16 mismatch", err_bf16)

    # Batched path: many (essential, attribute) pairs share one pallas_call,
    # weights DMA'd once (constant index_map), pair axis "parallel".
    P = 3
    keP = jax.random.split(jax.random.PRNGKey(1), 2)
    essB = jax.random.normal(keP[0], (P, b, D), jnp.float32)
    attB = jax.random.normal(keP[1], (P, b, D), jnp.float32)
    outB = jax.block_until_ready(
        decoder_forward_batched(prepped_bf16, essB, attB))
    refB = jax.vmap(lambda e, t: decoder_reference(params, e, t))(essB, attB)
    assert outB.shape == (P, b, b + a, D), outB.shape
    err_b = float(jnp.max(jnp.abs(outB - refB)))
    assert err_b < 5e-2, ("batched mismatch", err_b)

    print("KERNEL_OK")
</pallas_src>

<mosaic_0001>
module attributes {stable_mosaic.version = 11 : i64} {
  func.func @_decoder_fused_kernel(%arg0: i32, %arg1: memref<1x2x512xf32, #tpu.memory_space<vmem>>, %arg2: memref<1x8x512xf32, #tpu.memory_space<vmem>>, %arg3: memref<512x1024xf32, #tpu.memory_space<vmem>>, %arg4: memref<512x512xf32, #tpu.memory_space<vmem>>, %arg5: memref<512x512xf32, #tpu.memory_space<vmem>>, %arg6: memref<1x512xf32, #tpu.memory_space<vmem>>, %arg7: memref<1x512xf32, #tpu.memory_space<vmem>>, %arg8: memref<1x512xf32, #tpu.memory_space<vmem>>, %arg9: memref<1x16x512xf32, #tpu.memory_space<vmem>>) attributes {dimension_semantics = [#tpu.dimension_semantics<parallel>], iteration_bounds = array<i64: 1>, scalar_prefetch = 0 : i64, scratch_operands = 0 : i64, tpu.core_type = #tpu.core_type<tc>, window_params = [{transform_indices = @transform_0, window_bounds = array<i64: 1, 2, 512>}, {transform_indices = @transform_1, window_bounds = array<i64: 1, 8, 512>}, {pipeline_mode = #tpu.pipeline_mode<synchronous>, transform_indices = @transform_2, window_bounds = array<i64: 512, 1024>}, {pipeline_mode = #tpu.pipeline_mode<synchronous>, transform_indices = @transform_3, window_bounds = array<i64: 512, 512>}, {pipeline_mode = #tpu.pipeline_mode<synchronous>, transform_indices = @transform_4, window_bounds = array<i64: 512, 512>}, {pipeline_mode = #tpu.pipeline_mode<synchronous>, transform_indices = @transform_5, window_bounds = array<i64: 1, 512>}, {pipeline_mode = #tpu.pipeline_mode<synchronous>, transform_indices = @transform_6, window_bounds = array<i64: 1, 512>}, {pipeline_mode = #tpu.pipeline_mode<synchronous>, transform_indices = @transform_7, window_bounds = array<i64: 1, 512>}, {transform_indices = @transform_8, window_bounds = array<i64: 1, 16, 512>}]} {
    %c0 = arith.constant 0 : index
    %c0_0 = arith.constant 0 : index
    %c0_1 = arith.constant 0 : index
    %0 = vector.load %arg2[%c0, %c0_0, %c0_1] : memref<1x8x512xf32, #tpu.memory_space<vmem>>, vector<1x8x512xf32>
    %1 = vector.shape_cast %0 : vector<1x8x512xf32> to vector<8x512xf32>
    %c0_2 = arith.constant 0 : index
    %c0_3 = arith.constant 0 : index
    %c0_4 = arith.constant 0 : index
    %2 = vector.load %arg1[%c0_2, %c0_3, %c0_4] : memref<1x2x512xf32, #tpu.memory_space<vmem>>, vector<1x2x512xf32>
    %3 = vector.shape_cast %2 : vector<1x2x512xf32> to vector<2x512xf32>
    %c0_5 = arith.constant 0 : index
    %c0_6 = arith.constant 0 : index
    %4 = vector.load %arg3[%c0_5, %c0_6] : memref<512x1024xf32, #tpu.memory_space<vmem>>, vector<512x1024xf32>
    %cst = arith.constant dense<0.000000e+00> : vector<8x1024xf32>
    %5 = tpu.matmul %1, %4, %cst {dimension_numbers = #tpu.dot_dimension_numbers<[1], [0], [0], [1], [0, 0, 1, 1], [], []>} : vector<8x512xf32>, vector<512x1024xf32>, vector<8x1024xf32> -> vector<8x1024xf32>
    %c0_7 = arith.constant 0 : index
    %c0_8 = arith.constant 0 : index
    %6 = vector.load %arg4[%c0_7, %c0_8] : memref<512x512xf32, #tpu.memory_space<vmem>>, vector<512x512xf32>
    %cst_9 = arith.constant dense<0.000000e+00> : vector<2x512xf32>
    %7 = tpu.matmul %3, %6, %cst_9 {dimension_numbers = #tpu.dot_dimension_numbers<[1], [0], [0], [1], [0, 0, 1, 1], [], []>} : vector<2x512xf32>, vector<512x512xf32>, vector<2x512xf32> -> vector<2x512xf32>
    %8 = vector.extract_strided_slice %5 {offsets = [0, 0], sizes = [8, 512], strides = [1, 1]} : vector<8x1024xf32> to vector<8x512xf32>
    %9 = vector.extract_strided_slice %5 {offsets = [0, 512], sizes = [8, 512], strides = [1, 1]} : vector<8x1024xf32> to vector<8x512xf32>
    %cst_10 = arith.constant dense<0.000000e+00> : vector<512xf32>
    %10 = vector.multi_reduction <add>, %9, %cst_10 [0] : vector<8x512xf32> to vector<512xf32>
    %11 = vector.shape_cast %10 : vector<512xf32> to vector<1x512xf32>
    %cst_11 = arith.constant 5.000000e-01 : f32
    %12 = vector.broadcast %cst_11 : f32 to vector<1x512xf32>
    %13 = arith.mulf %11, %12 : vector<1x512xf32>
    %c0_12 = arith.constant 0 : index
    %c0_13 = arith.constant 0 : index
    %14 = vector.load %arg6[%c0_12, %c0_13] : memref<1x512xf32, #tpu.memory_space<vmem>>, vector<1x512xf32>
    %15 = arith.addf %13, %14 : vector<1x512xf32>
    %16 = tpu.iota {dimensions = array<i32: 0>} : vector<8x1xi32>
    %c2_i32 = arith.constant 2 : i32
    %17 = vector.broadcast %c2_i32 : i32 to vector<8x1xi32>
    %18 = arith.cmpi slt, %16, %17 : vector<8x1xi32>
    %19 = vector.shape_cast %18 : vector<8x1xi1> to vector<8x1xi1>
    %20 = vector.broadcast %19 : vector<8x1xi1> to vector<8x512xi1>
    %21 = vector.shape_cast %15 : vector<1x512xf32> to vector<1x512xf32>
    %22 = vector.broadcast %21 : vector<1x512xf32> to vector<8x512xf32>
    %23 = arith.select %20, %8, %22 : vector<8x512xi1>, vector<8x512xf32>
    %c0_14 = arith.constant 0 : index
    %c0_15 = arith.constant 0 : index
    %24 = vector.load %arg7[%c0_14, %c0_15] : memref<1x512xf32, #tpu.memory_space<vmem>>, vector<1x512xf32>
    %25 = vector.broadcast %24 : vector<1x512xf32> to vector<8x512xf32>
    %26 = arith.addf %23, %25 : vector<8x512xf32>
    %27 = vector.shape_cast %7 : vector<2x512xf32> to vector<2x1x512xf32>
    %28 = vector.shape_cast %26 : vector<8x512xf32> to vector<1x8x512xf32>
    %29 = vector.broadcast %27 : vector<2x1x512xf32> to vector<2x8x512xf32>
    %30 = vector.broadcast %28 : vector<1x8x512xf32> to vector<2x8x512xf32>
    %31 = arith.addf %29, %30 : vector<2x8x512xf32>
    %cst_16 = arith.constant 0.000000e+00 : f32
    %32 = vector.broadcast %cst_16 : f32 to vector<2x8x512xf32>
    %33 = arith.maximumf %31, %32 : vector<2x8x512xf32>
    %34 = vector.shape_cast %33 : vector<2x8x512xf32> to vector<16x512xf32>
    %c0_17 = arith.constant 0 : index
    %c0_18 = arith.constant 0 : index
    %35 = vector.load %arg5[%c0_17, %c0_18] : memref<512x512xf32, #tpu.memory_space<vmem>>, vector<512x512xf32>
    %cst_19 = arith.constant dense<0.000000e+00> : vector<16x512xf32>
    %36 = tpu.matmul %34, %35, %cst_19 {dimension_numbers = #tpu.dot_dimension_numbers<[1], [0], [0], [1], [0, 0, 1, 1], [], []>} : vector<16x512xf32>, vector<512x512xf32>, vector<16x512xf32> -> vector<16x512xf32>
    %c0_20 = arith.constant 0 : index
    %c0_21 = arith.constant 0 : index
    %37 = vector.load %arg8[%c0_20, %c0_21] : memref<1x512xf32, #tpu.memory_space<vmem>>, vector<1x512xf32>
    %38 = vector.broadcast %37 : vector<1x512xf32> to vector<16x512xf32>
    %39 = arith.addf %36, %38 : vector<16x512xf32>
    %c0_22 = arith.constant 0 : index
    %c0_23 = arith.constant 0 : index
    %c0_24 = arith.constant 0 : index
    %40 = vector.load %arg9[%c0_22, %c0_23, %c0_24] : memref<1x16x512xf32, #tpu.memory_space<vmem>>, vector<1x16x512xf32>
    %41 = vector.shape_cast %40 : vector<1x16x512xf32> to vector<16x512xf32>
    %42 = vector.shape_cast %39 : vector<16x512xf32> to vector<1x16x512xf32>
    tpu.vector_store %arg9[%c0_22, %c0_23, %c0_24], %42 {strides = array<i32>} : memref<1x16x512xf32, #tpu.memory_space<vmem>>, vector<1x16x512xf32>,
    return
  }
  func.func @transform_0(%arg0: i32) -> (i32, i32, i32) {
    %c0_i32 = arith.constant 0 : i32
    %c0_i32_0 = arith.constant 0 : i32
    %c0_i32_1 = arith.constant 0 : i32
    return %arg0, %c0_i32, %c0_i32_0 : i32, i32, i32
  }
  func.func @transform_1(%arg0: i32) -> (i32, i32, i32) {
    %c0_i32 = arith.constant 0 : i32
    %c0_i32_0 = arith.constant 0 : i32
    %c0_i32_1 = arith.constant 0 : i32
    return %arg0, %c0_i32, %c0_i32_0 : i32, i32, i32
  }
  func.func @transform_2(%arg0: i32) -> (i32, i32) {
    %c0_i32 = arith.constant 0 : i32
    %c0_i32_0 = arith.constant 0 : i32
    %c0_i32_1 = arith.constant 0 : i32
    return %c0_i32, %c0_i32_0 : i32, i32
  }
  func.func @transform_3(%arg0: i32) -> (i32, i32) {
    %c0_i32 = arith.constant 0 : i32
    %c0_i32_0 = arith.constant 0 : i32
    %c0_i32_1 = arith.constant 0 : i32
    return %c0_i32, %c0_i32_0 : i32, i32
  }
  func.func @transform_4(%arg0: i32) -> (i32, i32) {
    %c0_i32 = arith.constant 0 : i32
    %c0_i32_0 = arith.constant 0 : i32
    %c0_i32_1 = arith.constant 0 : i32
    return %c0_i32, %c0_i32_0 : i32, i32
  }
  func.func @transform_5(%arg0: i32) -> (i32, i32) {
    %c0_i32 = arith.constant 0 : i32
    %c0_i32_0 = arith.constant 0 : i32
    %c0_i32_1 = arith.constant 0 : i32
    return %c0_i32, %c0_i32_0 : i32, i32
  }
  func.func @transform_6(%arg0: i32) -> (i32, i32) {
    %c0_i32 = arith.constant 0 : i32
    %c0_i32_0 = arith.constant 0 : i32
    %c0_i32_1 = arith.constant 0 : i32
    return %c0_i32, %c0_i32_0 : i32, i32
  }
  func.func @transform_7(%arg0: i32) -> (i32, i32) {
    %c0_i32 = arith.constant 0 : i32
    %c0_i32_0 = arith.constant 0 : i32
    %c0_i32_1 = arith.constant 0 : i32
    return %c0_i32, %c0_i32_0 : i32, i32
  }
  func.func @transform_8(%arg0: i32) -> (i32, i32, i32) {
    %c0_i32 = arith.constant 0 : i32
    %c0_i32_0 = arith.constant 0 : i32
    %c0_i32_1 = arith.constant 0 : i32
    return %arg0, %c0_i32, %c0_i32_0 : i32, i32, i32
  }
}

</mosaic_0001>

<bundles_post_ra>
// kernel: tpu_custom_call.1
= control target key start
LH: loop header
LB: loop body
LE: loop exit
PB: predicated region body
PF: predicated region fallthrough
CT: control target
= control target key end

     0   :  { %13 = vsyncpa [#allocation3], 0  ;;  %s4153_s0 = inlined_call_operand.hbm [shape: f32[1,2,512], index: 0, kind: input, shape index: {}]   ;;  %s4154_s1 = inlined_call_operand.hbm [shape: f32[1,8,512], index: 1, kind: input, shape index: {}]   ;;  %s4155_s2 = inlined_call_operand.hbm [shape: f32[512,1024], index: 2, kind: input, shape index: {}]   ;;  %s4156_s3 = inlined_call_operand.hbm [shape: f32[512,512], index: 3, kind: input, shape index: {}]   ;;  %s4157_s4 = inlined_call_operand.hbm [shape: f32[512,512], index: 4, kind: input, shape index: {}]   ;;  %s4158_s5 = inlined_call_operand.hbm [shape: f32[1,512], index: 5, kind: input, shape index: {}]   ;;  %s4159_s6 = inlined_call_operand.hbm [shape: f32[1,512], index: 6, kind: input, shape index: {}]   ;;  %s4160_s7 = inlined_call_operand.hbm [shape: f32[1,512], index: 7, kind: input, shape index: {}]   ;;  %s4161_s8 = inlined_call_operand.hbm [shape: f32[1,16,512], index: 8, kind: output, shape index: {}]  }
   0x1   :  { %14 = vsyncpa [#allocation6], 0 }
   0x2   :  { %15 = vsyncpa [#allocation9], 0 }
   0x3   :  { %16 = vsyncpa [#allocation12], 0 }
   0x4   :  { %17 = vsyncpa [#allocation15], 0 }
   0x5   :  { %18 = vsyncpa [#allocation4], 0  ;;  %s3868_s27 = smov [#allocation5]   ;;  %s3869_s29 = smov [#allocation8]  }
   0x6   :  { %s35_s28 = sshll.u32 %s3868_s27, 4  ;;  %s56_s30 = sshll.u32 %s3869_s29, 4  ;;  %s36_s28 = int_to_ptr.vmem [resolvable:$true] %s35_s28  ;;  %s3928_s30 = int_to_ptr.vmem [resolvable:$true] %s56_s30 }
   0x7   :  { %s3658_s11 = scalar_lea.hbm %s4154_s1, 512 }
   0x8   :  { %p3659_p0 = scmp.ne.s32.totalorder %s4154_s1, %s3658_s11  ;;  %p3662_p1 = scmp.lt.u32.totalorder %s3658_s11, %s4154_s1 }
   0xa   :  { %p3664_p2 = pnand %p3662_p1, %p3659_p0 }
   0xc   :  { %3667 = shalt.err (!%p3664_p2)
}
   0xd   :  { %s3668_s16 = scalar_lea.vmem %s36_s28, 512  ;;  %p3673_p4 = scmp.lt.s32.totalorder %s36_s28, %s36_s28 }
   0xe   :  { %p3669_p3 = scmp.ne.s32.totalorder %s36_s28, %s3668_s16  ;;  %p3674_p5 = scmp.lt.s32.totalorder %s3668_s16, %s3668_s16 }
  0x10   :  { %p3675_p6 = por %p3674_p5, %p3673_p4 }
  0x12   :  { %p3676_p7 = pnand %p3675_p6, %p3669_p3 }
  0x14   :  { %3679 = shalt.err (!%p3676_p7)
}
  0x15   :  { %38 = dma.hbm_to_vmem [thread:$0]  %s4154_s1, 512, %s36_s28, [#allocation6]  }
  0x16   :  { %s3680_s21 = scalar_lea.hbm %s4156_s3, 32768 }
  0x17   :  { %p3681_p8 = scmp.ne.s32.totalorder %s4156_s3, %s3680_s21  ;;  %p3684_p9 = scmp.lt.u32.totalorder %s3680_s21, %s4156_s3 }
  0x19   :  { %p3686_p10 = pnand %p3684_p9, %p3681_p8 }
  0x1b   :  { %3689 = shalt.err (!%p3686_p10)
}
  0x1c   :  { %s3690_s26 = scalar_lea.vmem %s3928_s30, 32768  ;;  %p3695_p12 = scmp.lt.s32.totalorder %s3928_s30, %s3928_s30 }
  0x1d   :  { %p3691_p11 = scmp.ne.s32.totalorder %s3928_s30, %s3690_s26  ;;  %p3696_p13 = scmp.lt.s32.totalorder %s3690_s26, %s3690_s26 }
  0x1f   :  { %p3697_p0 = por %p3696_p13, %p3695_p12 }
  0x21   :  { %p3698_p1 = pnand %p3697_p0, %p3691_p11 }
  0x23   :  { %3701 = shalt.err (!%p3698_p1)
}
  0x24   :  { %s3870_s1 = smov 512   ;;  %s3871_s27 = smov 32  }
  0x25   :  { %62 = dma.hbm_to_vmem [thread:$0]  %s4156_s3, 32768, %s3928_s30, [#allocation9], %s3870_s1, %s3870_s1, %s3871_s27  }
  0x26   :  { %s3872_s9 = smov [#allocation11]   ;;  %s3873_s11 = smov [#allocation2]  }
  0x27   :  { %s81_s10 = sshll.u32 %s3872_s9, 4  ;;  %s25_s12 = sshll.u32 %s3873_s11, 4  ;;  %s82_s10 = int_to_ptr.vmem [resolvable:$true] %s81_s10  ;;  %s26_s12 = int_to_ptr.vmem [resolvable:$true] %s25_s12 }
  0x28   :  { %s3702_s15 = scalar_lea.hbm %s4158_s5, 64 }
  0x29   :  { %p3703_p2 = scmp.ne.s32.totalorder %s4158_s5, %s3702_s15  ;;  %p3706_p3 = scmp.lt.u32.totalorder %s3702_s15, %s4158_s5 }
  0x2b   :  { %p3708_p4 = pnand %p3706_p3, %p3703_p2 }
  0x2d   :  { %3711 = shalt.err (!%p3708_p4)
}
  0x2e   :  { %s3712_s3 = scalar_lea.vmem %s82_s10, 64  ;;  %p3717_p6 = scmp.lt.s32.totalorder %s82_s10, %s82_s10 }
  0x2f   :  { %p3713_p5 = scmp.ne.s32.totalorder %s82_s10, %s3712_s3  ;;  %p3718_p7 = scmp.lt.s32.totalorder %s3712_s3, %s3712_s3 }
  0x31   :  { %p3719_p8 = por %p3718_p7, %p3717_p6 }
  0x33   :  { %p3720_p9 = pnand %p3719_p8, %p3713_p5 }
  0x35   :  { %3723 = shalt.err (!%p3720_p9)
}
  0x36   :  { %84 = dma.hbm_to_vmem [thread:$0]  %s4158_s5, 64, %s82_s10, [#allocation12]  }
  0x37   :  { %s3724_s23 = scalar_lea.hbm %s4153_s0, 128 }
  0x38   :  { %p3725_p10 = scmp.ne.s32.totalorder %s4153_s0, %s3724_s23  ;;  %p3728_p11 = scmp.lt.u32.totalorder %s3724_s23, %s4153_s0 }
  0x3a   :  { %p3730_p12 = pnand %p3728_p11, %p3725_p10 }
  0x3c   :  { %3733 = shalt.err (!%p3730_p12)
}
  0x3d   :  { %s3734_s29 = scalar_lea.vmem %s26_s12, 128  ;;  %p3739_p0 = scmp.lt.s32.totalorder %s26_s12, %s26_s12 }
  0x3e   :  { %p3735_p13 = scmp.ne.s32.totalorder %s26_s12, %s3734_s29  ;;  %p3740_p1 = scmp.lt.s32.totalorder %s3734_s29, %s3734_s29 }
  0x40   :  { %p3741_p2 = por %p3740_p1, %p3739_p0 }
  0x42   :  { %p3742_p3 = pnand %p3741_p2, %p3735_p13 }
  0x44   :  { %3745 = shalt.err (!%p3742_p3)
}
  0x45   :  { %28 = dma.hbm_to_vmem [thread:$0]  %s4153_s0, 128, %s26_s12, [#allocation3]  }
  0x46   :  { %s3874_s10 = smov [#allocation7]   ;;  %s3746_s15 = scalar_lea.hbm %s4155_s2, 65536 }
  0x47   :  { %s44_s11 = sshll.u32 %s3874_s10, 4  ;;  %p3747_p4 = scmp.ne.s32.totalorder %s4155_s2, %s3746_s15  ;;  %s45_s11 = int_to_ptr.vmem [resolvable:$true] %s44_s11 }
  0x48   :  { %p3750_p5 = scmp.lt.u32.totalorder %s3746_s15, %s4155_s2 }
  0x4a   :  { %p3752_p6 = pnand %p3750_p5, %p3747_p4 }
  0x4c   :  { %3755 = shalt.err (!%p3752_p6)
}
  0x4d   :  { %s3756_s3 = scalar_lea.vmem %s45_s11, 65536  ;;  %p3761_p8 = scmp.lt.s32.totalorder %s45_s11, %s45_s11 }
  0x4e   :  { %p3757_p7 = scmp.ne.s32.totalorder %s45_s11, %s3756_s3  ;;  %p3762_p9 = scmp.lt.s32.totalorder %s3756_s3, %s3756_s3 }
  0x50   :  { %p3763_p10 = por %p3762_p9, %p3761_p8 }
  0x52   :  { %p3764_p11 = pnand %p3763_p10, %p3757_p7 }
  0x54   :  { %3767 = shalt.err (!%p3764_p11)
}
  0x55   :  { %s3875_s0 = smov 1024   ;;  %s3876_s12 = smov 64  }
  0x56   :  { %50 = dma.hbm_to_vmem [thread:$0]  %s4155_s2, 65536, %s45_s11, [#allocation6], %s3875_s0, %s3875_s0, %s3876_s12  }
  0x57   :  { %s3877_s21 = smov [#allocation10]   ;;  %s3878_s23 = smov [#allocation13]  }
  0x58   :  { %s68_s22 = sshll.u32 %s3877_s21, 4  ;;  %s91_s24 = sshll.u32 %s3878_s23, 4  ;;  %s69_s22 = int_to_ptr.vmem [resolvable:$true] %s68_s22  ;;  %s92_s24 = int_to_ptr.vmem [resolvable:$true] %s91_s24 }
  0x59   :  { %s3768_s28 = scalar_lea.hbm %s4157_s4, 32768 }
  0x5a   :  { %p3769_p12 = scmp.ne.s32.totalorder %s4157_s4, %s3768_s28  ;;  %p3772_p13 = scmp.lt.u32.totalorder %s3768_s28, %s4157_s4 }
  0x5c   :  { %p3774_p0 = pnand %p3772_p13, %p3769_p12 }
  0x5e   :  { %3777 = shalt.err (!%p3774_p0)
}
  0x5f   :  { %s3778_s2 = scalar_lea.vmem %s69_s22, 32768  ;;  %p3783_p2 = scmp.lt.s32.totalorder %s69_s22, %s69_s22 }
  0x60   :  { %p3779_p1 = scmp.ne.s32.totalorder %s69_s22, %s3778_s2  ;;  %p3784_p3 = scmp.lt.s32.totalorder %s3778_s2, %s3778_s2 }
  0x62   :  { %p3785_p4 = por %p3784_p3, %p3783_p2 }
  0x64   :  { %p3786_p5 = pnand %p3785_p4, %p3779_p1 }
  0x66   :  { %3789 = shalt.err (!%p3786_p5)
}
  0x67   :  { %74 = dma.hbm_to_vmem [thread:$0]  %s4157_s4, 32768, %s69_s22, [#allocation9], %s3870_s1, %s3870_s1, %s3871_s27  }
  0x68   :  { %s3790_s16 = scalar_lea.hbm %s4159_s6, 64 }
  0x69   :  { %p3791_p6 = scmp.ne.s32.totalorder %s4159_s6, %s3790_s16  ;;  %p3794_p7 = scmp.lt.u32.totalorder %s3790_s16, %s4159_s6 }
  0x6b   :  { %p3796_p8 = pnand %p3794_p7, %p3791_p6 }
  0x6d   :  { %3799 = shalt.err (!%p3796_p8)
}
  0x6e   :  { %s3800_s0 = scalar_lea.vmem %s92_s24, 64  ;;  %p3805_p10 = scmp.lt.s32.totalorder %s92_s24, %s92_s24 }
  0x6f   :  { %p3801_p9 = scmp.ne.s32.totalorder %s92_s24, %s3800_s0  ;;  %p3806_p11 = scmp.lt.s32.totalorder %s3800_s0, %s3800_s0 }
  0x71   :  { %p3807_p12 = por %p3806_p11, %p3805_p10 }
  0x73   :  { %p3808_p13 = pnand %p3807_p12, %p3801_p9 }
  0x75   :  { %3811 = shalt.err (!%p3808_p13)
}
  0x76   :  { %94 = dma.hbm_to_vmem [thread:$0]  %s4159_s6, 64, %s92_s24, [#allocation12]  }
  0x77   :  { %s3879_s30 = smov [#allocation14]   ;;  %s3812_s23 = scalar_lea.hbm %s4160_s7, 64 }
  0x78   :  { %s101_s20 = sshll.u32 %s3879_s30, 4  ;;  %p3813_p0 = scmp.ne.s32.totalorder %s4160_s7, %s3812_s23  ;;  %s102_s20 = int_to_ptr.vmem [resolvable:$true] %s101_s20 }
  0x79   :  { %p3816_p1 = scmp.lt.u32.totalorder %s3812_s23, %s4160_s7 }
  0x7b   :  { %p3818_p2 = pnand %p3816_p1, %p3813_p0 }
  0x7d   :  { %3821 = shalt.err (!%p3818_p2)
}
  0x7e   :  { %s3822_s5 = scalar_lea.vmem %s102_s20, 64  ;;  %p3827_p4 = scmp.lt.s32.totalorder %s102_s20, %s102_s20 }
  0x7f   :  { %p3823_p3 = scmp.ne.s32.totalorder %s102_s20, %s3822_s5  ;;  %p3828_p5 = scmp.lt.s32.totalorder %s3822_s5, %s3822_s5 }
  0x81   :  { %p3829_p6 = por %p3828_p5, %p3827_p4 }
  0x83   :  { %p3830_p7 = pnand %p3829_p6, %p3823_p3 }
  0x85   :  { %3833 = shalt.err (!%p3830_p7)
}
  0x86   :  { %104 = dma.hbm_to_vmem [thread:$0]  %s4160_s7, 64, %s102_s20, [#allocation15]  }
  0x87   :  { %3856 = dma.done.wait [#allocation3], 128  }
  0x88   :  { %3857 = vsyncadd [#allocation3], 4294967168 }
  0x89   :  { %3858 = dma.done.wait [#allocation6], 66048  }
  0x8a   :  { %3859 = vsyncadd [#allocation6], 4294901248 }
  0x8b   :  { %3860 = dma.done.wait [#allocation9], 65536  }
  0x8c   :  { %3861 = vsyncadd [#allocation9], 4294901760 }
  0x8d   :  { %3862 = dma.done.wait [#allocation12], 128  }
  0x8e   :  { %3863 = vsyncadd [#allocation12], 4294967168 }
  0x8f   :  { %3864 = dma.done.wait [#allocation15], 64  }
  0x90   :  { %3865 = vsyncadd [#allocation15], 4294967232  ;;  %v135_v0 = vld [vmem:[#allocation7 + $0x8] sm:$0xff]  ;;  %v137_v2 = vld [vmem:[#allocation7 + $0x18] sm:$0xff]  ;;  %s3882_s7 = smov [#allocation16]  }
  0x91   :  { %v143_v1 = vld [vmem:[#allocation7 + $0x48] sm:$0xff]  ;;  %v145_v4 = vld [vmem:[#allocation7 + $0x58] sm:$0xff]  ;;  %v134_v5 = vld [vmem:[#allocation7] sm:$0xff]  ;;  %s2572_s9 = sshll.u32 %s3882_s7, 4  ;;  %s2573_s9 = int_to_ptr.vmem [resolvable:$true] %s2572_s9 }
  0x92   :  { %v2588_v3 = vpack.c.bf16 %v143_v1, %v135_v0  ;;  %v142_v6 = vld [vmem:[#allocation7 + $0x40] sm:$0xff]  ;;  %v2716_v7 = vpack.c.bf16 %v145_v4, %v137_v2  ;;  %v136_v9 = vld [vmem:[#allocation7 + $0x10] sm:$0xff]  ;;  %v151_v11 = vld [vmem:[#allocation7 + $0x88] sm:$0xff]  ;;  %s3834_s10 = scalar_lea.vmem %s2573_s9, 1024  ;;  %p3839_p9 = scmp.lt.s32.totalorder %s2573_s9, %s2573_s9 }
  0x93   :  { %v2590_v8 = vpack.c.bf16 %v142_v6, %v134_v5  ;;  %v144_v10 = vld [vmem:[#allocation7 + $0x50] sm:$0xff]  ;;  %v159_v13 = vld [vmem:[#allocation7 + $0xc8] sm:$0xff]  ;;  %v153_v14 = vld [vmem:[#allocation7 + $0x98] sm:$0xff]  ;;  %p3835_p8 = scmp.ne.s32.totalorder %s2573_s9, %s3834_s10  ;;  %p3840_p10 = scmp.lt.s32.totalorder %s3834_s10, %s3834_s10 }
  0x94   :  { %2589 = vmatprep.subr.bf16.mxu0 %v2588_v3  ;;  %v2718_v12 = vpack.c.bf16 %v144_v10, %v136_v9  ;;  %v161_v15 = vld [vmem:[#allocation7 + $0xd8] sm:$0xff]  ;;  %2717 = vmatprep.subr.bf16.mxu1 %v2716_v7  ;;  %v2592_v16 = vpack.c.bf16 %v159_v13, %v151_v11  ;;  %v150_v18 = vld [vmem:[#allocation7 + $0x80] sm:$0xff]  ;;  %v152_v20 = vld [vmem:[#allocation7 + $0x90] sm:$0xff] }
  0x95   :  { %2591 = vmatpush1.bf16.msra.mxu0 %v2590_v8  ;;  %v2720_v17 = vpack.c.bf16 %v161_v15, %v153_v14  ;;  %v158_v19 = vld [vmem:[#allocation7 + $0xc0] sm:$0xff]  ;;  %v160_v22 = vld [vmem:[#allocation7 + $0xd0] sm:$0xff]  ;;  %v167_v23 = vld [vmem:[#allocation7 + $0x108] sm:$0xff]  ;;  %p3841_p11 = por %p3840_p10, %p3839_p9 }
  0x96   :  { %2719 = vmatpush1.bf16.msra.mxu1 %v2718_v12  ;;  %v2594_v21 = vpack.c.bf16 %v158_v19, %v150_v18  ;;  %v175_v24 = vld [vmem:[#allocation7 + $0x148] sm:$0xff]  ;;  %2593 = vmatprep.subr.bf16.mxu0 %v2592_v16  ;;  %v2722_v25 = vpack.c.bf16 %v160_v22, %v152_v20  ;;  %v169_v27 = vld [vmem:[#allocation7 + $0x118] sm:$0xff]  ;;  %v166_v29 = vld [vmem:[#allocation7 + $0x100] sm:$0xff] }
  0x97   :  { %2721 = vmatprep.subr.bf16.mxu1 %v2720_v17  ;;  %v2596_v26 = vpack.c.bf16 %v175_v24, %v167_v23  ;;  %v177_v28 = vld [vmem:[#allocation7 + $0x158] sm:$0xff]  ;;  %v174_v31 = vld [vmem:[#allocation7 + $0x140] sm:$0xff]  ;;  %v168_v32 = vld [vmem:[#allocation7 + $0x110] sm:$0xff]  ;;  %p3842_p12 = pnand %p3841_p11, %p3835_p8 }
  0x98   :  { %v2724_v30 = vpack.c.bf16 %v177_v28, %v169_v27  ;;  %v176_v33 = vld [vmem:[#allocation7 + $0x150] sm:$0xff]  ;;  %v2598_v34 = vpack.c.bf16 %v174_v31, %v166_v29  ;;  %v183_v35 = vld [vmem:[#allocation7 + $0x188] sm:$0xff]  ;;  %v185_v37 = vld [vmem:[#allocation7 + $0x198] sm:$0xff] }
  0x99   :  { %2595 = vmatpush1.bf16.msra.mxu0 %v2594_v21  ;;  %v191_v36 = vld [vmem:[#allocation7 + $0x1c8] sm:$0xff]  ;;  %v2726_v38 = vpack.c.bf16 %v176_v33, %v168_v32  ;;  %v193_v40 = vld [vmem:[#allocation7 + $0x1d8] sm:$0xff]  ;;  %v182_v41 = vld [vmem:[#allocation7 + $0x180] sm:$0xff] }
  0x9a   :  { %2723 = vmatpush1.bf16.msra.mxu1 %v2722_v25  ;;  %2597 = vmatprep.subr.bf16.mxu0 %v2596_v26  ;;  %v2600_v39 = vpack.c.bf16 %v191_v36, %v183_v35  ;;  %v190_v42 = vld [vmem:[#allocation7 + $0x1c0] sm:$0xff]  ;;  %v2728_v43 = vpack.c.bf16 %v193_v40, %v185_v37  ;;  %v184_v44 = vld [vmem:[#allocation7 + $0x190] sm:$0xff]  ;;  %v199_v46 = vld [vmem:[#allocation7 + $0x208] sm:$0xff] }
  0x9b   :  { %2725 = vmatprep.subr.bf16.mxu1 %v2724_v30  ;;  %v192_v45 = vld [vmem:[#allocation7 + $0x1d0] sm:$0xff]  ;;  %v207_v47 = vld [vmem:[#allocation7 + $0x248] sm:$0xff]  ;;  %v201_v48 = vld [vmem:[#allocation7 + $0x218] sm:$0xff]  ;;  %v2602_v50 = vpack.c.bf16 %v190_v42, %v182_v41 }
  0x9c   :  { %v209_v49 = vld [vmem:[#allocation7 + $0x258] sm:$0xff]  ;;  %v2730_v51 = vpack.c.bf16 %v192_v45, %v184_v44  ;;  %v2604_v52 = vpack.c.bf16 %v207_v47, %v199_v46  ;;  %v198_v53 = vld [vmem:[#allocation7 + $0x200] sm:$0xff]  ;;  %v200_v55 = vld [vmem:[#allocation7 + $0x210] sm:$0xff] }
  0x9d   :  { %2599 = vmatpush1.bf16.msra.mxu0 %v2598_v34  ;;  %v206_v54 = vld [vmem:[#allocation7 + $0x240] sm:$0xff]  ;;  %v2732_v56 = vpack.c.bf16 %v209_v49, %v201_v48  ;;  %v208_v57 = vld [vmem:[#allocation7 + $0x250] sm:$0xff]  ;;  %v215_v58 = vld [vmem:[#allocation7 + $0x288] sm:$0xff] }
  0x9e   :  { %2727 = vmatpush1.bf16.msra.mxu1 %v2726_v38  ;;  %2601 = vmatprep.subr.bf16.mxu0 %v2600_v39  ;;  %v223_v59 = vld [vmem:[#allocation7 + $0x2c8] sm:$0xff]  ;;  %v217_v60 = vld [vmem:[#allocation7 + $0x298] sm:$0xff]  ;;  %v2606_v62 = vpack.c.bf16 %v206_v54, %v198_v53  ;;  %v2734_v63 = vpack.c.bf16 %v208_v57, %v200_v55  ;;  %v214_v1 = vld [vmem:[#allocation7 + $0x280] sm:$0xff] }
  0x9f   :  { %2729 = vmatprep.subr.bf16.mxu1 %v2728_v43  ;;  %v225_v61 = vld [vmem:[#allocation7 + $0x2d8] sm:$0xff]  ;;  %v2608_v0 = vpack.c.bf16 %v223_v59, %v215_v58  ;;  %v222_v2 = vld [vmem:[#allocation7 + $0x2c0] sm:$0xff]  ;;  %v216_v3 = vld [vmem:[#allocation7 + $0x290] sm:$0xff] }
  0xa0   :  { %v2736_v4 = vpack.c.bf16 %v225_v61, %v217_v60  ;;  %v224_v5 = vld [vmem:[#allocation7 + $0x2d0] sm:$0xff]  ;;  %v231_v6 = vld [vmem:[#allocation7 + $0x308] sm:$0xff]  ;;  %v233_v8 = vld [vmem:[#allocation7 + $0x318] sm:$0xff]  ;;  %v2610_v10 = vpack.c.bf16 %v222_v2, %v214_v1 }
  0xa1   :  { %2603 = vmatpush1.bf16.msra.mxu0 %v2602_v50  ;;  %v239_v7 = vld [vmem:[#allocation7 + $0x348] sm:$0xff]  ;;  %v241_v9 = vld [vmem:[#allocation7 + $0x358] sm:$0xff]  ;;  %v2738_v11 = vpack.c.bf16 %v224_v5, %v216_v3  ;;  %v230_v13 = vld [vmem:[#allocation7 + $0x300] sm:$0xff] }
  0xa2   :  { %2731 = vmatpush1.bf16.msra.mxu1 %v2730_v51  ;;  %2605 = vmatprep.subr.bf16.mxu0 %v2604_v52  ;;  %v2612_v12 = vpack.c.bf16 %v239_v7, %v231_v6  ;;  %v238_v14 = vld [vmem:[#allocation7 + $0x340] sm:$0xff]  ;;  %v232_v15 = vld [vmem:[#allocation7 + $0x310] sm:$0xff]  ;;  %v2740_v16 = vpack.c.bf16 %v241_v9, %v233_v8  ;;  %v247_v18 = vld [vmem:[#allocation7 + $0x388] sm:$0xff] }
  0xa3   :  { %2733 = vmatprep.subr.bf16.mxu1 %v2732_v56  ;;  %v240_v17 = vld [vmem:[#allocation7 + $0x350] sm:$0xff]  ;;  %v255_v19 = vld [vmem:[#allocation7 + $0x3c8] sm:$0xff]  ;;  %v249_v20 = vld [vmem:[#allocation7 + $0x398] sm:$0xff]  ;;  %v2614_v22 = vpack.c.bf16 %v238_v14, %v230_v13 }
  0xa4   :  { %v257_v21 = vld [vmem:[#allocation7 + $0x3d8] sm:$0xff]  ;;  %v2742_v23 = vpack.c.bf16 %v240_v17, %v232_v15  ;;  %v2616_v24 = vpack.c.bf16 %v255_v19, %v247_v18  ;;  %v246_v25 = vld [vmem:[#allocation7 + $0x380] sm:$0xff]  ;;  %v248_v27 = vld [vmem:[#allocation7 + $0x390] sm:$0xff] }
  0xa5   :  { %2607 = vmatpush1.bf16.msra.mxu0 %v2606_v62  ;;  %v254_v26 = vld [vmem:[#allocation7 + $0x3c0] sm:$0xff]  ;;  %v2744_v28 = vpack.c.bf16 %v257_v21, %v249_v20  ;;  %v256_v29 = vld [vmem:[#allocation7 + $0x3d0] sm:$0xff]  ;;  %v263_v30 = vld [vmem:[#allocation7 + $0x408] sm:$0xff] }
  0xa6   :  { %2735 = vmatpush1.bf16.msra.mxu1 %v2734_v63  ;;  %2609 = vmatprep.subr.bf16.mxu0 %v2608_v0  ;;  %v271_v31 = vld [vmem:[#allocation7 + $0x448] sm:$0xff]  ;;  %v265_v32 = vld [vmem:[#allocation7 + $0x418] sm:$0xff]  ;;  %v2618_v34 = vpack.c.bf16 %v254_v26, %v246_v25  ;;  %v2746_v35 = vpack.c.bf16 %v256_v29, %v248_v27  ;;  %v262_v37 = vld [vmem:[#allocation7 + $0x400] sm:$0xff] }
  0xa7   :  { %2737 = vmatprep.subr.bf16.mxu1 %v2736_v4  ;;  %v273_v33 = vld [vmem:[#allocation7 + $0x458] sm:$0xff]  ;;  %v2620_v36 = vpack.c.bf16 %v271_v31, %v263_v30  ;;  %v270_v38 = vld [vmem:[#allocation7 + $0x440] sm:$0xff]  ;;  %v264_v39 = vld [vmem:[#allocation7 + $0x410] sm:$0xff] }
  0xa8   :  { %v2748_v40 = vpack.c.bf16 %v273_v33, %v265_v32  ;;  %v272_v41 = vld [vmem:[#allocation7 + $0x450] sm:$0xff]  ;;  %v279_v42 = vld [vmem:[#allocation7 + $0x488] sm:$0xff]  ;;  %v281_v44 = vld [vmem:[#allocation7 + $0x498] sm:$0xff]  ;;  %v2622_v46 = vpack.c.bf16 %v270_v38, %v262_v37 }
  0xa9   :  { %2611 = vmatpush1.bf16.msra.mxu0 %v2610_v10  ;;  %v287_v43 = vld [vmem:[#allocation7 + $0x4c8] sm:$0xff]  ;;  %v289_v45 = vld [vmem:[#allocation7 + $0x4d8] sm:$0xff]  ;;  %v2750_v47 = vpack.c.bf16 %v272_v41, %v264_v39  ;;  %v278_v49 = vld [vmem:[#allocation7 + $0x480] sm:$0xff] }
  0xaa   :  { %2739 = vmatpush1.bf16.msra.mxu1 %v2738_v11  ;;  %2613 = vmatprep.subr.bf16.mxu0 %v2612_v12  ;;  %v2624_v48 = vpack.c.bf16 %v287_v43, %v279_v42  ;;  %v286_v50 = vld [vmem:[#allocation7 + $0x4c0] sm:$0xff]  ;;  %v280_v51 = vld [vmem:[#allocation7 + $0x490] sm:$0xff]  ;;  %v2752_v52 = vpack.c.bf16 %v289_v45, %v281_v44  ;;  %v295_v54 = vld [vmem:[#allocation7 + $0x508] sm:$0xff] }
  0xab   :  { %2741 = vmatprep.subr.bf16.mxu1 %v2740_v16  ;;  %v288_v53 = vld [vmem:[#allocation7 + $0x4d0] sm:$0xff]  ;;  %v303_v55 = vld [vmem:[#allocation7 + $0x548] sm:$0xff]  ;;  %v297_v56 = vld [vmem:[#allocation7 + $0x518] sm:$0xff]  ;;  %v2626_v58 = vpack.c.bf16 %v286_v50, %v278_v49 }
  0xac   :  { %v305_v57 = vld [vmem:[#allocation7 + $0x558] sm:$0xff]  ;;  %v2754_v59 = vpack.c.bf16 %v288_v53, %v280_v51  ;;  %v2628_v60 = vpack.c.bf16 %v303_v55, %v295_v54  ;;  %v294_v61 = vld [vmem:[#allocation7 + $0x500] sm:$0xff]  ;;  %v296_v63 = vld [vmem:[#allocation7 + $0x510] sm:$0xff] }
  0xad   :  { %2615 = vmatpush1.bf16.msra.mxu0 %v2614_v22  ;;  %v302_v62 = vld [vmem:[#allocation7 + $0x540] sm:$0xff]  ;;  %v2756_v0 = vpack.c.bf16 %v305_v57, %v297_v56  ;;  %v304_v1 = vld [vmem:[#allocation7 + $0x550] sm:$0xff]  ;;  %v311_v2 = vld [vmem:[#allocation7 + $0x588] sm:$0xff] }
  0xae   :  { %2743 = vmatpush1.bf16.msra.mxu1 %v2742_v23  ;;  %2617 = vmatprep.subr.bf16.mxu0 %v2616_v24  ;;  %v319_v3 = vld [vmem:[#allocation7 + $0x5c8] sm:$0xff]  ;;  %v313_v4 = vld [vmem:[#allocation7 + $0x598] sm:$0xff]  ;;  %v2630_v6 = vpack.c.bf16 %v302_v62, %v294_v61  ;;  %v310_v7 = vld [vmem:[#allocation7 + $0x580] sm:$0xff]  ;;  %v2758_v8 = vpack.c.bf16 %v304_v1, %v296_v63 }
  0xaf   :  { %2745 = vmatprep.subr.bf16.mxu1 %v2744_v28  ;;  %v321_v5 = vld [vmem:[#allocation7 + $0x5d8] sm:$0xff]  ;;  %v2632_v9 = vpack.c.bf16 %v319_v3, %v311_v2  ;;  %v318_v10 = vld [vmem:[#allocation7 + $0x5c0] sm:$0xff]  ;;  %v312_v11 = vld [vmem:[#allocation7 + $0x590] sm:$0xff] }
  0xb0   :  { %v320_v12 = vld [vmem:[#allocation7 + $0x5d0] sm:$0xff]  ;;  %v2760_v13 = vpack.c.bf16 %v321_v5, %v313_v4  ;;  %v327_v14 = vld [vmem:[#allocation7 + $0x608] sm:$0xff]  ;;  %v329_v17 = vld [vmem:[#allocation7 + $0x618] sm:$0xff]  ;;  %v2634_v19 = vpack.c.bf16 %v318_v10, %v310_v7 }
  0xb1   :  { %2619 = vmatpush1.bf16.msra.mxu0 %v2618_v34  ;;  %v335_v15 = vld [vmem:[#allocation7 + $0x648] sm:$0xff]  ;;  %v337_v18 = vld [vmem:[#allocation7 + $0x658] sm:$0xff]  ;;  %v2762_v20 = vpack.c.bf16 %v320_v12, %v312_v11  ;;  %v326_v22 = vld [vmem:[#allocation7 + $0x600] sm:$0xff] }
  0xb2   :  { %2747 = vmatpush1.bf16.msra.mxu1 %v2746_v35  ;;  %2621 = vmatprep.subr.bf16.mxu0 %v2620_v36  ;;  %v4037_v16 = vld [vmem:[#allocation5 + $0x8] sm:$0xff]  ;;  %v2636_v21 = vpack.c.bf16 %v335_v15, %v327_v14  ;;  %v334_v23 = vld [vmem:[#allocation7 + $0x640] sm:$0xff]  ;;  %v328_v24 = vld [vmem:[#allocation7 + $0x610] sm:$0xff]  ;;  %v2764_v25 = vpack.c.bf16 %v337_v18, %v329_v17 }
  0xb3   :  { %2749 = vmatprep.subr.bf16.mxu1 %v2748_v40  ;;  %710 = vmatprep.mubr.f32.mxu0 %v4037_v16  ;;  %v336_v26 = vld [vmem:[#allocation7 + $0x650] sm:$0xff]  ;;  %v343_v27 = vld [vmem:[#allocation7 + $0x688] sm:$0xff]  ;;  %v345_v29 = vld [vmem:[#allocation7 + $0x698] sm:$0xff]  ;;  %v2638_v31 = vpack.c.bf16 %v334_v23, %v326_v22 }
  0xb4   :  { %852 = vmatprep.mubr.f32.mxu1 %v4037_v16  ;;  %v351_v28 = vld [vmem:[#allocation7 + $0x6c8] sm:$0xff]  ;;  %v353_v30 = vld [vmem:[#allocation7 + $0x6d8] sm:$0xff]  ;;  %v2766_v32 = vpack.c.bf16 %v336_v26, %v328_v24  ;;  %v342_v34 = vld [vmem:[#allocation7 + $0x680] sm:$0xff] }
  0xb5   :  { %2623 = vmatpush1.bf16.msra.mxu0 %v2622_v46  ;;  %v2640_v33 = vpack.c.bf16 %v351_v28, %v343_v27  ;;  %v350_v35 = vld [vmem:[#allocation7 + $0x6c0] sm:$0xff]  ;;  %v344_v36 = vld [vmem:[#allocation7 + $0x690] sm:$0xff]  ;;  %v2768_v37 = vpack.c.bf16 %v353_v30, %v345_v29  ;;  %v359_v39 = vld [vmem:[#allocation7 + $0x708] sm:$0xff] }
  0xb6   :  { %2751 = vmatpush1.bf16.msra.mxu1 %v2750_v47  ;;  %2625 = vmatprep.subr.bf16.mxu0 %v2624_v48  ;;  %v352_v38 = vld [vmem:[#allocation7 + $0x6d0] sm:$0xff]  ;;  %v367_v40 = vld [vmem:[#allocation7 + $0x748] sm:$0xff]  ;;  %v361_v41 = vld [vmem:[#allocation7 + $0x718] sm:$0xff]  ;;  %v2642_v43 = vpack.c.bf16 %v350_v35, %v342_v34 }
  0xb7   :  { %2753 = vmatprep.subr.bf16.mxu1 %v2752_v52  ;;  %v369_v42 = vld [vmem:[#allocation7 + $0x758] sm:$0xff]  ;;  %v2770_v44 = vpack.c.bf16 %v352_v38, %v344_v36  ;;  %v2644_v45 = vpack.c.bf16 %v367_v40, %v359_v39  ;;  %v358_v46 = vld [vmem:[#allocation7 + $0x700] sm:$0xff]  ;;  %v360_v48 = vld [vmem:[#allocation7 + $0x710] sm:$0xff] }
  0xb8   :  { %v366_v47 = vld [vmem:[#allocation7 + $0x740] sm:$0xff]  ;;  %v2772_v49 = vpack.c.bf16 %v369_v42, %v361_v41  ;;  %v368_v50 = vld [vmem:[#allocation7 + $0x750] sm:$0xff]  ;;  %v375_v51 = vld [vmem:[#allocation7 + $0x788] sm:$0xff] }
  0xb9   :  { %2627 = vmatpush1.bf16.msra.mxu0 %v2626_v58  ;;  %v383_v52 = vld [vmem:[#allocation7 + $0x7c8] sm:$0xff]  ;;  %v377_v53 = vld [vmem:[#allocation7 + $0x798] sm:$0xff]  ;;  %v2646_v55 = vpack.c.bf16 %v366_v47, %v358_v46  ;;  %v2774_v56 = vpack.c.bf16 %v368_v50, %v360_v48  ;;  %v374_v58 = vld [vmem:[#allocation7 + $0x780] sm:$0xff] }
  0xba   :  { %2755 = vmatpush1.bf16.msra.mxu1 %v2754_v59  ;;  %2629 = vmatprep.subr.bf16.mxu0 %v2628_v60  ;;  %v385_v54 = vld [vmem:[#allocation7 + $0x7d8] sm:$0xff]  ;;  %v2648_v57 = vpack.c.bf16 %v383_v52, %v375_v51  ;;  %v382_v59 = vld [vmem:[#allocation7 + $0x7c0] sm:$0xff]  ;;  %v376_v60 = vld [vmem:[#allocation7 + $0x790] sm:$0xff] }
  0xbb   :  { %2757 = vmatprep.subr.bf16.mxu1 %v2756_v0  ;;  %v2776_v61 = vpack.c.bf16 %v385_v54, %v377_v53  ;;  %v384_v62 = vld [vmem:[#allocation7 + $0x7d0] sm:$0xff]  ;;  %v391_v63 = vld [vmem:[#allocation7 + $0x808] sm:$0xff]  ;;  %v393_v1 = vld [vmem:[#allocation7 + $0x818] sm:$0xff]  ;;  %v2650_v3 = vpack.c.bf16 %v382_v59, %v374_v58 }
  0xbc   :  { %v399_v0 = vld [vmem:[#allocation7 + $0x848] sm:$0xff]  ;;  %v401_v2 = vld [vmem:[#allocation7 + $0x858] sm:$0xff]  ;;  %v2778_v4 = vpack.c.bf16 %v384_v62, %v376_v60  ;;  %v398_v7 = vld [vmem:[#allocation7 + $0x840] sm:$0xff] }
  0xbd   :  { %2631 = vmatpush1.bf16.msra.mxu0 %v2630_v6  ;;  %v2652_v5 = vpack.c.bf16 %v399_v0, %v391_v63  ;;  %v390_v6 = vld [vmem:[#allocation7 + $0x800] sm:$0xff]  ;;  %v400_v10 = vld [vmem:[#allocation7 + $0x850] sm:$0xff]  ;;  %v407_v11 = vld [vmem:[#allocation7 + $0x888] sm:$0xff] }
  0xbe   :  { %2759 = vmatpush1.bf16.msra.mxu1 %v2758_v8  ;;  %2633 = vmatprep.subr.bf16.mxu0 %v2632_v9  ;;  %v392_v8 = vld [vmem:[#allocation7 + $0x810] sm:$0xff]  ;;  %v2780_v9 = vpack.c.bf16 %v401_v2, %v393_v1  ;;  %v415_v12 = vld [vmem:[#allocation7 + $0x8c8] sm:$0xff]  ;;  %v417_v14 = vld [vmem:[#allocation7 + $0x8d8] sm:$0xff]  ;;  %v2654_v17 = vpack.c.bf16 %v398_v7, %v390_v6 }
  0xbf   :  { %2761 = vmatprep.subr.bf16.mxu1 %v2760_v13  ;;  %v409_v13 = vld [vmem:[#allocation7 + $0x898] sm:$0xff]  ;;  %v129_v15 = vld [vmem:[#allocation5] sm:$0xff]  ;;  %v2782_v18 = vpack.c.bf16 %v400_v10, %v392_v8  ;;  %v408_v22 = vld [vmem:[#allocation7 + $0x890] sm:$0xff] }
  0xc0   :  { %v2784_v23 = vpack.c.bf16 %v417_v14, %v409_v13  ;;  %v416_v24 = vld [vmem:[#allocation7 + $0x8d0] sm:$0xff]  ;;  %v431_v26 = vld [vmem:[#allocation7 + $0x948] sm:$0xff]  ;;  %v425_v27 = vld [vmem:[#allocation7 + $0x918] sm:$0xff] }
  0xc1   :  { %2635 = vmatpush1.bf16.msra.mxu0 %v2634_v19  ;;  %v2656_v19 = vpack.c.bf16 %v415_v12, %v407_v11  ;;  %v433_v28 = vld [vmem:[#allocation7 + $0x958] sm:$0xff]  ;;  %v2786_v30 = vpack.c.bf16 %v416_v24, %v408_v22  ;;  %v424_v34 = vld [vmem:[#allocation7 + $0x910] sm:$0xff]  ;;  %v447_v38 = vld [vmem:[#allocation7 + $0x9c8] sm:$0xff] }
  0xc2   :  { %2763 = vmatpush1.bf16.msra.mxu1 %v2762_v20  ;;  %2637 = vmatprep.subr.bf16.mxu0 %v2636_v21  ;;  %v406_v20 = vld [vmem:[#allocation7 + $0x880] sm:$0xff]  ;;  %v2788_v35 = vpack.c.bf16 %v433_v28, %v425_v27  ;;  %v432_v36 = vld [vmem:[#allocation7 + $0x950] sm:$0xff]  ;;  %v441_v39 = vld [vmem:[#allocation7 + $0x998] sm:$0xff] }
  0xc3   :  { %2765 = vmatprep.subr.bf16.mxu1 %v2764_v25  ;;  %v414_v21 = vld [vmem:[#allocation7 + $0x8c0] sm:$0xff]  ;;  %v423_v25 = vld [vmem:[#allocation7 + $0x908] sm:$0xff]  ;;  %v449_v40 = vld [vmem:[#allocation7 + $0x9d8] sm:$0xff]  ;;  %v2790_v42 = vpack.c.bf16 %v432_v36, %v424_v34 }
  0xc4   :  { %v2658_v29 = vpack.c.bf16 %v414_v21, %v406_v20  ;;  %v440_v46 = vld [vmem:[#allocation7 + $0x990] sm:$0xff]  ;;  %v2792_v47 = vpack.c.bf16 %v449_v40, %v441_v39  ;;  %v463_v50 = vld [vmem:[#allocation7 + $0xa48] sm:$0xff]  ;;  %v457_v51 = vld [vmem:[#allocation7 + $0xa18] sm:$0xff] }
  0xc5   :  { %2639 = vmatpush1.bf16.msra.mxu0 %v2638_v31  ;;  %v2660_v31 = vpack.c.bf16 %v431_v26, %v423_v25  ;;  %v448_v48 = vld [vmem:[#allocation7 + $0x9d0] sm:$0xff]  ;;  %v465_v52 = vld [vmem:[#allocation7 + $0xa58] sm:$0xff]  ;;  %v479_v62 = vld [vmem:[#allocation7 + $0xac8] sm:$0xff] }
  0xc6   :  { %2767 = vmatpush1.bf16.msra.mxu1 %v2766_v32  ;;  %2641 = vmatprep.subr.bf16.mxu0 %v2640_v33  ;;  %v422_v32 = vld [vmem:[#allocation7 + $0x900] sm:$0xff]  ;;  %v2794_v54 = vpack.c.bf16 %v448_v48, %v440_v46  ;;  %v456_v58 = vld [vmem:[#allocation7 + $0xa10] sm:$0xff]  ;;  %v2796_v59 = vpack.c.bf16 %v465_v52, %v457_v51  ;;  %v473_v63 = vld [vmem:[#allocation7 + $0xa98] sm:$0xff] }
  0xc7   :  { %2769 = vmatprep.subr.bf16.mxu1 %v2768_v37  ;;  %v430_v33 = vld [vmem:[#allocation7 + $0x940] sm:$0xff]  ;;  %v439_v37 = vld [vmem:[#allocation7 + $0x988] sm:$0xff]  ;;  %v464_v60 = vld [vmem:[#allocation7 + $0xa50] sm:$0xff] }
  0xc8   :  { %v2662_v41 = vpack.c.bf16 %v430_v33, %v422_v32  ;;  %v481_v0 = vld [vmem:[#allocation7 + $0xad8] sm:$0xff]  ;;  %v2798_v2 = vpack.c.bf16 %v464_v60, %v456_v58  ;;  %v472_v6 = vld [vmem:[#allocation7 + $0xa90] sm:$0xff]  ;;  %v495_v10 = vld [vmem:[#allocation7 + $0xb48] sm:$0xff] }
  0xc9   :  { %2643 = vmatpush1.bf16.msra.mxu0 %v2642_v43  ;;  %v2664_v43 = vpack.c.bf16 %v447_v38, %v439_v37  ;;  %v2800_v7 = vpack.c.bf16 %v481_v0, %v473_v63  ;;  %v480_v8 = vld [vmem:[#allocation7 + $0xad0] sm:$0xff]  ;;  %v489_v11 = vld [vmem:[#allocation7 + $0xb18] sm:$0xff]  ;;  %v486_v14 = vld [vmem:[#allocation7 + $0xb00] sm:$0xff] }
  0xca   :  { %2771 = vmatpush1.bf16.msra.mxu1 %v2770_v44  ;;  %2645 = vmatprep.subr.bf16.mxu0 %v2644_v45  ;;  %v438_v44 = vld [vmem:[#allocation7 + $0x980] sm:$0xff]  ;;  %v497_v12 = vld [vmem:[#allocation7 + $0xb58] sm:$0xff]  ;;  %v496_v20 = vld [vmem:[#allocation7 + $0xb50] sm:$0xff] }
  0xcb   :  { %2773 = vmatprep.subr.bf16.mxu1 %v2772_v49  ;;  %v446_v45 = vld [vmem:[#allocation7 + $0x9c0] sm:$0xff]  ;;  %v455_v49 = vld [vmem:[#allocation7 + $0xa08] sm:$0xff]  ;;  %v2804_v21 = vpack.c.bf16 %v497_v12, %v489_v11  ;;  %v4041_v24 = vld [vmem:[#allocation5 + $0x18] sm:$0xff] }
  0xcc   :  { %v2666_v53 = vpack.c.bf16 %v446_v45, %v438_v44  ;;  %v503_v22 = vld [vmem:[#allocation7 + $0xb88] sm:$0xff]  ;;  %v505_v25 = vld [vmem:[#allocation7 + $0xb98] sm:$0xff]  ;;  %v504_v32 = vld [vmem:[#allocation7 + $0xb90] sm:$0xff] }
  0xcd   :  { %2647 = vmatpush1.bf16.msra.mxu0 %v2646_v55  ;;  %v2668_v55 = vpack.c.bf16 %v463_v50, %v455_v49  ;;  %v513_v26 = vld [vmem:[#allocation7 + $0xbd8] sm:$0xff]  ;;  %v512_v34 = vld [vmem:[#allocation7 + $0xbd0] sm:$0xff]  ;;  %v527_v36 = vld [vmem:[#allocation7 + $0xc48] sm:$0xff] }
  0xce   :  { %2775 = vmatpush1.bf16.msra.mxu1 %v2774_v56  ;;  %2649 = vmatprep.subr.bf16.mxu0 %v2648_v57  ;;  %v454_v56 = vld [vmem:[#allocation7 + $0xa00] sm:$0xff]  ;;  %v2808_v33 = vpack.c.bf16 %v513_v26, %v505_v25  ;;  %v521_v37 = vld [vmem:[#allocation7 + $0xc18] sm:$0xff]  ;;  %v2810_v40 = vpack.c.bf16 %v512_v34, %v504_v32  ;;  %v520_v44 = vld [vmem:[#allocation7 + $0xc10] sm:$0xff] }
  0xcf   :  { %2777 = vmatprep.subr.bf16.mxu1 %v2776_v61  ;;  %v462_v57 = vld [vmem:[#allocation7 + $0xa40] sm:$0xff]  ;;  %v471_v61 = vld [vmem:[#allocation7 + $0xa88] sm:$0xff]  ;;  %v529_v38 = vld [vmem:[#allocation7 + $0xc58] sm:$0xff] }
  0xd0   :  { %v2670_v1 = vpack.c.bf16 %v462_v57, %v454_v56  ;;  %v2812_v45 = vpack.c.bf16 %v529_v38, %v521_v37  ;;  %v528_v46 = vld [vmem:[#allocation7 + $0xc50] sm:$0xff]  ;;  %v543_v48 = vld [vmem:[#allocation7 + $0xcc8] sm:$0xff]  ;;  %v537_v49 = vld [vmem:[#allocation7 + $0xc98] sm:$0xff] }
  0xd1   :  { %2651 = vmatpush1.bf16.msra.mxu0 %v2650_v3  ;;  %v2672_v3 = vpack.c.bf16 %v479_v62, %v471_v61  ;;  %v545_v50 = vld [vmem:[#allocation7 + $0xcd8] sm:$0xff]  ;;  %v2814_v52 = vpack.c.bf16 %v528_v46, %v520_v44  ;;  %v536_v56 = vld [vmem:[#allocation7 + $0xc90] sm:$0xff]  ;;  %v559_v60 = vld [vmem:[#allocation7 + $0xd48] sm:$0xff] }
  0xd2   :  { %2779 = vmatpush1.bf16.msra.mxu1 %v2778_v4  ;;  %2653 = vmatprep.subr.bf16.mxu0 %v2652_v5  ;;  %v470_v4 = vld [vmem:[#allocation7 + $0xa80] sm:$0xff]  ;;  %v2816_v57 = vpack.c.bf16 %v545_v50, %v537_v49  ;;  %v544_v58 = vld [vmem:[#allocation7 + $0xcd0] sm:$0xff]  ;;  %v553_v61 = vld [vmem:[#allocation7 + $0xd18] sm:$0xff] }
  0xd3   :  { %2781 = vmatprep.subr.bf16.mxu1 %v2780_v9  ;;  %v478_v5 = vld [vmem:[#allocation7 + $0xac0] sm:$0xff]  ;;  %v487_v9 = vld [vmem:[#allocation7 + $0xb08] sm:$0xff]  ;;  %v561_v62 = vld [vmem:[#allocation7 + $0xd58] sm:$0xff]  ;;  %v2818_v0 = vpack.c.bf16 %v544_v58, %v536_v56 }
  0xd4   :  { %711 = vmatmul.mubr.f32.vlgmr.msra.gmra.mrb[0].mxu0 %v129_v15  ;;  %v2674_v13 = vpack.c.bf16 %v478_v5, %v470_v4  ;;  %v552_v4 = vld [vmem:[#allocation7 + $0xd10] sm:$0xff]  ;;  %v2820_v5 = vpack.c.bf16 %v561_v62, %v553_v61  ;;  %v607_v34 = vld [vmem:[#allocation7 + $0xec8] sm:$0xff] }
  0xd5   :  { %2655 = vmatpush1.bf16.msra.mxu0 %v2654_v17  ;;  %853 = vmatmul.mubr.f32.vlgmr.msra.gmra.mrb[0].mxu1 %v129_v15  ;;  %v2802_v15 = vpack.c.bf16 %v480_v8, %v472_v6  ;;  %v2676_v17 = vpack.c.bf16 %v495_v10, %v487_v9  ;;  %v560_v6 = vld [vmem:[#allocation7 + $0xd50] sm:$0xff]  ;;  %v575_v8 = vld [vmem:[#allocation7 + $0xdc8] sm:$0xff]  ;;  %v569_v9 = vld [vmem:[#allocation7 + $0xd98] sm:$0xff] }
  0xd6   :  { %2783 = vmatpush1.bf16.msra.mxu1 %v2782_v18  ;;  %2657 = vmatprep.subr.bf16.mxu0 %v2656_v19  ;;  %v494_v18 = vld [vmem:[#allocation7 + $0xb40] sm:$0xff]  ;;  %v488_v19 = vld [vmem:[#allocation7 + $0xb10] sm:$0xff]  ;;  %v577_v10 = vld [vmem:[#allocation7 + $0xdd8] sm:$0xff]  ;;  %v2822_v12 = vpack.c.bf16 %v560_v6, %v552_v4 }
  0xd7   :  { %2785 = vmatprep.subr.bf16.mxu1 %v2784_v23  ;;  %v511_v23 = vld [vmem:[#allocation7 + $0xbc8] sm:$0xff]  ;;  %781 = vmatprep.mubr.f32.mxu0 %v4041_v24  ;;  %v2678_v27 = vpack.c.bf16 %v494_v18, %v486_v14  ;;  %v2806_v28 = vpack.c.bf16 %v496_v20, %v488_v19  ;;  %v566_v14 = vld [vmem:[#allocation7 + $0xd80] sm:$0xff]  ;;  %v2824_v18 = vpack.c.bf16 %v577_v10, %v569_v9  ;;  %v576_v19 = vld [vmem:[#allocation7 + $0xdd0] sm:$0xff] }
  0xd8   :  { %923 = vmatprep.mubr.f32.mxu1 %v4041_v24  ;;  %v583_v20 = vld [vmem:[#allocation7 + $0xe08] sm:$0xff]  ;;  %v592_v32 = vld [vmem:[#allocation7 + $0xe50] sm:$0xff] }
  0xd9   :  { %2659 = vmatpush1.bf16.msra.mxu0 %v2658_v29  ;;  %v2680_v29 = vpack.c.bf16 %v511_v23, %v503_v22  ;;  %v585_v22 = vld [vmem:[#allocation7 + $0xe18] sm:$0xff]  ;;  %v608_v44 = vld [vmem:[#allocation7 + $0xed0] sm:$0xff]  ;;  %v623_v46 = vld [vmem:[#allocation7 + $0xf48] sm:$0xff] }
  0xda   :  { %2787 = vmatpush1.bf16.msra.mxu1 %v2786_v30  ;;  %2661 = vmatprep.subr.bf16.mxu0 %v2660_v31  ;;  %v502_v30 = vld [vmem:[#allocation7 + $0xb80] sm:$0xff]  ;;  %v593_v23 = vld [vmem:[#allocation7 + $0xe58] sm:$0xff]  ;;  %v624_v56 = vld [vmem:[#allocation7 + $0xf50] sm:$0xff] }
  0xdb   :  { %2789 = vmatprep.subr.bf16.mxu1 %v2788_v35  ;;  %v510_v31 = vld [vmem:[#allocation7 + $0xbc0] sm:$0xff]  ;;  %v519_v35 = vld [vmem:[#allocation7 + $0xc08] sm:$0xff]  ;;  %v640_v4 = vld [vmem:[#allocation7 + $0xfd0] sm:$0xff] }
  0xdc   :  { %v2682_v39 = vpack.c.bf16 %v510_v31, %v502_v30  ;;  %v584_v30 = vld [vmem:[#allocation7 + $0xe10] sm:$0xff]  ;;  %v2828_v31 = vpack.c.bf16 %v593_v23, %v585_v22  ;;  %v639_v58 = vld [vmem:[#allocation7 + $0xfc8] sm:$0xff] }
  0xdd   :  { %2663 = vmatpush1.bf16.msra.mxu0 %v2662_v41  ;;  %v2684_v41 = vpack.c.bf16 %v527_v36, %v519_v35  ;;  %v601_v35 = vld [vmem:[#allocation7 + $0xe98] sm:$0xff]  ;;  %v2830_v38 = vpack.c.bf16 %v592_v32, %v584_v30  ;;  %v147_v6 = vld [vmem:[#allocation7 + $0x68] sm:$0xff]  ;;  %v131_v22 = vld [vmem:[#allocation5 + $0x10] sm:$0xff] }
  0xde   :  { %2791 = vmatpush1.bf16.msra.mxu1 %v2790_v42  ;;  %2665 = vmatprep.subr.bf16.mxu0 %v2664_v43  ;;  %v518_v42 = vld [vmem:[#allocation7 + $0xc00] sm:$0xff]  ;;  %v609_v36 = vld [vmem:[#allocation7 + $0xed8] sm:$0xff]  ;;  %v171_v32 = vld [vmem:[#allocation7 + $0x128] sm:$0xff] }
  0xdf   :  { %2793 = vmatprep.subr.bf16.mxu1 %v2792_v47  ;;  %v526_v43 = vld [vmem:[#allocation7 + $0xc40] sm:$0xff]  ;;  %v535_v47 = vld [vmem:[#allocation7 + $0xc88] sm:$0xff] }
  0xe0   :  { %v2686_v51 = vpack.c.bf16 %v526_v43, %v518_v42  ;;  %v600_v42 = vld [vmem:[#allocation7 + $0xe90] sm:$0xff]  ;;  %v2832_v43 = vpack.c.bf16 %v609_v36, %v601_v35  ;;  %v181_v35 = vld [vmem:[#allocation7 + $0x178] sm:$0xff] }
  0xe1   :  { %2667 = vmatpush1.bf16.msra.mxu0 %v2666_v53  ;;  %v2688_v53 = vpack.c.bf16 %v543_v48, %v535_v47  ;;  %v617_v47 = vld [vmem:[#allocation7 + $0xf18] sm:$0xff]  ;;  %v2834_v50 = vpack.c.bf16 %v608_v44, %v600_v42  ;;  %v187_v44 = vld [vmem:[#allocation7 + $0x1a8] sm:$0xff] }
  0xe2   :  { %2795 = vmatpush1.bf16.msra.mxu1 %v2794_v54  ;;  %2669 = vmatprep.subr.bf16.mxu0 %v2668_v55  ;;  %v534_v54 = vld [vmem:[#allocation7 + $0xc80] sm:$0xff]  ;;  %v625_v48 = vld [vmem:[#allocation7 + $0xf58] sm:$0xff] }
  0xe3   :  { %2797 = vmatprep.subr.bf16.mxu1 %v2796_v59  ;;  %v542_v55 = vld [vmem:[#allocation7 + $0xcc0] sm:$0xff]  ;;  %v551_v59 = vld [vmem:[#allocation7 + $0xd08] sm:$0xff] }
  0xe4   :  { %v2690_v63 = vpack.c.bf16 %v542_v55, %v534_v54  ;;  %v616_v54 = vld [vmem:[#allocation7 + $0xf10] sm:$0xff]  ;;  %v2836_v55 = vpack.c.bf16 %v625_v48, %v617_v47  ;;  %v197_v47 = vld [vmem:[#allocation7 + $0x1f8] sm:$0xff] }
  0xe5   :  { %2671 = vmatpush1.bf16.msra.mxu0 %v2670_v1  ;;  %v2692_v1 = vpack.c.bf16 %v559_v60, %v551_v59  ;;  %v633_v59 = vld [vmem:[#allocation7 + $0xf98] sm:$0xff]  ;;  %v2838_v62 = vpack.c.bf16 %v624_v56, %v616_v54  ;;  %v203_v56 = vld [vmem:[#allocation7 + $0x228] sm:$0xff] }
  0xe6   :  { %2799 = vmatpush1.bf16.msra.mxu1 %v2798_v2  ;;  %2673 = vmatprep.subr.bf16.mxu0 %v2672_v3  ;;  %v550_v2 = vld [vmem:[#allocation7 + $0xd00] sm:$0xff]  ;;  %v641_v60 = vld [vmem:[#allocation7 + $0xfd8] sm:$0xff] }
  0xe7   :  { %2801 = vmatprep.subr.bf16.mxu1 %v2800_v7  ;;  %v558_v3 = vld [vmem:[#allocation7 + $0xd40] sm:$0xff]  ;;  %v567_v7 = vld [vmem:[#allocation7 + $0xd88] sm:$0xff] }
  0xe8   :  { %v2694_v11 = vpack.c.bf16 %v558_v3, %v550_v2  ;;  %v632_v2 = vld [vmem:[#allocation7 + $0xf90] sm:$0xff]  ;;  %v2840_v3 = vpack.c.bf16 %v641_v60, %v633_v59  ;;  %v213_v59 = vld [vmem:[#allocation7 + $0x278] sm:$0xff] }
  0xe9   :  { %2675 = vmatpush1.bf16.msra.mxu0 %v2674_v13  ;;  %v2696_v13 = vpack.c.bf16 %v575_v8, %v567_v7  ;;  %v141_v7 = vld [vmem:[#allocation7 + $0x38] sm:$0xff]  ;;  %v2842_v10 = vpack.c.bf16 %v640_v4, %v632_v2  ;;  %v212_v2 = vld [vmem:[#allocation7 + $0x270] sm:$0xff]  ;;  %v227_v4 = vld [vmem:[#allocation7 + $0x2e8] sm:$0xff] }
  0xea   :  { %2803 = vmatpush1.bf16.msra.mxu1 %v2802_v15  ;;  %2677 = vmatprep.subr.bf16.mxu0 %v2676_v17  ;;  %v574_v15 = vld [vmem:[#allocation7 + $0xdc0] sm:$0xff]  ;;  %v568_v17 = vld [vmem:[#allocation7 + $0xd90] sm:$0xff]  ;;  %v149_v8 = vld [vmem:[#allocation7 + $0x78] sm:$0xff] }
  0xeb   :  { %2805 = vmatprep.subr.bf16.mxu1 %v2804_v21  ;;  %v591_v21 = vld [vmem:[#allocation7 + $0xe48] sm:$0xff]  ;;  %v2698_v25 = vpack.c.bf16 %v574_v15, %v566_v14  ;;  %v2826_v26 = vpack.c.bf16 %v576_v19, %v568_v17  ;;  %v140_v14 = vld [vmem:[#allocation7 + $0x30] sm:$0xff]  ;;  %v2972_v15 = vpack.c.bf16 %v149_v8, %v141_v7 }
  0xec   :  { %v148_v17 = vld [vmem:[#allocation7 + $0x70] sm:$0xff]  ;;  %v163_v19 = vld [vmem:[#allocation7 + $0xe8] sm:$0xff] }
  0xed   :  { %2679 = vmatpush1.bf16.msra.mxu0 %v2678_v27  ;;  %v2700_v27 = vpack.c.bf16 %v591_v21, %v583_v20  ;;  %v157_v20 = vld [vmem:[#allocation7 + $0xb8] sm:$0xff] }
  0xee   :  { %2807 = vmatpush1.bf16.msra.mxu1 %v2806_v28  ;;  %2681 = vmatprep.subr.bf16.mxu0 %v2680_v29  ;;  %v582_v28 = vld [vmem:[#allocation7 + $0xe00] sm:$0xff]  ;;  %v165_v21 = vld [vmem:[#allocation7 + $0xf8] sm:$0xff] }
  0xef   :  { %2809 = vmatprep.subr.bf16.mxu1 %v2808_v33  ;;  %v590_v29 = vld [vmem:[#allocation7 + $0xe40] sm:$0xff]  ;;  %v599_v33 = vld [vmem:[#allocation7 + $0xe88] sm:$0xff]  ;;  %v2976_v30 = vpack.c.bf16 %v165_v21, %v157_v20 }
  0xf0   :  { %v2702_v37 = vpack.c.bf16 %v590_v29, %v582_v28  ;;  %v162_v28 = vld [vmem:[#allocation7 + $0xe0] sm:$0xff]  ;;  %v156_v29 = vld [vmem:[#allocation7 + $0xb0] sm:$0xff] }
  0xf1   :  { %2683 = vmatpush1.bf16.msra.mxu0 %v2682_v39  ;;  %v2704_v39 = vpack.c.bf16 %v607_v34, %v599_v33  ;;  %v179_v33 = vld [vmem:[#allocation7 + $0x168] sm:$0xff]  ;;  %v173_v34 = vld [vmem:[#allocation7 + $0x138] sm:$0xff] }
  0xf2   :  { %2811 = vmatpush1.bf16.msra.mxu1 %v2810_v40  ;;  %2685 = vmatprep.subr.bf16.mxu0 %v2684_v41  ;;  %v598_v40 = vld [vmem:[#allocation7 + $0xe80] sm:$0xff]  ;;  %v2980_v42 = vpack.c.bf16 %v181_v35, %v173_v34 }
  0xf3   :  { %2813 = vmatprep.subr.bf16.mxu1 %v2812_v45  ;;  %v606_v41 = vld [vmem:[#allocation7 + $0xec0] sm:$0xff]  ;;  %v615_v45 = vld [vmem:[#allocation7 + $0xf08] sm:$0xff] }
  0xf4   :  { %v2706_v49 = vpack.c.bf16 %v606_v41, %v598_v40  ;;  %v178_v40 = vld [vmem:[#allocation7 + $0x160] sm:$0xff]  ;;  %v172_v41 = vld [vmem:[#allocation7 + $0x130] sm:$0xff] }
  0xf5   :  { %2687 = vmatpush1.bf16.msra.mxu0 %v2686_v51  ;;  %v2708_v51 = vpack.c.bf16 %v623_v46, %v615_v45  ;;  %v195_v45 = vld [vmem:[#allocation7 + $0x1e8] sm:$0xff]  ;;  %v189_v46 = vld [vmem:[#allocation7 + $0x1b8] sm:$0xff] }
  0xf6   :  { %2815 = vmatpush1.bf16.msra.mxu1 %v2814_v52  ;;  %2689 = vmatprep.subr.bf16.mxu0 %v2688_v53  ;;  %v614_v52 = vld [vmem:[#allocation7 + $0xf00] sm:$0xff]  ;;  %v2984_v54 = vpack.c.bf16 %v197_v47, %v189_v46 }
  0xf7   :  { %2817 = vmatprep.subr.bf16.mxu1 %v2816_v57  ;;  %v622_v53 = vld [vmem:[#allocation7 + $0xf40] sm:$0xff]  ;;  %v631_v57 = vld [vmem:[#allocation7 + $0xf88] sm:$0xff] }
  0xf8   :  { %v2710_v61 = vpack.c.bf16 %v622_v53, %v614_v52  ;;  %v194_v52 = vld [vmem:[#allocation7 + $0x1e0] sm:$0xff]  ;;  %v188_v53 = vld [vmem:[#allocation7 + $0x1b0] sm:$0xff] }
  0xf9   :  { %2691 = vmatpush1.bf16.msra.mxu0 %v2690_v63  ;;  %v2712_v63 = vpack.c.bf16 %v639_v58, %v631_v57  ;;  %v211_v57 = vld [vmem:[#allocation7 + $0x268] sm:$0xff]  ;;  %v205_v58 = vld [vmem:[#allocation7 + $0x238] sm:$0xff] }
  0xfa   :  { %2819 = vmatpush1.bf16.msra.mxu1 %v2818_v0  ;;  %2693 = vmatprep.subr.bf16.mxu0 %v2692_v1  ;;  %v630_v0 = vld [vmem:[#allocation7 + $0xf80] sm:$0xff] }
  0xfb   :  { %2821 = vmatprep.subr.bf16.mxu1 %v2820_v5  ;;  %v638_v1 = vld [vmem:[#allocation7 + $0xfc0] sm:$0xff]  ;;  %v139_v5 = vld [vmem:[#allocation7 + $0x28] sm:$0xff] }
  0xfc   :  { %v2714_v9 = vpack.c.bf16 %v638_v1, %v630_v0  ;;  %v204_v0 = vld [vmem:[#allocation7 + $0x230] sm:$0xff]  ;;  %v2988_v1 = vpack.c.bf16 %v213_v59, %v205_v58 }
  0xfd   :  { %2695 = vmatpush1.bf16.msra.mxu0 %v2694_v11  ;;  %v2844_v11 = vpack.c.bf16 %v147_v6, %v139_v5  ;;  %v221_v5 = vld [vmem:[#allocation7 + $0x2b8] sm:$0xff]  ;;  %v2990_v8 = vpack.c.bf16 %v212_v2, %v204_v0  ;;  %v299_v0 = vld [vmem:[#allocation7 + $0x528] sm:$0xff] }
  0xfe   :  { %2823 = vmatpush1.bf16.msra.mxu1 %v2822_v12  ;;  %2697 = vmatprep.subr.bf16.mxu0 %v2696_v13  ;;  %v138_v12 = vld [vmem:[#allocation7 + $0x20] sm:$0xff]  ;;  %v229_v6 = vld [vmem:[#allocation7 + $0x2f8] sm:$0xff] }
  0xff   :  { %2825 = vmatprep.subr.bf16.mxu1 %v2824_v18  ;;  %v146_v13 = vld [vmem:[#allocation7 + $0x60] sm:$0xff]  ;;  %v155_v18 = vld [vmem:[#allocation7 + $0xa8] sm:$0xff]  ;;  %v301_v2 = vld [vmem:[#allocation7 + $0x538] sm:$0xff] }
 0x100   :  { %v2846_v23 = vpack.c.bf16 %v146_v13, %v138_v12  ;;  %v220_v12 = vld [vmem:[#allocation7 + $0x2b0] sm:$0xff]  ;;  %v2992_v13 = vpack.c.bf16 %v229_v6, %v221_v5 }
 0x101   :  { %2699 = vmatpush1.bf16.msra.mxu0 %v2698_v25  ;;  %v2974_v25 = vpack.c.bf16 %v148_v17, %v140_v14  ;;  %v228_v14 = vld [vmem:[#allocation7 + $0x2f0] sm:$0xff]  ;;  %v243_v17 = vld [vmem:[#allocation7 + $0x368] sm:$0xff] }
 0x102   :  { %2827 = vmatpush1.bf16.msra.mxu1 %v2826_v26  ;;  %2701 = vmatprep.subr.bf16.mxu0 %v2700_v27  ;;  %v2848_v26 = vpack.c.bf16 %v163_v19, %v155_v18  ;;  %v154_v27 = vld [vmem:[#allocation7 + $0xa0] sm:$0xff]  ;;  %v237_v18 = vld [vmem:[#allocation7 + $0x338] sm:$0xff]  ;;  %v2994_v21 = vpack.c.bf16 %v228_v14, %v220_v12  ;;  %v315_v12 = vld [vmem:[#allocation7 + $0x5a8] sm:$0xff] }
 0x103   :  { %2829 = vmatprep.subr.bf16.mxu1 %v2828_v31  ;;  %v164_v31 = vld [vmem:[#allocation7 + $0xf0] sm:$0xff]  ;;  %v2850_v36 = vpack.c.bf16 %v162_v28, %v154_v27  ;;  %v245_v19 = vld [vmem:[#allocation7 + $0x378] sm:$0xff] }
 0x104   :  { %v2996_v27 = vpack.c.bf16 %v245_v19, %v237_v18  ;;  %v244_v28 = vld [vmem:[#allocation7 + $0x370] sm:$0xff]  ;;  %v317_v14 = vld [vmem:[#allocation7 + $0x5b8] sm:$0xff] }
 0x105   :  { %2703 = vmatpush1.bf16.msra.mxu0 %v2702_v37  ;;  %v2978_v37 = vpack.c.bf16 %v164_v31, %v156_v29  ;;  %v251_v29 = vld [vmem:[#allocation7 + $0x3a8] sm:$0xff]  ;;  %v253_v31 = vld [vmem:[#allocation7 + $0x3b8] sm:$0xff] }
 0x106   :  { %2831 = vmatpush1.bf16.msra.mxu1 %v2830_v38  ;;  %2705 = vmatprep.subr.bf16.mxu0 %v2704_v39  ;;  %v2852_v38 = vpack.c.bf16 %v179_v33, %v171_v32  ;;  %v170_v39 = vld [vmem:[#allocation7 + $0x120] sm:$0xff]  ;;  %v261_v32 = vld [vmem:[#allocation7 + $0x3f8] sm:$0xff] }
 0x107   :  { %2833 = vmatprep.subr.bf16.mxu1 %v2832_v43  ;;  %v180_v43 = vld [vmem:[#allocation7 + $0x170] sm:$0xff]  ;;  %v2854_v48 = vpack.c.bf16 %v178_v40, %v170_v39  ;;  %v3000_v39 = vpack.c.bf16 %v261_v32, %v253_v31 }
 0x108   :  { %v260_v40 = vld [vmem:[#allocation7 + $0x3f0] sm:$0xff] }
 0x109   :  { %2707 = vmatpush1.bf16.msra.mxu0 %v2706_v49  ;;  %v2982_v49 = vpack.c.bf16 %v180_v43, %v172_v41  ;;  %v267_v41 = vld [vmem:[#allocation7 + $0x428] sm:$0xff]  ;;  %v269_v43 = vld [vmem:[#allocation7 + $0x438] sm:$0xff] }
 0x10a   :  { %2835 = vmatpush1.bf16.msra.mxu1 %v2834_v50  ;;  %2709 = vmatprep.subr.bf16.mxu0 %v2708_v51  ;;  %v2856_v50 = vpack.c.bf16 %v195_v45, %v187_v44  ;;  %v186_v51 = vld [vmem:[#allocation7 + $0x1a0] sm:$0xff]  ;;  %v277_v44 = vld [vmem:[#allocation7 + $0x478] sm:$0xff] }
 0x10b   :  { %2837 = vmatprep.subr.bf16.mxu1 %v2836_v55  ;;  %v196_v55 = vld [vmem:[#allocation7 + $0x1f0] sm:$0xff]  ;;  %v2858_v60 = vpack.c.bf16 %v194_v52, %v186_v51  ;;  %v3004_v51 = vpack.c.bf16 %v277_v44, %v269_v43 }
 0x10c   :  { %v276_v52 = vld [vmem:[#allocation7 + $0x470] sm:$0xff] }
 0x10d   :  { %2711 = vmatpush1.bf16.msra.mxu0 %v2710_v61  ;;  %v2860_v61 = vpack.c.bf16 %v211_v57, %v203_v56  ;;  %v293_v56 = vld [vmem:[#allocation7 + $0x4f8] sm:$0xff] }
 0x10e   :  { %2839 = vmatpush1.bf16.msra.mxu1 %v2838_v62  ;;  %2713 = vmatprep.subr.bf16.mxu0 %v2712_v63  ;;  %v202_v62 = vld [vmem:[#allocation7 + $0x220] sm:$0xff] }
 0x10f   :  { %2841 = vmatprep.subr.bf16.mxu1 %v2840_v3  ;;  %v210_v63 = vld [vmem:[#allocation7 + $0x260] sm:$0xff]  ;;  %v219_v3 = vld [vmem:[#allocation7 + $0x2a8] sm:$0xff] }
 0x110   :  { %v2862_v7 = vpack.c.bf16 %v210_v63, %v202_v62  ;;  %v292_v63 = vld [vmem:[#allocation7 + $0x4f0] sm:$0xff] }
 0x111   :  { %2715 = vmatpush1.bf16.msra.mxu0 %v2714_v9  ;;  %v2864_v9 = vpack.c.bf16 %v227_v4, %v219_v3  ;;  %v309_v3 = vld [vmem:[#allocation7 + $0x578] sm:$0xff] }
 0x112   :  { %2843 = vmatpush1.bf16.msra.mxu1 %v2842_v10  ;;  %2845 = vmatprep.subr.bf16.mxu0 %v2844_v11  ;;  %v218_v10 = vld [vmem:[#allocation7 + $0x2a0] sm:$0xff] }
 0x113   :  { %2973 = vmatprep.subr.bf16.mxu1 %v2972_v15  ;;  %v226_v11 = vld [vmem:[#allocation7 + $0x2e0] sm:$0xff]  ;;  %v235_v15 = vld [vmem:[#allocation7 + $0x328] sm:$0xff] }
 0x114   :  { %782 = vmatmul.mubr.f32.vlgmr.msra.gmra.mrb[0].mxu0 %v131_v22  ;;  %v2866_v20 = vpack.c.bf16 %v226_v11, %v218_v10  ;;  %v3012_v10 = vpack.c.bf16 %v309_v3, %v301_v2  ;;  %v308_v11 = vld [vmem:[#allocation7 + $0x570] sm:$0xff] }
 0x115   :  { %924 = vmatmul.mubr.f32.vlgmr.msra.gmra.mrb[0].mxu1 %v131_v22  ;;  %2847 = vmatpush1.bf16.msra.mxu0 %v2846_v23  ;;  %v2868_v22 = vpack.c.bf16 %v243_v17, %v235_v15  ;;  %v234_v23 = vld [vmem:[#allocation7 + $0x320] sm:$0xff]  ;;  %v325_v15 = vld [vmem:[#allocation7 + $0x5f8] sm:$0xff] }
 0x116   :  { %2975 = vmatpush1.bf16.msra.mxu1 %v2974_v25  ;;  %2849 = vmatprep.subr.bf16.mxu0 %v2848_v26  ;;  %v242_v25 = vld [vmem:[#allocation7 + $0x360] sm:$0xff]  ;;  %v236_v26 = vld [vmem:[#allocation7 + $0x330] sm:$0xff] }
 0x117   :  { %2977 = vmatprep.subr.bf16.mxu1 %v2976_v30  ;;  %994 = vmatprep.mubr.f32.mxu0 %v4037_v16  ;;  %v259_v30 = vld [vmem:[#allocation7 + $0x3e8] sm:$0xff]  ;;  %v2870_v33 = vpack.c.bf16 %v242_v25, %v234_v23  ;;  %v2998_v34 = vpack.c.bf16 %v244_v28, %v236_v26  ;;  %v3016_v23 = vpack.c.bf16 %v325_v15, %v317_v14  ;;  %v324_v25 = vld [vmem:[#allocation7 + $0x5f0] sm:$0xff]  ;;  %v333_v28 = vld [vmem:[#allocation7 + $0x638] sm:$0xff] }
 0x118   :  { %1136 = vmatprep.mubr.f32.mxu1 %v4037_v16  ;;  %v2986_v16 = vpack.c.bf16 %v196_v55, %v188_v53  ;;  %v2872_v35 = vpack.c.bf16 %v259_v30, %v251_v29  ;;  %v283_v53 = vld [vmem:[#allocation7 + $0x4a8] sm:$0xff]  ;;  %v285_v55 = vld [vmem:[#allocation7 + $0x4b8] sm:$0xff] }
 0x119   :  { %2851 = vmatpush1.bf16.msra.mxu0 %v2850_v36  ;;  %v250_v36 = vld [vmem:[#allocation7 + $0x3a0] sm:$0xff]  ;;  %v3008_v62 = vpack.c.bf16 %v293_v56, %v285_v55  ;;  %v331_v26 = vld [vmem:[#allocation7 + $0x628] sm:$0xff]  ;;  %v341_v29 = vld [vmem:[#allocation7 + $0x678] sm:$0xff] }
 0x11a   :  { %2979 = vmatpush1.bf16.msra.mxu1 %v2978_v37  ;;  %2853 = vmatprep.subr.bf16.mxu0 %v2852_v38  ;;  %v258_v37 = vld [vmem:[#allocation7 + $0x3e0] sm:$0xff]  ;;  %v252_v38 = vld [vmem:[#allocation7 + $0x3b0] sm:$0xff] }
 0x11b   :  { %2981 = vmatprep.subr.bf16.mxu1 %v2980_v42  ;;  %v275_v42 = vld [vmem:[#allocation7 + $0x468] sm:$0xff]  ;;  %v2874_v45 = vpack.c.bf16 %v258_v37, %v250_v36  ;;  %v3002_v46 = vpack.c.bf16 %v260_v40, %v252_v38  ;;  %v3020_v36 = vpack.c.bf16 %v341_v29, %v333_v28  ;;  %v340_v37 = vld [vmem:[#allocation7 + $0x670] sm:$0xff]  ;;  %v349_v40 = vld [vmem:[#allocation7 + $0x6b8] sm:$0xff] }
 0x11c   :  { %v2876_v47 = vpack.c.bf16 %v275_v42, %v267_v41  ;;  %v347_v38 = vld [vmem:[#allocation7 + $0x6a8] sm:$0xff]  ;;  %v357_v41 = vld [vmem:[#allocation7 + $0x6f8] sm:$0xff] }
 0x11d   :  { %2855 = vmatpush1.bf16.msra.mxu0 %v2854_v48  ;;  %v266_v48 = vld [vmem:[#allocation7 + $0x420] sm:$0xff] }
 0x11e   :  { %2983 = vmatpush1.bf16.msra.mxu1 %v2982_v49  ;;  %2857 = vmatprep.subr.bf16.mxu0 %v2856_v50  ;;  %v274_v49 = vld [vmem:[#allocation7 + $0x460] sm:$0xff]  ;;  %v268_v50 = vld [vmem:[#allocation7 + $0x430] sm:$0xff] }
 0x11f   :  { %2985 = vmatprep.subr.bf16.mxu1 %v2984_v54  ;;  %v291_v54 = vld [vmem:[#allocation7 + $0x4e8] sm:$0xff]  ;;  %v2878_v57 = vpack.c.bf16 %v274_v49, %v266_v48  ;;  %v3006_v58 = vpack.c.bf16 %v276_v52, %v268_v50  ;;  %v3024_v48 = vpack.c.bf16 %v357_v41, %v349_v40  ;;  %v356_v49 = vld [vmem:[#allocation7 + $0x6f0] sm:$0xff]  ;;  %v365_v52 = vld [vmem:[#allocation7 + $0x738] sm:$0xff] }
 0x120   :  { %v2880_v59 = vpack.c.bf16 %v291_v54, %v283_v53  ;;  %v363_v50 = vld [vmem:[#allocation7 + $0x728] sm:$0xff]  ;;  %v373_v53 = vld [vmem:[#allocation7 + $0x778] sm:$0xff] }
 0x121   :  { %2859 = vmatpush1.bf16.msra.mxu0 %v2858_v60  ;;  %v282_v60 = vld [vmem:[#allocation7 + $0x4a0] sm:$0xff] }
 0x122   :  { %2987 = vmatpush1.bf16.msra.mxu1 %v2986_v16  ;;  %2861 = vmatprep.subr.bf16.mxu0 %v2860_v61  ;;  %v290_v16 = vld [vmem:[#allocation7 + $0x4e0] sm:$0xff]  ;;  %v284_v61 = vld [vmem:[#allocation7 + $0x4b0] sm:$0xff] }
 0x123   :  { %2989 = vmatprep.subr.bf16.mxu1 %v2988_v1  ;;  %v307_v1 = vld [vmem:[#allocation7 + $0x568] sm:$0xff]  ;;  %v2882_v4 = vpack.c.bf16 %v290_v16, %v282_v60  ;;  %v3010_v5 = vpack.c.bf16 %v292_v63, %v284_v61  ;;  %v3028_v60 = vpack.c.bf16 %v373_v53, %v365_v52  ;;  %v372_v16 = vld [vmem:[#allocation7 + $0x770] sm:$0xff]  ;;  %v381_v63 = vld [vmem:[#allocation7 + $0x7b8] sm:$0xff] }
 0x124   :  { %v2884_v6 = vpack.c.bf16 %v307_v1, %v299_v0  ;;  %v379_v61 = vld [vmem:[#allocation7 + $0x7a8] sm:$0xff]  ;;  %v389_v0 = vld [vmem:[#allocation7 + $0x7f8] sm:$0xff] }
 0x125   :  { %2863 = vmatpush1.bf16.msra.mxu0 %v2862_v7  ;;  %v298_v7 = vld [vmem:[#allocation7 + $0x520] sm:$0xff] }
 0x126   :  { %2991 = vmatpush1.bf16.msra.mxu1 %v2990_v8  ;;  %2865 = vmatprep.subr.bf16.mxu0 %v2864_v9  ;;  %v306_v8 = vld [vmem:[#allocation7 + $0x560] sm:$0xff]  ;;  %v300_v9 = vld [vmem:[#allocation7 + $0x530] sm:$0xff] }
 0x127   :  { %2993 = vmatprep.subr.bf16.mxu1 %v2992_v13  ;;  %v323_v13 = vld [vmem:[#allocation7 + $0x5e8] sm:$0xff]  ;;  %v2886_v17 = vpack.c.bf16 %v306_v8, %v298_v7  ;;  %v3014_v18 = vpack.c.bf16 %v308_v11, %v300_v9  ;;  %v3032_v7 = vpack.c.bf16 %v389_v0, %v381_v63  ;;  %v388_v8 = vld [vmem:[#allocation7 + $0x7f0] sm:$0xff]  ;;  %v397_v11 = vld [vmem:[#allocation7 + $0x838] sm:$0xff] }
 0x128   :  { %v2888_v19 = vpack.c.bf16 %v323_v13, %v315_v12  ;;  %v395_v9 = vld [vmem:[#allocation7 + $0x828] sm:$0xff]  ;;  %v405_v12 = vld [vmem:[#allocation7 + $0x878] sm:$0xff] }
 0x129   :  { %2867 = vmatpush1.bf16.msra.mxu0 %v2866_v20  ;;  %v314_v20 = vld [vmem:[#allocation7 + $0x5a0] sm:$0xff] }
 0x12a   :  { %2995 = vmatpush1.bf16.msra.mxu1 %v2994_v21  ;;  %2869 = vmatprep.subr.bf16.mxu0 %v2868_v22  ;;  %v322_v21 = vld [vmem:[#allocation7 + $0x5e0] sm:$0xff]  ;;  %v316_v22 = vld [vmem:[#allocation7 + $0x5b0] sm:$0xff] }
 0x12b   :  { %2997 = vmatprep.subr.bf16.mxu1 %v2996_v27  ;;  %v339_v27 = vld [vmem:[#allocation7 + $0x668] sm:$0xff]  ;;  %v2890_v30 = vpack.c.bf16 %v322_v21, %v314_v20  ;;  %v3018_v31 = vpack.c.bf16 %v324_v25, %v316_v22  ;;  %v3036_v20 = vpack.c.bf16 %v405_v12, %v397_v11  ;;  %v404_v21 = vld [vmem:[#allocation7 + $0x870] sm:$0xff]  ;;  %v413_v25 = vld [vmem:[#allocation7 + $0x8b8] sm:$0xff] }
 0x12c   :  { %v2892_v32 = vpack.c.bf16 %v339_v27, %v331_v26  ;;  %v411_v22 = vld [vmem:[#allocation7 + $0x8a8] sm:$0xff]  ;;  %v421_v26 = vld [vmem:[#allocation7 + $0x8f8] sm:$0xff] }
 0x12d   :  { %2871 = vmatpush1.bf16.msra.mxu0 %v2870_v33  ;;  %v330_v33 = vld [vmem:[#allocation7 + $0x620] sm:$0xff] }
 0x12e   :  { %2999 = vmatpush1.bf16.msra.mxu1 %v2998_v34  ;;  %2873 = vmatprep.subr.bf16.mxu0 %v2872_v35  ;;  %v338_v34 = vld [vmem:[#allocation7 + $0x660] sm:$0xff]  ;;  %v332_v35 = vld [vmem:[#allocation7 + $0x630] sm:$0xff] }
 0x12f   :  { %3001 = vmatprep.subr.bf16.mxu1 %v3000_v39  ;;  %v355_v39 = vld [vmem:[#allocation7 + $0x6e8] sm:$0xff]  ;;  %v2894_v42 = vpack.c.bf16 %v338_v34, %v330_v33  ;;  %v3022_v43 = vpack.c.bf16 %v340_v37, %v332_v35  ;;  %v3040_v33 = vpack.c.bf16 %v421_v26, %v413_v25  ;;  %v420_v34 = vld [vmem:[#allocation7 + $0x8f0] sm:$0xff]  ;;  %v3656_v37 = vld [vmem:[#allocation5] sm:$0xff] }
 0x130   :  { %v2896_v44 = vpack.c.bf16 %v355_v39, %v347_v38  ;;  %v427_v35 = vld [vmem:[#allocation7 + $0x928] sm:$0xff]  ;;  %v429_v38 = vld [vmem:[#allocation7 + $0x938] sm:$0xff] }
 0x131   :  { %2875 = vmatpush1.bf16.msra.mxu0 %v2874_v45  ;;  %v346_v45 = vld [vmem:[#allocation7 + $0x6a0] sm:$0xff]  ;;  %v437_v39 = vld [vmem:[#allocation7 + $0x978] sm:$0xff] }
 0x132   :  { %3003 = vmatpush1.bf16.msra.mxu1 %v3002_v46  ;;  %2877 = vmatprep.subr.bf16.mxu0 %v2876_v47  ;;  %v354_v46 = vld [vmem:[#allocation7 + $0x6e0] sm:$0xff]  ;;  %v348_v47 = vld [vmem:[#allocation7 + $0x6b0] sm:$0xff] }
 0x133   :  { %3005 = vmatprep.subr.bf16.mxu1 %v3004_v51  ;;  %v371_v51 = vld [vmem:[#allocation7 + $0x768] sm:$0xff]  ;;  %v2898_v54 = vpack.c.bf16 %v354_v46, %v346_v45  ;;  %v3026_v55 = vpack.c.bf16 %v356_v49, %v348_v47  ;;  %v428_v45 = vld [vmem:[#allocation7 + $0x930] sm:$0xff]  ;;  %v3044_v46 = vpack.c.bf16 %v437_v39, %v429_v38  ;;  %v506_v39 = vld [vmem:[#allocation7 + $0xba0] sm:$0xff] }
 0x134   :  { %v2900_v56 = vpack.c.bf16 %v371_v51, %v363_v50  ;;  %v436_v47 = vld [vmem:[#allocation7 + $0x970] sm:$0xff]  ;;  %v451_v49 = vld [vmem:[#allocation7 + $0x9e8] sm:$0xff]  ;;  %v445_v50 = vld [vmem:[#allocation7 + $0x9b8] sm:$0xff] }
 0x135   :  { %2879 = vmatpush1.bf16.msra.mxu0 %v2878_v57  ;;  %v362_v57 = vld [vmem:[#allocation7 + $0x720] sm:$0xff]  ;;  %v453_v51 = vld [vmem:[#allocation7 + $0x9f8] sm:$0xff]  ;;  %v3046_v53 = vpack.c.bf16 %v436_v47, %v428_v45  ;;  %v531_v45 = vld [vmem:[#allocation7 + $0xc68] sm:$0xff] }
 0x136   :  { %3007 = vmatpush1.bf16.msra.mxu1 %v3006_v58  ;;  %2881 = vmatprep.subr.bf16.mxu0 %v2880_v59  ;;  %v370_v58 = vld [vmem:[#allocation7 + $0x760] sm:$0xff]  ;;  %v364_v59 = vld [vmem:[#allocation7 + $0x730] sm:$0xff]  ;;  %v533_v47 = vld [vmem:[#allocation7 + $0xc78] sm:$0xff] }
 0x137   :  { %3009 = vmatprep.subr.bf16.mxu1 %v3008_v62  ;;  %v387_v62 = vld [vmem:[#allocation7 + $0x7e8] sm:$0xff]  ;;  %v2902_v1 = vpack.c.bf16 %v370_v58, %v362_v57  ;;  %v3030_v2 = vpack.c.bf16 %v372_v16, %v364_v59  ;;  %v444_v57 = vld [vmem:[#allocation7 + $0x9b0] sm:$0xff]  ;;  %v3048_v58 = vpack.c.bf16 %v453_v51, %v445_v50  ;;  %v522_v51 = vld [vmem:[#allocation7 + $0xc20] sm:$0xff] }
 0x138   :  { %v2904_v3 = vpack.c.bf16 %v387_v62, %v379_v61  ;;  %v452_v59 = vld [vmem:[#allocation7 + $0x9f0] sm:$0xff]  ;;  %v467_v16 = vld [vmem:[#allocation7 + $0xa68] sm:$0xff]  ;;  %v461_v61 = vld [vmem:[#allocation7 + $0xa38] sm:$0xff] }
 0x139   :  { %2883 = vmatpush1.bf16.msra.mxu0 %v2882_v4  ;;  %v378_v4 = vld [vmem:[#allocation7 + $0x7a0] sm:$0xff]  ;;  %v469_v62 = vld [vmem:[#allocation7 + $0xa78] sm:$0xff] }
 0x13a   :  { %3011 = vmatpush1.bf16.msra.mxu1 %v3010_v5  ;;  %2885 = vmatprep.subr.bf16.mxu0 %v2884_v6  ;;  %v386_v5 = vld [vmem:[#allocation7 + $0x7e0] sm:$0xff]  ;;  %v380_v6 = vld [vmem:[#allocation7 + $0x7b0] sm:$0xff] }
 0x13b   :  { %3013 = vmatprep.subr.bf16.mxu1 %v3012_v10  ;;  %v403_v10 = vld [vmem:[#allocation7 + $0x868] sm:$0xff]  ;;  %v2906_v13 = vpack.c.bf16 %v386_v5, %v378_v4  ;;  %v3034_v14 = vpack.c.bf16 %v388_v8, %v380_v6  ;;  %v3052_v4 = vpack.c.bf16 %v469_v62, %v461_v61  ;;  %v468_v5 = vld [vmem:[#allocation7 + $0xa70] sm:$0xff]  ;;  %v477_v8 = vld [vmem:[#allocation7 + $0xab8] sm:$0xff] }
 0x13c   :  { %v2908_v15 = vpack.c.bf16 %v403_v10, %v395_v9  ;;  %v475_v6 = vld [vmem:[#allocation7 + $0xaa8] sm:$0xff]  ;;  %v485_v9 = vld [vmem:[#allocation7 + $0xaf8] sm:$0xff]  ;;  %v538_v62 = vld [vmem:[#allocation7 + $0xca0] sm:$0xff] }
 0x13d   :  { %2887 = vmatpush1.bf16.msra.mxu0 %v2886_v17  ;;  %v394_v17 = vld [vmem:[#allocation7 + $0x820] sm:$0xff] }
 0x13e   :  { %3015 = vmatpush1.bf16.msra.mxu1 %v3014_v18  ;;  %2889 = vmatprep.subr.bf16.mxu0 %v2888_v19  ;;  %v402_v18 = vld [vmem:[#allocation7 + $0x860] sm:$0xff]  ;;  %v396_v19 = vld [vmem:[#allocation7 + $0x830] sm:$0xff] }
 0x13f   :  { %3017 = vmatprep.subr.bf16.mxu1 %v3016_v23  ;;  %v419_v23 = vld [vmem:[#allocation7 + $0x8e8] sm:$0xff]  ;;  %v2910_v27 = vpack.c.bf16 %v402_v18, %v394_v17  ;;  %v3038_v28 = vpack.c.bf16 %v404_v21, %v396_v19  ;;  %v3056_v17 = vpack.c.bf16 %v485_v9, %v477_v8  ;;  %v484_v18 = vld [vmem:[#allocation7 + $0xaf0] sm:$0xff]  ;;  %v493_v21 = vld [vmem:[#allocation7 + $0xb38] sm:$0xff] }
 0x140   :  { %v2912_v29 = vpack.c.bf16 %v419_v23, %v411_v22  ;;  %v491_v19 = vld [vmem:[#allocation7 + $0xb28] sm:$0xff]  ;;  %v501_v22 = vld [vmem:[#allocation7 + $0xb78] sm:$0xff]  ;;  %v554_v9 = vld [vmem:[#allocation7 + $0xd20] sm:$0xff] }
 0x141   :  { %2891 = vmatpush1.bf16.msra.mxu0 %v2890_v30  ;;  %v410_v30 = vld [vmem:[#allocation7 + $0x8a0] sm:$0xff] }
 0x142   :  { %3019 = vmatpush1.bf16.msra.mxu1 %v3018_v31  ;;  %2893 = vmatprep.subr.bf16.mxu0 %v2892_v32  ;;  %v418_v31 = vld [vmem:[#allocation7 + $0x8e0] sm:$0xff]  ;;  %v412_v32 = vld [vmem:[#allocation7 + $0x8b0] sm:$0xff] }
 0x143   :  { %3021 = vmatprep.subr.bf16.mxu1 %v3020_v36  ;;  %v435_v36 = vld [vmem:[#allocation7 + $0x968] sm:$0xff]  ;;  %v2914_v40 = vpack.c.bf16 %v418_v31, %v410_v30  ;;  %v3042_v41 = vpack.c.bf16 %v420_v34, %v412_v32  ;;  %v3060_v30 = vpack.c.bf16 %v501_v22, %v493_v21  ;;  %v500_v31 = vld [vmem:[#allocation7 + $0xb70] sm:$0xff]  ;;  %v509_v34 = vld [vmem:[#allocation7 + $0xbb8] sm:$0xff] }
 0x144   :  { %v507_v32 = vld [vmem:[#allocation7 + $0xba8] sm:$0xff]  ;;  %v570_v22 = vld [vmem:[#allocation7 + $0xda0] sm:$0xff] }
 0x145   :  { %2895 = vmatpush1.bf16.msra.mxu0 %v2894_v42  ;;  %v2916_v42 = vpack.c.bf16 %v435_v36, %v427_v35  ;;  %v517_v35 = vld [vmem:[#allocation7 + $0xbf8] sm:$0xff] }
 0x146   :  { %3023 = vmatpush1.bf16.msra.mxu1 %v3022_v43  ;;  %2897 = vmatprep.subr.bf16.mxu0 %v2896_v44  ;;  %v426_v43 = vld [vmem:[#allocation7 + $0x920] sm:$0xff] }
 0x147   :  { %3025 = vmatprep.subr.bf16.mxu1 %v3024_v48  ;;  %v434_v44 = vld [vmem:[#allocation7 + $0x960] sm:$0xff]  ;;  %v443_v48 = vld [vmem:[#allocation7 + $0x9a8] sm:$0xff] }
 0x148   :  { %v2918_v52 = vpack.c.bf16 %v434_v44, %v426_v43  ;;  %v516_v43 = vld [vmem:[#allocation7 + $0xbf0] sm:$0xff]  ;;  %v523_v44 = vld [vmem:[#allocation7 + $0xc28] sm:$0xff] }
 0x149   :  { %2899 = vmatpush1.bf16.msra.mxu0 %v2898_v54  ;;  %v2920_v54 = vpack.c.bf16 %v451_v49, %v443_v48  ;;  %v2940_v50 = vpack.c.bf16 %v531_v45, %v523_v44 }
 0x14a   :  { %3027 = vmatpush1.bf16.msra.mxu1 %v3026_v55  ;;  %2901 = vmatprep.subr.bf16.mxu0 %v2900_v56  ;;  %v442_v55 = vld [vmem:[#allocation7 + $0x9a0] sm:$0xff] }
 0x14b   :  { %3029 = vmatprep.subr.bf16.mxu1 %v3028_v60  ;;  %v450_v56 = vld [vmem:[#allocation7 + $0x9e0] sm:$0xff]  ;;  %v459_v60 = vld [vmem:[#allocation7 + $0xa28] sm:$0xff] }
 0x14c   :  { %v2922_v63 = vpack.c.bf16 %v450_v56, %v442_v55  ;;  %v2924_v0 = vpack.c.bf16 %v467_v16, %v459_v60  ;;  %v532_v55 = vld [vmem:[#allocation7 + $0xc70] sm:$0xff]  ;;  %v539_v56 = vld [vmem:[#allocation7 + $0xca8] sm:$0xff] }
 0x14d   :  { %2903 = vmatpush1.bf16.msra.mxu0 %v2902_v1  ;;  %v458_v1 = vld [vmem:[#allocation7 + $0xa20] sm:$0xff] }
 0x14e   :  { %3031 = vmatpush1.bf16.msra.mxu1 %v3030_v2  ;;  %2905 = vmatprep.subr.bf16.mxu0 %v2904_v3  ;;  %v466_v2 = vld [vmem:[#allocation7 + $0xa60] sm:$0xff]  ;;  %v460_v3 = vld [vmem:[#allocation7 + $0xa30] sm:$0xff] }
 0x14f   :  { %3033 = vmatprep.subr.bf16.mxu1 %v3032_v7  ;;  %v483_v7 = vld [vmem:[#allocation7 + $0xae8] sm:$0xff]  ;;  %v2926_v10 = vpack.c.bf16 %v466_v2, %v458_v1  ;;  %v3054_v11 = vpack.c.bf16 %v468_v5, %v460_v3  ;;  %v548_v1 = vld [vmem:[#allocation7 + $0xcf0] sm:$0xff]  ;;  %v565_v5 = vld [vmem:[#allocation7 + $0xd78] sm:$0xff] }
 0x150   :  { %v2928_v12 = vpack.c.bf16 %v483_v7, %v475_v6  ;;  %v555_v2 = vld [vmem:[#allocation7 + $0xd28] sm:$0xff] }
 0x151   :  { %2907 = vmatpush1.bf16.msra.mxu0 %v2906_v13  ;;  %v474_v13 = vld [vmem:[#allocation7 + $0xaa0] sm:$0xff]  ;;  %v563_v3 = vld [vmem:[#allocation7 + $0xd68] sm:$0xff] }
 0x152   :  { %3035 = vmatpush1.bf16.msra.mxu1 %v3034_v14  ;;  %2909 = vmatprep.subr.bf16.mxu0 %v2908_v15  ;;  %v482_v14 = vld [vmem:[#allocation7 + $0xae0] sm:$0xff]  ;;  %v476_v15 = vld [vmem:[#allocation7 + $0xab0] sm:$0xff]  ;;  %v2948_v8 = vpack.c.bf16 %v563_v3, %v555_v2  ;;  %v643_v2 = vld [vmem:[#allocation7 + $0xfe8] sm:$0xff] }
 0x153   :  { %3037 = vmatprep.subr.bf16.mxu1 %v3036_v20  ;;  %v499_v20 = vld [vmem:[#allocation7 + $0xb68] sm:$0xff]  ;;  %v2930_v23 = vpack.c.bf16 %v482_v14, %v474_v13  ;;  %v3058_v25 = vpack.c.bf16 %v484_v18, %v476_v15  ;;  %v564_v13 = vld [vmem:[#allocation7 + $0xd70] sm:$0xff]  ;;  %v581_v18 = vld [vmem:[#allocation7 + $0xdf8] sm:$0xff] }
 0x154   :  { %995 = vmatmul.mubr.f32.vlgmr.msra.gmra.mrb[2].mxu0 %v3656_v37  ;;  %v2932_v26 = vpack.c.bf16 %v499_v20, %v491_v19  ;;  %v571_v14 = vld [vmem:[#allocation7 + $0xda8] sm:$0xff] }
 0x155   :  { %2911 = vmatpush1.bf16.msra.mxu0 %v2910_v27  ;;  %1137 = vmatmul.mubr.f32.vlgmr.msra.gmra.mrb[2].mxu1 %v3656_v37  ;;  %v490_v27 = vld [vmem:[#allocation7 + $0xb20] sm:$0xff]  ;;  %v579_v15 = vld [vmem:[#allocation7 + $0xde8] sm:$0xff] }
 0x156   :  { %3039 = vmatpush1.bf16.msra.mxu1 %v3038_v28  ;;  %2913 = vmatprep.subr.bf16.mxu0 %v2912_v29  ;;  %v498_v28 = vld [vmem:[#allocation7 + $0xb60] sm:$0xff]  ;;  %v492_v29 = vld [vmem:[#allocation7 + $0xb30] sm:$0xff]  ;;  %v2952_v21 = vpack.c.bf16 %v579_v15, %v571_v14  ;;  %v1215_v15 = vld [vmem:[#allocation8 + $0x8] sm:$0xff] }
 0x157   :  { %3041 = vmatprep.subr.bf16.mxu1 %v3040_v33  ;;  %1065 = vmatprep.mubr.f32.mxu0 %v4041_v24  ;;  %v515_v33 = vld [vmem:[#allocation7 + $0xbe8] sm:$0xff]  ;;  %v2934_v36 = vpack.c.bf16 %v498_v28, %v490_v27  ;;  %v3062_v37 = vpack.c.bf16 %v500_v31, %v492_v29  ;;  %v580_v27 = vld [vmem:[#allocation7 + $0xdf0] sm:$0xff]  ;;  %v597_v31 = vld [vmem:[#allocation7 + $0xe78] sm:$0xff] }
 0x158   :  { %1207 = vmatprep.mubr.f32.mxu1 %v4041_v24  ;;  %v3050_v24 = vpack.c.bf16 %v452_v59, %v444_v57  ;;  %v2936_v38 = vpack.c.bf16 %v515_v33, %v507_v32  ;;  %v547_v57 = vld [vmem:[#allocation7 + $0xce8] sm:$0xff]  ;;  %v549_v59 = vld [vmem:[#allocation7 + $0xcf8] sm:$0xff]  ;;  %v644_v14 = vld [vmem:[#allocation7 + $0xff0] sm:$0xff] }
 0x159   :  { %2915 = vmatpush1.bf16.msra.mxu0 %v2914_v40  ;;  %v514_v40 = vld [vmem:[#allocation7 + $0xbe0] sm:$0xff]  ;;  %v2944_v61 = vpack.c.bf16 %v547_v57, %v539_v56  ;;  %v587_v28 = vld [vmem:[#allocation7 + $0xe28] sm:$0xff]  ;;  %v1475_v56 = vlaneseq  ;;  %v621_v57 = vld [vmem:[#allocation7 + $0xf38] sm:$0xff] }
 0x15a   :  { %3043 = vmatpush1.bf16.msra.mxu1 %v3042_v41  ;;  %2917 = vmatprep.subr.bf16.mxu0 %v2916_v42  ;;  %v508_v41 = vld [vmem:[#allocation7 + $0xbb0] sm:$0xff]  ;;  %v3064_v42 = vpack.c.bf16 %v517_v35, %v509_v34  ;;  %v2938_v48 = vpack.c.bf16 %v514_v40, %v506_v39  ;;  %v595_v29 = vld [vmem:[#allocation7 + $0xe68] sm:$0xff]  ;;  %v586_v35 = vld [vmem:[#allocation7 + $0xe20] sm:$0xff] }
 0x15b   :  { %3045 = vmatprep.subr.bf16.mxu1 %v3044_v46  ;;  %v525_v46 = vld [vmem:[#allocation7 + $0xc38] sm:$0xff]  ;;  %v3066_v49 = vpack.c.bf16 %v516_v43, %v508_v41  ;;  %v2956_v34 = vpack.c.bf16 %v595_v29, %v587_v28  ;;  %v596_v39 = vld [vmem:[#allocation7 + $0xe70] sm:$0xff]  ;;  %v603_v40 = vld [vmem:[#allocation7 + $0xea8] sm:$0xff] }
 0x15c   :  { %v611_v41 = vld [vmem:[#allocation7 + $0xee8] sm:$0xff]  ;;  %v613_v43 = vld [vmem:[#allocation7 + $0xef8] sm:$0xff]  ;;  %v1216_v28 = vld [vmem:[#allocation8 + $0x10] sm:$0xff] }
 0x15d   :  { %2919 = vmatpush1.bf16.msra.mxu0 %v2918_v52  ;;  %v530_v52 = vld [vmem:[#allocation7 + $0xc60] sm:$0xff] }
 0x15e   :  { %3047 = vmatpush1.bf16.msra.mxu1 %v3046_v53  ;;  %2921 = vmatprep.subr.bf16.mxu0 %v2920_v54  ;;  %v524_v53 = vld [vmem:[#allocation7 + $0xc30] sm:$0xff]  ;;  %v3068_v54 = vpack.c.bf16 %v533_v47, %v525_v46  ;;  %v2942_v60 = vpack.c.bf16 %v530_v52, %v522_v51  ;;  %v2960_v46 = vpack.c.bf16 %v611_v41, %v603_v40  ;;  %v602_v47 = vld [vmem:[#allocation7 + $0xea0] sm:$0xff]  ;;  %v619_v52 = vld [vmem:[#allocation7 + $0xf28] sm:$0xff] }
 0x15f   :  { %3049 = vmatprep.subr.bf16.mxu1 %v3048_v58  ;;  %v541_v58 = vld [vmem:[#allocation7 + $0xcb8] sm:$0xff]  ;;  %v3070_v16 = vpack.c.bf16 %v532_v55, %v524_v53  ;;  %v612_v51 = vld [vmem:[#allocation7 + $0xef0] sm:$0xff]  ;;  %v627_v53 = vld [vmem:[#allocation7 + $0xf68] sm:$0xff] }
 0x160   :  { %v1226_v40 = vld [vmem:[#allocation8 + $0x60] sm:$0xff]  ;;  %v1224_v41 = vld [vmem:[#allocation8 + $0x50] sm:$0xff] }
 0x161   :  { %2923 = vmatpush1.bf16.msra.mxu0 %v2922_v63  ;;  %v546_v63 = vld [vmem:[#allocation7 + $0xce0] sm:$0xff] }
 0x162   :  { %3051 = vmatpush1.bf16.msra.mxu1 %v3050_v24  ;;  %2925 = vmatprep.subr.bf16.mxu0 %v2924_v0  ;;  %v540_v24 = vld [vmem:[#allocation7 + $0xcb0] sm:$0xff]  ;;  %v3072_v0 = vpack.c.bf16 %v549_v59, %v541_v58  ;;  %v2946_v6 = vpack.c.bf16 %v546_v63, %v538_v62  ;;  %v629_v58 = vld [vmem:[#allocation7 + $0xf78] sm:$0xff]  ;;  %v626_v62 = vld [vmem:[#allocation7 + $0xf60] sm:$0xff] }
 0x163   :  { %3053 = vmatprep.subr.bf16.mxu1 %v3052_v4  ;;  %v557_v4 = vld [vmem:[#allocation7 + $0xd38] sm:$0xff]  ;;  %v3074_v7 = vpack.c.bf16 %v548_v1, %v540_v24  ;;  %v620_v63 = vld [vmem:[#allocation7 + $0xf30] sm:$0xff]  ;;  %v3092_v24 = vpack.c.bf16 %v629_v58, %v621_v57  ;;  %v635_v1 = vld [vmem:[#allocation7 + $0xfa8] sm:$0xff] }
 0x164   :  { %v1236_v57 = vld [vmem:[#allocation8 + $0xb0] sm:$0xff]  ;;  %v1239_v58 = vld [vmem:[#allocation8 + $0xc8] sm:$0xff] }
 0x165   :  { %2927 = vmatpush1.bf16.msra.mxu0 %v2926_v10  ;;  %v562_v10 = vld [vmem:[#allocation7 + $0xd60] sm:$0xff] }
 0x166   :  { %3055 = vmatpush1.bf16.msra.mxu1 %v3054_v11  ;;  %2929 = vmatprep.subr.bf16.mxu0 %v2928_v12  ;;  %v556_v11 = vld [vmem:[#allocation7 + $0xd30] sm:$0xff]  ;;  %v3076_v12 = vpack.c.bf16 %v565_v5, %v557_v4  ;;  %v2950_v19 = vpack.c.bf16 %v562_v10, %v554_v9  ;;  %v4049_v4 = vshrl.u32 %v1475_v56, 7  ;;  %v637_v5 = vld [vmem:[#allocation7 + $0xfb8] sm:$0xff]  ;;  %v2968_v9 = vpack.c.bf16 %v643_v2, %v635_v1  ;;  %v634_v10 = vld [vmem:[#allocation7 + $0xfa0] sm:$0xff] }
 0x167   :  { %3057 = vmatprep.subr.bf16.mxu1 %v3056_v17  ;;  %v573_v17 = vld [vmem:[#allocation7 + $0xdb8] sm:$0xff]  ;;  %v3078_v20 = vpack.c.bf16 %v564_v13, %v556_v11  ;;  %v642_v11 = vld [vmem:[#allocation7 + $0xfe0] sm:$0xff]  ;;  %v1240_v1 = vld [vmem:[#allocation8 + $0xd0] sm:$0xff] }
 0x168   :  { %vm1832_vm0 = vcmp.lt.s32.totalorder %v4049_v4, 2 }
 0x169   :  { %2931 = vmatpush1.bf16.msra.mxu0 %v2930_v23  ;;  %v578_v23 = vld [vmem:[#allocation7 + $0xde0] sm:$0xff] }
 0x16a   :  { %3059 = vmatpush1.bf16.msra.mxu1 %v3058_v25  ;;  %2933 = vmatprep.subr.bf16.mxu0 %v2932_v26  ;;  %v572_v25 = vld [vmem:[#allocation7 + $0xdb0] sm:$0xff]  ;;  %v3080_v26 = vpack.c.bf16 %v581_v18, %v573_v17  ;;  %v2954_v32 = vpack.c.bf16 %v578_v23, %v570_v22  ;;  %v1219_v17 = vld [vmem:[#allocation8 + $0x28] sm:$0xff]  ;;  %v2970_v22 = vpack.c.bf16 %v642_v11, %v634_v10 }
 0x16b   :  { %3061 = vmatprep.subr.bf16.mxu1 %v3060_v30  ;;  %v589_v30 = vld [vmem:[#allocation7 + $0xe38] sm:$0xff]  ;;  %v3082_v33 = vpack.c.bf16 %v580_v27, %v572_v25  ;;  %v3100_v25 = vpack.c.bf16 %v1219_v17, %v1215_v15  ;;  %v1218_v27 = vld [vmem:[#allocation8 + $0x20] sm:$0xff]  ;;  %v1252_v17 = vld [vmem:[#allocation8 + $0x130] sm:$0xff] }
 0x16d   :  { %2935 = vmatpush1.bf16.msra.mxu0 %v2934_v36  ;;  %v594_v36 = vld [vmem:[#allocation7 + $0xe60] sm:$0xff] }
 0x16e   :  { %3063 = vmatpush1.bf16.msra.mxu1 %v3062_v37  ;;  %2937 = vmatprep.subr.bf16.mxu0 %v2936_v38  ;;  %v588_v37 = vld [vmem:[#allocation7 + $0xe30] sm:$0xff]  ;;  %v3084_v38 = vpack.c.bf16 %v597_v31, %v589_v30  ;;  %v2958_v44 = vpack.c.bf16 %v594_v36, %v586_v35  ;;  %v1223_v31 = vld [vmem:[#allocation8 + $0x48] sm:$0xff]  ;;  %v1229_v35 = vld [vmem:[#allocation8 + $0x78] sm:$0xff] }
 0x16f   :  { %3065 = vmatprep.subr.bf16.mxu1 %v3064_v42  ;;  %v605_v42 = vld [vmem:[#allocation7 + $0xeb8] sm:$0xff]  ;;  %v3086_v45 = vpack.c.bf16 %v596_v39, %v588_v37  ;;  %v1220_v30 = vld [vmem:[#allocation8 + $0x30] sm:$0xff]  ;;  %v1222_v39 = vld [vmem:[#allocation8 + $0x40] sm:$0xff] }
 0x170   :  { %v3230_v37 = vpack.c.bf16 %v1220_v30, %v1216_v28  ;;  %v1254_v28 = vld [vmem:[#allocation8 + $0x140] sm:$0xff]  ;;  %v1256_v30 = vld [vmem:[#allocation8 + $0x150] sm:$0xff] }
 0x171   :  { %2939 = vmatpush1.bf16.msra.mxu0 %v2938_v48  ;;  %v610_v48 = vld [vmem:[#allocation7 + $0xee0] sm:$0xff] }
 0x172   :  { %3067 = vmatpush1.bf16.msra.mxu1 %v3066_v49  ;;  %2941 = vmatprep.subr.bf16.mxu0 %v2940_v50  ;;  %v604_v49 = vld [vmem:[#allocation7 + $0xeb0] sm:$0xff]  ;;  %v3088_v50 = vpack.c.bf16 %v613_v43, %v605_v42  ;;  %v2962_v59 = vpack.c.bf16 %v610_v48, %v602_v47  ;;  %v1233_v48 = vld [vmem:[#allocation8 + $0x98] sm:$0xff] }
 0x173   :  { %3069 = vmatprep.subr.bf16.mxu1 %v3068_v54  ;;  %v3880_v54 = vmov 1983009808   ;;  %v1228_v43 = vld [vmem:[#allocation8 + $0x70] sm:$0xff] }
 0x174   :  { %v1473_v55 = vunpack.c.l.s4 %v3880_v54  ;;  %v3657_v47 = vld [vmem:[#allocation5 + $0x10] sm:$0xff]  ;;  %v1234_v54 = vld [vmem:[#allocation8 + $0xa0] sm:$0xff] }
 0x175   :  { %2943 = vmatpush1.bf16.msra.mxu0 %v2942_v60  ;;  %v3090_v60 = vpack.c.bf16 %v612_v51, %v604_v49  ;;  %v1237_v49 = vld [vmem:[#allocation8 + $0xb8] sm:$0xff]  ;;  %v3234_v51 = vpack.c.bf16 %v1228_v43, %v1224_v41  ;;  %v1262_v41 = vld [vmem:[#allocation8 + $0x180] sm:$0xff]  ;;  %v1264_v43 = vld [vmem:[#allocation8 + $0x190] sm:$0xff] }
 0x176   :  { %3071 = vmatpush1.bf16.msra.mxu1 %v3070_v16  ;;  %2945 = vmatprep.subr.bf16.mxu0 %v2944_v61  ;;  %v2964_v16 = vpack.c.bf16 %v627_v53, %v619_v52  ;;  %v618_v61 = vld [vmem:[#allocation7 + $0xf20] sm:$0xff]  ;;  %v1474_v3 = vunpack.c.0.s8 %v1473_v55  ;;  %v1232_v55 = vld [vmem:[#allocation8 + $0x90] sm:$0xff]  ;;  %v3236_v56 = vpack.c.bf16 %v1237_v49, %v1233_v48  ;;  %v1273_v48 = vld [vmem:[#allocation8 + $0x1d8] sm:$0xff] }
 0x177   :  { %3073 = vmatprep.subr.bf16.mxu1 %v3072_v0  ;;  %v628_v0 = vld [vmem:[#allocation7 + $0xf70] sm:$0xff]  ;;  %v1230_v53 = vld [vmem:[#allocation8 + $0x80] sm:$0xff]  ;;  %v1277_v49 = vld [vmem:[#allocation8 + $0x1f8] sm:$0xff] }
 0x178   :  { %v4052_v18 = vsub.s32 %v1474_v3, %v4049_v4  ;;  %v1244_v3 = vld [vmem:[#allocation8 + $0xf0] sm:$0xff] }
 0x179   :  { %2947 = vmatpush1.bf16.msra.mxu0 %v2946_v6  ;;  %v645_v6 = vld [vmem:[#allocation7 + $0xff8] sm:$0xff]  ;;  %v3242_v10 = vpack.c.bf16 %v1244_v3, %v1240_v1  ;;  %v1280_v1 = vld [vmem:[#allocation8 + $0x210] sm:$0xff] }
 0x17a   :  { %3075 = vmatpush1.bf16.msra.mxu1 %v3074_v7  ;;  %2949 = vmatprep.subr.bf16.mxu0 %v2948_v8  ;;  %v2966_v7 = vpack.c.bf16 %v626_v62, %v618_v61  ;;  %v3094_v8 = vpack.c.bf16 %v628_v0, %v620_v63  ;;  %v3096_v13 = vpack.c.bf16 %v645_v6, %v637_v5  ;;  %v1242_v0 = vld [vmem:[#allocation8 + $0xe0] sm:$0xff]  ;;  %v1247_v5 = vld [vmem:[#allocation8 + $0x108] sm:$0xff]  ;;  %v1284_v3 = vld [vmem:[#allocation8 + $0x230] sm:$0xff] }
 0x17b   :  { %3077 = vmatprep.subr.bf16.mxu1 %v3076_v12  ;;  %v636_v12 = vld [vmem:[#allocation7 + $0xfb0] sm:$0xff]  ;;  %v3110_v61 = vpack.c.bf16 %v1234_v54, %v1230_v53  ;;  %v3238_v62 = vpack.c.bf16 %v1236_v57, %v1232_v55  ;;  %v1251_v6 = vld [vmem:[#allocation8 + $0x128] sm:$0xff]  ;;  %v1270_v53 = vld [vmem:[#allocation8 + $0x1c0] sm:$0xff] }
 0x17c   :  { %v3098_v23 = vpack.c.bf16 %v644_v14, %v636_v12  ;;  %v3116_v11 = vpack.c.bf16 %v1251_v6, %v1247_v5  ;;  %v1246_v12 = vld [vmem:[#allocation8 + $0x100] sm:$0xff]  ;;  %v1248_v14 = vld [vmem:[#allocation8 + $0x110] sm:$0xff]  ;;  %v1287_v5 = vld [vmem:[#allocation8 + $0x248] sm:$0xff] }
 0x17d   :  { %2951 = vmatpush1.bf16.msra.mxu0 %v2950_v19  ;;  %v1217_v19 = vld [vmem:[#allocation8 + $0x18] sm:$0xff]  ;;  %v1274_v54 = vld [vmem:[#allocation8 + $0x1e0] sm:$0xff]  ;;  %v1272_v55 = vld [vmem:[#allocation8 + $0x1d0] sm:$0xff] }
 0x17e   :  { %3079 = vmatpush1.bf16.msra.mxu1 %v3078_v20  ;;  %2953 = vmatprep.subr.bf16.mxu0 %v2952_v21  ;;  %v1221_v20 = vld [vmem:[#allocation8 + $0x38] sm:$0xff]  ;;  %v1276_v57 = vld [vmem:[#allocation8 + $0x1f0] sm:$0xff]  ;;  %v1291_v6 = vld [vmem:[#allocation8 + $0x268] sm:$0xff] }
 0x17f   :  { %3081 = vmatprep.subr.bf16.mxu1 %v3080_v26  ;;  %v4054_v21 = vld [vmem:[#allocation2] sm:$0xff]  ;;  %v1214_v26 = vld [vmem:[#allocation8] sm:$0xff]  ;;  %v3228_v29 = vpack.c.bf16 %v1221_v20, %v1217_v19  ;;  %v1255_v19 = vld [vmem:[#allocation8 + $0x148] sm:$0xff] }
 0x180   :  { %v3102_v36 = vpack.c.bf16 %v1218_v27, %v1214_v26  ;;  %v1259_v20 = vld [vmem:[#allocation8 + $0x168] sm:$0xff]  ;;  %v3246_v26 = vpack.c.bf16 %v1252_v17, %v1248_v14  ;;  %v1288_v14 = vld [vmem:[#allocation8 + $0x250] sm:$0xff] }
 0x181   :  { %2955 = vmatpush1.bf16.msra.mxu0 %v2954_v32  ;;  %v1227_v32 = vld [vmem:[#allocation8 + $0x68] sm:$0xff]  ;;  %v3120_v27 = vpack.c.bf16 %v1259_v20, %v1255_v19  ;;  %v1292_v17 = vld [vmem:[#allocation8 + $0x270] sm:$0xff] }
 0x182   :  { %3083 = vmatpush1.bf16.msra.mxu1 %v3082_v33  ;;  %2957 = vmatprep.subr.bf16.mxu0 %v2956_v34  ;;  %v4058_v33 = vrot.slane %v4054_v21, %v4052_v18  ;;  %v1225_v34 = vld [vmem:[#allocation8 + $0x58] sm:$0xff]  ;;  %v1295_v19 = vld [vmem:[#allocation8 + $0x288] sm:$0xff] }
 0x183   :  { %3085 = vmatprep.subr.bf16.mxu1 %v3084_v38  ;;  %v3104_v38 = vpack.c.bf16 %v1227_v32, %v1223_v31  ;;  %v3232_v42 = vpack.c.bf16 %v1229_v35, %v1225_v34  ;;  %v1260_v32 = vld [vmem:[#allocation8 + $0x170] sm:$0xff]  ;;  %v1263_v34 = vld [vmem:[#allocation8 + $0x188] sm:$0xff] }
 0x184   :  { %v1267_v35 = vld [vmem:[#allocation8 + $0x1a8] sm:$0xff] }
 0x185   :  { %2959 = vmatpush1.bf16.msra.mxu0 %v2958_v44  ;;  %v1231_v44 = vld [vmem:[#allocation8 + $0x88] sm:$0xff] }
 0x186   :  { %3087 = vmatpush1.bf16.msra.mxu1 %v3086_v45  ;;  %2961 = vmatprep.subr.bf16.mxu0 %v2960_v46  ;;  %v1235_v45 = vld [vmem:[#allocation8 + $0xa8] sm:$0xff]  ;;  %v1486_v46 = vcombine.high %v4058_v33, %v4058_v33 }
 0x187   :  { %3089 = vmatprep.subr.bf16.mxu1 %v3088_v50  ;;  %v3106_v50 = vpack.c.bf16 %v1226_v40, %v1222_v39  ;;  %v3108_v52 = vpack.c.bf16 %v1235_v45, %v1231_v44  ;;  %v3250_v39 = vpack.c.bf16 %v1260_v32, %v1256_v30  ;;  %v3124_v40 = vpack.c.bf16 %v1267_v35, %v1263_v34  ;;  %v1268_v45 = vld [vmem:[#allocation8 + $0x1b0] sm:$0xff]  ;;  %v1299_v20 = vld [vmem:[#allocation8 + $0x2a8] sm:$0xff] }
 0x188   :  { %v1296_v30 = vld [vmem:[#allocation8 + $0x290] sm:$0xff]  ;;  %v1303_v34 = vld [vmem:[#allocation8 + $0x2c8] sm:$0xff] }
 0x189   :  { %2963 = vmatpush1.bf16.msra.mxu0 %v2962_v59  ;;  %v1243_v59 = vld [vmem:[#allocation8 + $0xe8] sm:$0xff]  ;;  %v1300_v32 = vld [vmem:[#allocation8 + $0x2b0] sm:$0xff] }
 0x18a   :  { %3091 = vmatpush1.bf16.msra.mxu1 %v3090_v60  ;;  %2965 = vmatprep.subr.bf16.mxu0 %v2964_v16  ;;  %v1241_v60 = vld [vmem:[#allocation8 + $0xd8] sm:$0xff]  ;;  %v3112_v63 = vpack.c.bf16 %v1243_v59, %v1239_v58  ;;  %v1279_v58 = vld [vmem:[#allocation8 + $0x208] sm:$0xff] }
 0x18b   :  { %3093 = vmatprep.subr.bf16.mxu1 %v3092_v24  ;;  %v1245_v16 = vld [vmem:[#allocation8 + $0xf8] sm:$0xff]  ;;  %v1238_v24 = vld [vmem:[#allocation8 + $0xc0] sm:$0xff]  ;;  %v1283_v59 = vld [vmem:[#allocation8 + $0x228] sm:$0xff] }
 0x18c   :  { %v3240_v2 = vpack.c.bf16 %v1245_v16, %v1241_v60  ;;  %v1281_v60 = vld [vmem:[#allocation8 + $0x218] sm:$0xff]  ;;  %v1307_v35 = vld [vmem:[#allocation8 + $0x2e8] sm:$0xff] }
 0x18d   :  { %2967 = vmatpush1.bf16.msra.mxu0 %v2966_v7  ;;  %v1249_v7 = vld [vmem:[#allocation8 + $0x118] sm:$0xff] }
 0x18e   :  { %3095 = vmatpush1.bf16.msra.mxu1 %v3094_v8  ;;  %2969 = vmatprep.subr.bf16.mxu0 %v2968_v9  ;;  %v1253_v8 = vld [vmem:[#allocation8 + $0x138] sm:$0xff]  ;;  %v3114_v9 = vpack.c.bf16 %v1242_v0, %v1238_v24  ;;  %v1278_v24 = vld [vmem:[#allocation8 + $0x200] sm:$0xff] }
 0x18f   :  { %3097 = vmatprep.subr.bf16.mxu1 %v3096_v13  ;;  %v1250_v13 = vld [vmem:[#allocation8 + $0x120] sm:$0xff]  ;;  %v3244_v15 = vpack.c.bf16 %v1253_v8, %v1249_v7  ;;  %v1285_v16 = vld [vmem:[#allocation8 + $0x238] sm:$0xff] }
 0x190   :  { %v1282_v0 = vld [vmem:[#allocation8 + $0x220] sm:$0xff]  ;;  %v1289_v7 = vld [vmem:[#allocation8 + $0x258] sm:$0xff] }
 0x191   :  { %2971 = vmatpush1.bf16.msra.mxu0 %v2970_v22  ;;  %v1257_v22 = vld [vmem:[#allocation8 + $0x158] sm:$0xff] }
 0x192   :  { %3099 = vmatpush1.bf16.msra.mxu1 %v3098_v23  ;;  %3101 = vmatprep.subr.bf16.mxu0 %v3100_v25  ;;  %v1261_v23 = vld [vmem:[#allocation8 + $0x178] sm:$0xff]  ;;  %v3118_v25 = vpack.c.bf16 %v1250_v13, %v1246_v12  ;;  %v1286_v12 = vld [vmem:[#allocation8 + $0x240] sm:$0xff] }
 0x193   :  { %3229 = vmatprep.subr.bf16.mxu1 %v3228_v29  ;;  %v1258_v29 = vld [vmem:[#allocation8 + $0x160] sm:$0xff]  ;;  %v3248_v31 = vpack.c.bf16 %v1261_v23, %v1257_v22  ;;  %v1293_v8 = vld [vmem:[#allocation8 + $0x278] sm:$0xff] }
 0x194   :  { %1066 = vmatmul.mubr.f32.vlgmr.msra.gmra.mrb[2].mxu0 %v3657_v47  ;;  %v1290_v13 = vld [vmem:[#allocation8 + $0x260] sm:$0xff]  ;;  %v1297_v22 = vld [vmem:[#allocation8 + $0x298] sm:$0xff] }
 0x195   :  { %1208 = vmatmul.mubr.f32.vlgmr.msra.gmra.mrb[2].mxu1 %v3657_v47  ;;  %3103 = vmatpush1.bf16.msra.mxu0 %v3102_v36  ;;  %v1265_v36 = vld [vmem:[#allocation8 + $0x198] sm:$0xff]  ;;  %v1275_v47 = vld [vmem:[#allocation8 + $0x1e8] sm:$0xff] }
 0x196   :  { %3231 = vmatpush1.bf16.msra.mxu1 %v3230_v37  ;;  %3105 = vmatprep.subr.bf16.mxu0 %v3104_v38  ;;  %v1269_v37 = vld [vmem:[#allocation8 + $0x1b8] sm:$0xff]  ;;  %v3122_v38 = vpack.c.bf16 %v1258_v29, %v1254_v28  ;;  %v1294_v28 = vld [vmem:[#allocation8 + $0x280] sm:$0xff] }
 0x197   :  { %3233 = vmatprep.subr.bf16.mxu1 %v3232_v42  ;;  %1556 = vmatprep.mubr.f32.mxu0 %v1486_v46  ;;  %v1266_v42 = vld [vmem:[#allocation8 + $0x1a0] sm:$0xff]  ;;  %v3252_v44 = vpack.c.bf16 %v1269_v37, %v1265_v36  ;;  %v1301_v23 = vld [vmem:[#allocation8 + $0x2b8] sm:$0xff] }
 0x198   :  { %1698 = vmatprep.mubr.f32.mxu1 %v1486_v46  ;;  %v1271_v46 = vld [vmem:[#allocation8 + $0x1c8] sm:$0xff]  ;;  %v1298_v29 = vld [vmem:[#allocation8 + $0x2a0] sm:$0xff]  ;;  %v1305_v36 = vld [vmem:[#allocation8 + $0x2d8] sm:$0xff] }
 0x199   :  { %3107 = vmatpush1.bf16.msra.mxu0 %v3106_v50  ;;  %v3126_v50 = vpack.c.bf16 %v1266_v42, %v1262_v41  ;;  %v1309_v37 = vld [vmem:[#allocation8 + $0x2f8] sm:$0xff]  ;;  %v1302_v41 = vld [vmem:[#allocation8 + $0x2c0] sm:$0xff] }
 0x19a   :  { %3235 = vmatpush1.bf16.msra.mxu1 %v3234_v51  ;;  %3109 = vmatprep.subr.bf16.mxu0 %v3108_v52  ;;  %v3254_v51 = vpack.c.bf16 %v1268_v45, %v1264_v43  ;;  %v3128_v52 = vpack.c.bf16 %v1275_v47, %v1271_v46  ;;  %v1306_v42 = vld [vmem:[#allocation8 + $0x2e0] sm:$0xff]  ;;  %v1304_v43 = vld [vmem:[#allocation8 + $0x2d0] sm:$0xff]  ;;  %v1311_v46 = vld [vmem:[#allocation8 + $0x308] sm:$0xff] }
 0x19b   :  { %3237 = vmatprep.subr.bf16.mxu1 %v3236_v56  ;;  %v3256_v56 = vpack.c.bf16 %v1277_v49, %v1273_v48  ;;  %v1308_v45 = vld [vmem:[#allocation8 + $0x2f0] sm:$0xff]  ;;  %v1315_v47 = vld [vmem:[#allocation8 + $0x328] sm:$0xff]  ;;  %v1313_v48 = vld [vmem:[#allocation8 + $0x318] sm:$0xff] }
 0x19c   :  { %v1317_v49 = vld [vmem:[#allocation8 + $0x338] sm:$0xff] }
 0x19d   :  { %3111 = vmatpush1.bf16.msra.mxu0 %v3110_v61  ;;  %v3130_v61 = vpack.c.bf16 %v1274_v54, %v1270_v53  ;;  %v1310_v53 = vld [vmem:[#allocation8 + $0x300] sm:$0xff] }
 0x19e   :  { %3239 = vmatpush1.bf16.msra.mxu1 %v3238_v62  ;;  %3113 = vmatprep.subr.bf16.mxu0 %v3112_v63  ;;  %v3258_v62 = vpack.c.bf16 %v1276_v57, %v1272_v55  ;;  %v3132_v63 = vpack.c.bf16 %v1283_v59, %v1279_v58  ;;  %v1314_v54 = vld [vmem:[#allocation8 + $0x320] sm:$0xff]  ;;  %v1312_v55 = vld [vmem:[#allocation8 + $0x310] sm:$0xff]  ;;  %v1319_v58 = vld [vmem:[#allocation8 + $0x348] sm:$0xff] }
 0x19f   :  { %3241 = vmatprep.subr.bf16.mxu1 %v3240_v2  ;;  %v3260_v2 = vpack.c.bf16 %v1285_v16, %v1281_v60  ;;  %v1316_v57 = vld [vmem:[#allocation8 + $0x330] sm:$0xff]  ;;  %v1323_v59 = vld [vmem:[#allocation8 + $0x368] sm:$0xff]  ;;  %v1321_v60 = vld [vmem:[#allocation8 + $0x358] sm:$0xff] }
 0x1a0   :  { %v1325_v16 = vld [vmem:[#allocation8 + $0x378] sm:$0xff] }
 0x1a1   :  { %3115 = vmatpush1.bf16.msra.mxu0 %v3114_v9  ;;  %v3134_v9 = vpack.c.bf16 %v1282_v0, %v1278_v24  ;;  %v1318_v24 = vld [vmem:[#allocation8 + $0x340] sm:$0xff] }
 0x1a2   :  { %3243 = vmatpush1.bf16.msra.mxu1 %v3242_v10  ;;  %3117 = vmatprep.subr.bf16.mxu0 %v3116_v11  ;;  %v3262_v10 = vpack.c.bf16 %v1284_v3, %v1280_v1  ;;  %v3136_v11 = vpack.c.bf16 %v1291_v6, %v1287_v5  ;;  %v1322_v0 = vld [vmem:[#allocation8 + $0x360] sm:$0xff]  ;;  %v1320_v1 = vld [vmem:[#allocation8 + $0x350] sm:$0xff]  ;;  %v1327_v5 = vld [vmem:[#allocation8 + $0x388] sm:$0xff] }
 0x1a3   :  { %3245 = vmatprep.subr.bf16.mxu1 %v3244_v15  ;;  %v3264_v15 = vpack.c.bf16 %v1293_v8, %v1289_v7  ;;  %v1324_v3 = vld [vmem:[#allocation8 + $0x370] sm:$0xff]  ;;  %v1331_v6 = vld [vmem:[#allocation8 + $0x3a8] sm:$0xff]  ;;  %v1329_v7 = vld [vmem:[#allocation8 + $0x398] sm:$0xff] }
 0x1a4   :  { %v1333_v8 = vld [vmem:[#allocation8 + $0x3b8] sm:$0xff] }
 0x1a5   :  { %3119 = vmatpush1.bf16.msra.mxu0 %v3118_v25  ;;  %v3138_v25 = vpack.c.bf16 %v1290_v13, %v1286_v12  ;;  %v1326_v12 = vld [vmem:[#allocation8 + $0x380] sm:$0xff] }
 0x1a6   :  { %3247 = vmatpush1.bf16.msra.mxu1 %v3246_v26  ;;  %3121 = vmatprep.subr.bf16.mxu0 %v3120_v27  ;;  %v3266_v26 = vpack.c.bf16 %v1292_v17, %v1288_v14  ;;  %v3140_v27 = vpack.c.bf16 %v1299_v20, %v1295_v19  ;;  %v1330_v13 = vld [vmem:[#allocation8 + $0x3a0] sm:$0xff]  ;;  %v1328_v14 = vld [vmem:[#allocation8 + $0x390] sm:$0xff]  ;;  %v1335_v19 = vld [vmem:[#allocation8 + $0x3c8] sm:$0xff] }
 0x1a7   :  { %3249 = vmatprep.subr.bf16.mxu1 %v3248_v31  ;;  %v3268_v31 = vpack.c.bf16 %v1301_v23, %v1297_v22  ;;  %v1332_v17 = vld [vmem:[#allocation8 + $0x3b0] sm:$0xff]  ;;  %v1339_v20 = vld [vmem:[#allocation8 + $0x3e8] sm:$0xff]  ;;  %v1337_v22 = vld [vmem:[#allocation8 + $0x3d8] sm:$0xff] }
 0x1a8   :  { %v1341_v23 = vld [vmem:[#allocation8 + $0x3f8] sm:$0xff] }
 0x1a9   :  { %3123 = vmatpush1.bf16.msra.mxu0 %v3122_v38  ;;  %v3142_v38 = vpack.c.bf16 %v1298_v29, %v1294_v28  ;;  %v1334_v28 = vld [vmem:[#allocation8 + $0x3c0] sm:$0xff] }
 0x1aa   :  { %3251 = vmatpush1.bf16.msra.mxu1 %v3250_v39  ;;  %3125 = vmatprep.subr.bf16.mxu0 %v3124_v40  ;;  %v3270_v39 = vpack.c.bf16 %v1300_v32, %v1296_v30  ;;  %v3144_v40 = vpack.c.bf16 %v1307_v35, %v1303_v34  ;;  %v1338_v29 = vld [vmem:[#allocation8 + $0x3e0] sm:$0xff]  ;;  %v1336_v30 = vld [vmem:[#allocation8 + $0x3d0] sm:$0xff]  ;;  %v1343_v34 = vld [vmem:[#allocation8 + $0x408] sm:$0xff] }
 0x1ab   :  { %3253 = vmatprep.subr.bf16.mxu1 %v3252_v44  ;;  %v3272_v44 = vpack.c.bf16 %v1309_v37, %v1305_v36  ;;  %v1340_v32 = vld [vmem:[#allocation8 + $0x3f0] sm:$0xff]  ;;  %v1347_v35 = vld [vmem:[#allocation8 + $0x428] sm:$0xff]  ;;  %v1471_v36 = vcombine.high %v4054_v21, %v4054_v21  ;;  %v1345_v37 = vld [vmem:[#allocation8 + $0x418] sm:$0xff] }
 0x1ac   :  { %v1353_v21 = vld [vmem:[#allocation8 + $0x458] sm:$0xff] }
 0x1ad   :  { %3127 = vmatpush1.bf16.msra.mxu0 %v3126_v50  ;;  %v3146_v50 = vpack.c.bf16 %v1306_v42, %v1302_v41  ;;  %v3164_v41 = vpack.c.bf16 %v1347_v35, %v1343_v34  ;;  %v1342_v42 = vld [vmem:[#allocation8 + $0x400] sm:$0xff]  ;;  %v1383_v34 = vld [vmem:[#allocation8 + $0x548] sm:$0xff] }
 0x1ae   :  { %3255 = vmatpush1.bf16.msra.mxu1 %v3254_v51  ;;  %3129 = vmatprep.subr.bf16.mxu0 %v3128_v52  ;;  %v3274_v51 = vpack.c.bf16 %v1308_v45, %v1304_v43  ;;  %v3148_v52 = vpack.c.bf16 %v1315_v47, %v1311_v46  ;;  %v1346_v43 = vld [vmem:[#allocation8 + $0x420] sm:$0xff]  ;;  %v1348_v46 = vld [vmem:[#allocation8 + $0x430] sm:$0xff]  ;;  %v1351_v47 = vld [vmem:[#allocation8 + $0x448] sm:$0xff] }
 0x1af   :  { %3257 = vmatprep.subr.bf16.mxu1 %v3256_v56  ;;  %v3276_v56 = vpack.c.bf16 %v1317_v49, %v1313_v48  ;;  %v1355_v48 = vld [vmem:[#allocation8 + $0x468] sm:$0xff]  ;;  %v4065_v49 = vrot.slane %v1471_v36, %v4052_v18  ;;  %v1385_v36 = vld [vmem:[#allocation8 + $0x558] sm:$0xff] }
 0x1b0   :  { %v1387_v35 = vld [vmem:[#allocation8 + $0x568] sm:$0xff] }
 0x1b1   :  { %3131 = vmatpush1.bf16.msra.mxu0 %v3130_v61  ;;  %v3150_v61 = vpack.c.bf16 %v1314_v54, %v1310_v53  ;;  %v3168_v53 = vpack.c.bf16 %v1355_v48, %v1351_v47  ;;  %v1350_v54 = vld [vmem:[#allocation8 + $0x440] sm:$0xff]  ;;  %v1487_v18 = vcombine.high %v4065_v49, %v4065_v49  ;;  %v1395_v47 = vld [vmem:[#allocation8 + $0x5a8] sm:$0xff]  ;;  %v1393_v48 = vld [vmem:[#allocation8 + $0x598] sm:$0xff] }
 0x1b2   :  { %3259 = vmatpush1.bf16.msra.mxu1 %v3258_v62  ;;  %3133 = vmatprep.subr.bf16.mxu0 %v3132_v63  ;;  %v3278_v62 = vpack.c.bf16 %v1316_v57, %v1312_v55  ;;  %v3152_v63 = vpack.c.bf16 %v1323_v59, %v1319_v58  ;;  %v1354_v55 = vld [vmem:[#allocation8 + $0x460] sm:$0xff]  ;;  %v1356_v58 = vld [vmem:[#allocation8 + $0x470] sm:$0xff]  ;;  %v1359_v59 = vld [vmem:[#allocation8 + $0x488] sm:$0xff] }
 0x1b3   :  { %3261 = vmatprep.subr.bf16.mxu1 %v3260_v2  ;;  %v3280_v2 = vpack.c.bf16 %v1325_v16, %v1321_v60  ;;  %v1363_v60 = vld [vmem:[#allocation8 + $0x4a8] sm:$0xff]  ;;  %v1361_v16 = vld [vmem:[#allocation8 + $0x498] sm:$0xff] }
 0x1b5   :  { %3135 = vmatpush1.bf16.msra.mxu0 %v3134_v9  ;;  %v3154_v9 = vpack.c.bf16 %v1322_v0, %v1318_v24  ;;  %v3172_v24 = vpack.c.bf16 %v1363_v60, %v1359_v59  ;;  %v1358_v0 = vld [vmem:[#allocation8 + $0x480] sm:$0xff]  ;;  %v1399_v59 = vld [vmem:[#allocation8 + $0x5c8] sm:$0xff] }
 0x1b6   :  { %3263 = vmatpush1.bf16.msra.mxu1 %v3262_v10  ;;  %3137 = vmatprep.subr.bf16.mxu0 %v3136_v11  ;;  %v3282_v10 = vpack.c.bf16 %v1324_v3, %v1320_v1  ;;  %v3156_v11 = vpack.c.bf16 %v1331_v6, %v1327_v5  ;;  %v1362_v1 = vld [vmem:[#allocation8 + $0x4a0] sm:$0xff]  ;;  %v1364_v5 = vld [vmem:[#allocation8 + $0x4b0] sm:$0xff]  ;;  %v1367_v6 = vld [vmem:[#allocation8 + $0x4c8] sm:$0xff] }
 0x1b7   :  { %3265 = vmatprep.subr.bf16.mxu1 %v3264_v15  ;;  %v3284_v15 = vpack.c.bf16 %v1333_v8, %v1329_v7  ;;  %v1371_v7 = vld [vmem:[#allocation8 + $0x4e8] sm:$0xff]  ;;  %v1369_v8 = vld [vmem:[#allocation8 + $0x4d8] sm:$0xff] }
 0x1b8   :  { %v1403_v60 = vld [vmem:[#allocation8 + $0x5e8] sm:$0xff] }
 0x1b9   :  { %3139 = vmatpush1.bf16.msra.mxu0 %v3138_v25  ;;  %v3158_v25 = vpack.c.bf16 %v1330_v13, %v1326_v12  ;;  %v1366_v12 = vld [vmem:[#allocation8 + $0x4c0] sm:$0xff] }
 0x1ba   :  { %3267 = vmatpush1.bf16.msra.mxu1 %v3266_v26  ;;  %3141 = vmatprep.subr.bf16.mxu0 %v3140_v27  ;;  %v3286_v26 = vpack.c.bf16 %v1332_v17, %v1328_v14  ;;  %v3160_v27 = vpack.c.bf16 %v1339_v20, %v1335_v19  ;;  %v1370_v13 = vld [vmem:[#allocation8 + $0x4e0] sm:$0xff]  ;;  %v1368_v14 = vld [vmem:[#allocation8 + $0x4d0] sm:$0xff]  ;;  %v1375_v19 = vld [vmem:[#allocation8 + $0x508] sm:$0xff] }
 0x1bb   :  { %3269 = vmatprep.subr.bf16.mxu1 %v3268_v31  ;;  %v3288_v31 = vpack.c.bf16 %v1341_v23, %v1337_v22  ;;  %v1372_v17 = vld [vmem:[#allocation8 + $0x4f0] sm:$0xff]  ;;  %v1379_v20 = vld [vmem:[#allocation8 + $0x528] sm:$0xff]  ;;  %v1377_v22 = vld [vmem:[#allocation8 + $0x518] sm:$0xff] }
 0x1bc   :  { %v1381_v23 = vld [vmem:[#allocation8 + $0x538] sm:$0xff] }
 0x1bd   :  { %3143 = vmatpush1.bf16.msra.mxu0 %v3142_v38  ;;  %v1349_v38 = vld [vmem:[#allocation8 + $0x438] sm:$0xff] }
 0x1be   :  { %3271 = vmatpush1.bf16.msra.mxu1 %v3270_v39  ;;  %3145 = vmatprep.subr.bf16.mxu0 %v3144_v40  ;;  %v3162_v39 = vpack.c.bf16 %v1338_v29, %v1334_v28  ;;  %v3290_v40 = vpack.c.bf16 %v1340_v32, %v1336_v30  ;;  %v3292_v45 = vpack.c.bf16 %v1349_v38, %v1345_v37  ;;  %v1374_v28 = vld [vmem:[#allocation8 + $0x500] sm:$0xff]  ;;  %v1376_v30 = vld [vmem:[#allocation8 + $0x510] sm:$0xff]  ;;  %v1389_v37 = vld [vmem:[#allocation8 + $0x578] sm:$0xff] }
 0x1bf   :  { %3273 = vmatprep.subr.bf16.mxu1 %v3272_v44  ;;  %v1344_v44 = vld [vmem:[#allocation8 + $0x410] sm:$0xff]  ;;  %v1378_v29 = vld [vmem:[#allocation8 + $0x520] sm:$0xff] }
 0x1c0   :  { %v1380_v32 = vld [vmem:[#allocation8 + $0x530] sm:$0xff]  ;;  %v3182_v38 = vpack.c.bf16 %v1378_v29, %v1374_v28 }
 0x1c1   :  { %3147 = vmatpush1.bf16.msra.mxu0 %v3146_v50  ;;  %v1357_v50 = vld [vmem:[#allocation8 + $0x478] sm:$0xff] }
 0x1c2   :  { %3275 = vmatpush1.bf16.msra.mxu1 %v3274_v51  ;;  %3149 = vmatprep.subr.bf16.mxu0 %v3148_v52  ;;  %v3166_v51 = vpack.c.bf16 %v1346_v43, %v1342_v42  ;;  %v3294_v52 = vpack.c.bf16 %v1348_v46, %v1344_v44  ;;  %v3296_v57 = vpack.c.bf16 %v1357_v50, %v1353_v21  ;;  %v1386_v42 = vld [vmem:[#allocation8 + $0x560] sm:$0xff]  ;;  %v1384_v43 = vld [vmem:[#allocation8 + $0x550] sm:$0xff]  ;;  %v1391_v46 = vld [vmem:[#allocation8 + $0x588] sm:$0xff] }
 0x1c3   :  { %3277 = vmatprep.subr.bf16.mxu1 %v3276_v56  ;;  %v1352_v56 = vld [vmem:[#allocation8 + $0x450] sm:$0xff]  ;;  %v3312_v44 = vpack.c.bf16 %v1389_v37, %v1385_v36  ;;  %v1397_v21 = vld [vmem:[#allocation8 + $0x5b8] sm:$0xff]  ;;  %v1423_v36 = vld [vmem:[#allocation8 + $0x688] sm:$0xff] }
 0x1c4   :  { %v1427_v37 = vld [vmem:[#allocation8 + $0x6a8] sm:$0xff] }
 0x1c5   :  { %3151 = vmatpush1.bf16.msra.mxu0 %v3150_v61  ;;  %v1365_v61 = vld [vmem:[#allocation8 + $0x4b8] sm:$0xff] }
 0x1c6   :  { %3279 = vmatpush1.bf16.msra.mxu1 %v3278_v62  ;;  %3153 = vmatprep.subr.bf16.mxu0 %v3152_v63  ;;  %v3170_v62 = vpack.c.bf16 %v1354_v55, %v1350_v54  ;;  %v3298_v63 = vpack.c.bf16 %v1356_v58, %v1352_v56  ;;  %v3300_v3 = vpack.c.bf16 %v1365_v61, %v1361_v16  ;;  %v1394_v54 = vld [vmem:[#allocation8 + $0x5a0] sm:$0xff]  ;;  %v1392_v55 = vld [vmem:[#allocation8 + $0x590] sm:$0xff]  ;;  %v1401_v61 = vld [vmem:[#allocation8 + $0x5d8] sm:$0xff] }
 0x1c7   :  { %3281 = vmatprep.subr.bf16.mxu1 %v3280_v2  ;;  %v1360_v2 = vld [vmem:[#allocation8 + $0x490] sm:$0xff] }
 0x1c8   :  { %v1396_v58 = vld [vmem:[#allocation8 + $0x5b0] sm:$0xff] }
 0x1c9   :  { %3155 = vmatpush1.bf16.msra.mxu0 %v3154_v9  ;;  %v1373_v9 = vld [vmem:[#allocation8 + $0x4f8] sm:$0xff] }
 0x1ca   :  { %3283 = vmatpush1.bf16.msra.mxu1 %v3282_v10  ;;  %3157 = vmatprep.subr.bf16.mxu0 %v3156_v11  ;;  %v3174_v10 = vpack.c.bf16 %v1362_v1, %v1358_v0  ;;  %v3176_v11 = vpack.c.bf16 %v1371_v7, %v1367_v6  ;;  %v3318_v0 = vpack.c.bf16 %v1396_v58, %v1392_v55  ;;  %v1404_v7 = vld [vmem:[#allocation8 + $0x5f0] sm:$0xff]  ;;  %v1430_v55 = vld [vmem:[#allocation8 + $0x6c0] sm:$0xff] }
 0x1cb   :  { %3285 = vmatprep.subr.bf16.mxu1 %v3284_v15  ;;  %v3304_v15 = vpack.c.bf16 %v1373_v9, %v1369_v8  ;;  %v3192_v1 = vpack.c.bf16 %v1403_v60, %v1399_v59  ;;  %v1407_v8 = vld [vmem:[#allocation8 + $0x608] sm:$0xff]  ;;  %v1432_v58 = vld [vmem:[#allocation8 + $0x6d0] sm:$0xff] }
 0x1cc   :  { %v1411_v9 = vld [vmem:[#allocation8 + $0x628] sm:$0xff]  ;;  %v1436_v60 = vld [vmem:[#allocation8 + $0x6f0] sm:$0xff] }
 0x1cd   :  { %3159 = vmatpush1.bf16.msra.mxu0 %v3158_v25  ;;  %v3178_v25 = vpack.c.bf16 %v1370_v13, %v1366_v12  ;;  %v3196_v13 = vpack.c.bf16 %v1411_v9, %v1407_v8  ;;  %v1444_v9 = vld [vmem:[#allocation8 + $0x730] sm:$0xff] }
 0x1ce   :  { %3287 = vmatpush1.bf16.msra.mxu1 %v3286_v26  ;;  %3161 = vmatprep.subr.bf16.mxu0 %v3160_v27  ;;  %v3306_v26 = vpack.c.bf16 %v1372_v17, %v1368_v14  ;;  %v3180_v27 = vpack.c.bf16 %v1379_v20, %v1375_v19  ;;  %v1406_v14 = vld [vmem:[#allocation8 + $0x600] sm:$0xff]  ;;  %v1408_v17 = vld [vmem:[#allocation8 + $0x610] sm:$0xff] }
 0x1cf   :  { %3289 = vmatprep.subr.bf16.mxu1 %v3288_v31  ;;  %v3308_v31 = vpack.c.bf16 %v1381_v23, %v1377_v22  ;;  %v1412_v20 = vld [vmem:[#allocation8 + $0x630] sm:$0xff]  ;;  %v1415_v22 = vld [vmem:[#allocation8 + $0x648] sm:$0xff] }
 0x1d0   :  { %v1419_v23 = vld [vmem:[#allocation8 + $0x668] sm:$0xff]  ;;  %v3326_v28 = vpack.c.bf16 %v1412_v20, %v1408_v17  ;;  %v1446_v17 = vld [vmem:[#allocation8 + $0x740] sm:$0xff]  ;;  %v1448_v20 = vld [vmem:[#allocation8 + $0x750] sm:$0xff] }
 0x1d1   :  { %3163 = vmatpush1.bf16.msra.mxu0 %v3162_v39  ;;  %v3310_v39 = vpack.c.bf16 %v1380_v32, %v1376_v30  ;;  %v3200_v29 = vpack.c.bf16 %v1419_v23, %v1415_v22  ;;  %v1414_v30 = vld [vmem:[#allocation8 + $0x640] sm:$0xff]  ;;  %v1416_v32 = vld [vmem:[#allocation8 + $0x650] sm:$0xff] }
 0x1d2   :  { %3291 = vmatpush1.bf16.msra.mxu1 %v3290_v40  ;;  %3165 = vmatprep.subr.bf16.mxu0 %v3164_v41  ;;  %v3184_v40 = vpack.c.bf16 %v1387_v35, %v1383_v34  ;;  %v1382_v41 = vld [vmem:[#allocation8 + $0x540] sm:$0xff]  ;;  %v1420_v35 = vld [vmem:[#allocation8 + $0x670] sm:$0xff] }
 0x1d3   :  { %3293 = vmatprep.subr.bf16.mxu1 %v3292_v45  ;;  %v1388_v45 = vld [vmem:[#allocation8 + $0x570] sm:$0xff]  ;;  %v3186_v50 = vpack.c.bf16 %v1386_v42, %v1382_v41  ;;  %v3330_v41 = vpack.c.bf16 %v1420_v35, %v1416_v32  ;;  %v3204_v42 = vpack.c.bf16 %v1427_v37, %v1423_v36  ;;  %v1454_v32 = vld [vmem:[#allocation8 + $0x780] sm:$0xff] }
 0x1d4   :  { %1557 = vmatmul.mubr.f32.vlgmr.msra.gmra.mrb[4].mxu0 %v4058_v33  ;;  %v1452_v23 = vld [vmem:[#allocation8 + $0x770] sm:$0xff] }
 0x1d5   :  { %3167 = vmatpush1.bf16.msra.mxu0 %v3166_v51  ;;  %1699 = vmatmul.mubr.f32.vlgmr.msra.gmra.mrb[4].mxu1 %v4058_v33  ;;  %v3302_v33 = vpack.c.bf16 %v1364_v5, %v1360_v2  ;;  %v3314_v51 = vpack.c.bf16 %v1388_v45, %v1384_v43  ;;  %v1398_v2 = vld [vmem:[#allocation8 + $0x5c0] sm:$0xff]  ;;  %v1400_v5 = vld [vmem:[#allocation8 + $0x5d0] sm:$0xff] }
 0x1d6   :  { %3295 = vmatpush1.bf16.msra.mxu1 %v3294_v52  ;;  %3169 = vmatprep.subr.bf16.mxu0 %v3168_v53  ;;  %v3188_v52 = vpack.c.bf16 %v1395_v47, %v1391_v46  ;;  %v1390_v53 = vld [vmem:[#allocation8 + $0x580] sm:$0xff]  ;;  %v3322_v12 = vpack.c.bf16 %v1404_v7, %v1400_v5  ;;  %v1424_v45 = vld [vmem:[#allocation8 + $0x690] sm:$0xff] }
 0x1d7   :  { %3297 = vmatprep.subr.bf16.mxu1 %v3296_v57  ;;  %1627 = vmatprep.mubr.f32.mxu0 %v1487_v18  ;;  %v3316_v57 = vpack.c.bf16 %v1397_v21, %v1393_v48  ;;  %v1422_v43 = vld [vmem:[#allocation8 + $0x680] sm:$0xff]  ;;  %v1428_v47 = vld [vmem:[#allocation8 + $0x6b0] sm:$0xff]  ;;  %v1431_v48 = vld [vmem:[#allocation8 + $0x6c8] sm:$0xff] }
 0x1d8   :  { %1769 = vmatprep.mubr.f32.mxu1 %v1487_v18  ;;  %v1435_v21 = vld [vmem:[#allocation8 + $0x6e8] sm:$0xff]  ;;  %v1438_v5 = vld [vmem:[#allocation8 + $0x700] sm:$0xff]  ;;  %v1440_v7 = vld [vmem:[#allocation8 + $0x710] sm:$0xff] }
 0x1d9   :  { %3171 = vmatpush1.bf16.msra.mxu0 %v3170_v62  ;;  %v1405_v62 = vld [vmem:[#allocation8 + $0x5f8] sm:$0xff]  ;;  %v1456_v35 = vld [vmem:[#allocation8 + $0x790] sm:$0xff] }
 0x1da   :  { %3299 = vmatpush1.bf16.msra.mxu1 %v3298_v63  ;;  %3173 = vmatprep.subr.bf16.mxu0 %v3172_v24  ;;  %v3190_v24 = vpack.c.bf16 %v1394_v54, %v1390_v53  ;;  %v3320_v6 = vpack.c.bf16 %v1405_v62, %v1401_v61  ;;  %v3334_v53 = vpack.c.bf16 %v1428_v47, %v1424_v45  ;;  %v1439_v61 = vld [vmem:[#allocation8 + $0x708] sm:$0xff]  ;;  %v1460_v37 = vld [vmem:[#allocation8 + $0x7b0] sm:$0xff]  ;;  %v1462_v45 = vld [vmem:[#allocation8 + $0x7c0] sm:$0xff] }
 0x1db   :  { %3301 = vmatprep.subr.bf16.mxu1 %v3300_v3  ;;  %v1402_v3 = vld [vmem:[#allocation8 + $0x5e0] sm:$0xff]  ;;  %v3208_v54 = vpack.c.bf16 %v1435_v21, %v1431_v48  ;;  %v1443_v62 = vld [vmem:[#allocation8 + $0x728] sm:$0xff]  ;;  %v1464_v47 = vld [vmem:[#allocation8 + $0x7d0] sm:$0xff] }
 0x1dc   :  { %v1468_v21 = vld [vmem:[#allocation8 + $0x7f0] sm:$0xff] }
 0x1dd   :  { %3175 = vmatpush1.bf16.msra.mxu0 %v3174_v10  ;;  %v1409_v10 = vld [vmem:[#allocation8 + $0x618] sm:$0xff] }
 0x1de   :  { %3303 = vmatpush1.bf16.msra.mxu1 %v3302_v33  ;;  %3177 = vmatprep.subr.bf16.mxu0 %v3176_v11  ;;  %v1413_v33 = vld [vmem:[#allocation8 + $0x638] sm:$0xff]  ;;  %v3194_v11 = vpack.c.bf16 %v1402_v3, %v1398_v2  ;;  %v3338_v2 = vpack.c.bf16 %v1436_v60, %v1432_v58  ;;  %v3212_v3 = vpack.c.bf16 %v1443_v62, %v1439_v61  ;;  %v1973_v58 = vld [vmem:[#allocation10] sm:$0xff]  ;;  %v1975_v60 = vld [vmem:[#allocation10 + $0x10] sm:$0xff] }
 0x1df   :  { %3305 = vmatprep.subr.bf16.mxu1 %v3304_v15  ;;  %v1410_v15 = vld [vmem:[#allocation8 + $0x620] sm:$0xff]  ;;  %v3324_v19 = vpack.c.bf16 %v1413_v33, %v1409_v10  ;;  %v1447_v10 = vld [vmem:[#allocation8 + $0x748] sm:$0xff]  ;;  %v1979_v62 = vld [vmem:[#allocation10 + $0x30] sm:$0xff] }
 0x1e0   :  { %v1451_v33 = vld [vmem:[#allocation8 + $0x768] sm:$0xff] }
 0x1e1   :  { %3179 = vmatpush1.bf16.msra.mxu0 %v3178_v25  ;;  %v1417_v25 = vld [vmem:[#allocation8 + $0x658] sm:$0xff] }
 0x1e2   :  { %3307 = vmatpush1.bf16.msra.mxu1 %v3306_v26  ;;  %3181 = vmatprep.subr.bf16.mxu0 %v3180_v27  ;;  %v1421_v26 = vld [vmem:[#allocation8 + $0x678] sm:$0xff]  ;;  %v3198_v27 = vpack.c.bf16 %v1410_v15, %v1406_v14  ;;  %v3342_v14 = vpack.c.bf16 %v1444_v9, %v1440_v7  ;;  %v3216_v15 = vpack.c.bf16 %v1451_v33, %v1447_v10  ;;  %v1981_v7 = vld [vmem:[#allocation10 + $0x40] sm:$0xff]  ;;  %v1983_v9 = vld [vmem:[#allocation10 + $0x50] sm:$0xff] }
 0x1e3   :  { %3309 = vmatprep.subr.bf16.mxu1 %v3308_v31  ;;  %v1418_v31 = vld [vmem:[#allocation8 + $0x660] sm:$0xff]  ;;  %v3328_v34 = vpack.c.bf16 %v1421_v26, %v1417_v25  ;;  %v1455_v25 = vld [vmem:[#allocation8 + $0x788] sm:$0xff]  ;;  %v1987_v33 = vld [vmem:[#allocation10 + $0x70] sm:$0xff] }
 0x1e4   :  { %v1459_v26 = vld [vmem:[#allocation8 + $0x7a8] sm:$0xff] }
 0x1e5   :  { %3183 = vmatpush1.bf16.msra.mxu0 %v3182_v38  ;;  %v1425_v38 = vld [vmem:[#allocation8 + $0x698] sm:$0xff] }
 0x1e6   :  { %3311 = vmatpush1.bf16.msra.mxu1 %v3310_v39  ;;  %3185 = vmatprep.subr.bf16.mxu0 %v3184_v40  ;;  %v1429_v39 = vld [vmem:[#allocation8 + $0x6b8] sm:$0xff]  ;;  %v3202_v40 = vpack.c.bf16 %v1418_v31, %v1414_v30  ;;  %v3346_v30 = vpack.c.bf16 %v1452_v23, %v1448_v20  ;;  %v3220_v31 = vpack.c.bf16 %v1459_v26, %v1455_v25  ;;  %v1989_v20 = vld [vmem:[#allocation10 + $0x80] sm:$0xff]  ;;  %v1991_v23 = vld [vmem:[#allocation10 + $0x90] sm:$0xff] }
 0x1e7   :  { %v4071_v56 = vpop.f32.mrb[0].mxu0  ;;  %3313 = vmatprep.subr.bf16.mxu1 %v3312_v44  ;;  %v1426_v44 = vld [vmem:[#allocation8 + $0x6a0] sm:$0xff]  ;;  %v3332_v46 = vpack.c.bf16 %v1429_v39, %v1425_v38  ;;  %v1463_v38 = vld [vmem:[#allocation8 + $0x7c8] sm:$0xff]  ;;  %v1995_v26 = vld [vmem:[#allocation10 + $0xb0] sm:$0xff] }
 0x1e8   :  { %v4073_v18 = vpop.f32.mrb[0].mxu1  ;;  %v4075_v16 = vpop.f32.mrb[1].mxu0  ;;  %v1467_v39 = vld [vmem:[#allocation8 + $0x7e8] sm:$0xff] }
 0x1e9   :  { %v4077_v63 = vpop.f32.mrb[1].mxu1  ;;  %3187 = vmatpush1.bf16.msra.mxu0 %v3186_v50  ;;  %v1433_v50 = vld [vmem:[#allocation8 + $0x6d8] sm:$0xff] }
 0x1ea   :  { %3315 = vmatpush1.bf16.msra.mxu1 %v3314_v51  ;;  %3189 = vmatprep.subr.bf16.mxu0 %v3188_v52  ;;  %v1437_v51 = vld [vmem:[#allocation8 + $0x6f8] sm:$0xff]  ;;  %v3206_v52 = vpack.c.bf16 %v1426_v44, %v1422_v43  ;;  %v3350_v43 = vpack.c.bf16 %v1460_v37, %v1456_v35  ;;  %v3224_v44 = vpack.c.bf16 %v1467_v39, %v1463_v38  ;;  %v2001_v35 = vld [vmem:[#allocation10 + $0xe0] sm:$0xff]  ;;  %v2003_v38 = vld [vmem:[#allocation10 + $0xf0] sm:$0xff] }
 0x1eb   :  { %3317 = vmatprep.subr.bf16.mxu1 %v3316_v57  ;;  %v1434_v57 = vld [vmem:[#allocation8 + $0x6e0] sm:$0xff]  ;;  %v3336_v59 = vpack.c.bf16 %v1437_v51, %v1433_v50  ;;  %v1974_v50 = vld [vmem:[#allocation10 + $0x8] sm:$0xff] }
 0x1ec   :  { %v1978_v51 = vld [vmem:[#allocation10 + $0x28] sm:$0xff] }
 0x1ed   :  { %3191 = vmatpush1.bf16.msra.mxu0 %v3190_v24  ;;  %v1441_v24 = vld [vmem:[#allocation8 + $0x718] sm:$0xff]  ;;  %v2006_v39 = vld [vmem:[#allocation10 + $0x108] sm:$0xff] }
 0x1ee   :  { %3319 = vmatpush1.bf16.msra.mxu1 %v3318_v0  ;;  %3193 = vmatprep.subr.bf16.mxu0 %v3192_v1  ;;  %v1445_v0 = vld [vmem:[#allocation8 + $0x738] sm:$0xff]  ;;  %v3210_v1 = vpack.c.bf16 %v1434_v57, %v1430_v55  ;;  %v3354_v55 = vpack.c.bf16 %v1468_v21, %v1464_v47  ;;  %v3356_v57 = vpack.c.bf16 %v1978_v51, %v1974_v50  ;;  %v2009_v47 = vld [vmem:[#allocation10 + $0x120] sm:$0xff]  ;;  %v2011_v50 = vld [vmem:[#allocation10 + $0x130] sm:$0xff] }
 0x1ef   :  { %3321 = vmatprep.subr.bf16.mxu1 %v3320_v6  ;;  %v1442_v6 = vld [vmem:[#allocation8 + $0x720] sm:$0xff]  ;;  %v3340_v8 = vpack.c.bf16 %v1445_v0, %v1441_v24  ;;  %v1982_v24 = vld [vmem:[#allocation10 + $0x48] sm:$0xff] }
 0x1f0   :  { %v1986_v0 = vld [vmem:[#allocation10 + $0x68] sm:$0xff] }
 0x1f1   :  { %3195 = vmatpush1.bf16.msra.mxu0 %v3194_v11  ;;  %v1449_v11 = vld [vmem:[#allocation8 + $0x758] sm:$0xff]  ;;  %v2014_v51 = vld [vmem:[#allocation10 + $0x148] sm:$0xff] }
 0x1f2   :  { %3323 = vmatpush1.bf16.msra.mxu1 %v3322_v12  ;;  %3197 = vmatprep.subr.bf16.mxu0 %v3196_v13  ;;  %v1453_v12 = vld [vmem:[#allocation8 + $0x778] sm:$0xff]  ;;  %v3214_v13 = vpack.c.bf16 %v1442_v6, %v1438_v5  ;;  %v3486_v5 = vpack.c.bf16 %v1979_v62, %v1975_v60  ;;  %v3360_v6 = vpack.c.bf16 %v1986_v0, %v1982_v24  ;;  %v2017_v60 = vld [vmem:[#allocation10 + $0x160] sm:$0xff]  ;;  %v2019_v24 = vld [vmem:[#allocation10 + $0x170] sm:$0xff] }
 0x1f3   :  { %3325 = vmatprep.subr.bf16.mxu1 %v3324_v19  ;;  %v1450_v19 = vld [vmem:[#allocation8 + $0x760] sm:$0xff]  ;;  %v3344_v22 = vpack.c.bf16 %v1453_v12, %v1449_v11  ;;  %v1990_v11 = vld [vmem:[#allocation10 + $0x88] sm:$0xff] }
 0x1f4   :  { %v1994_v12 = vld [vmem:[#allocation10 + $0xa8] sm:$0xff] }
 0x1f5   :  { %3199 = vmatpush1.bf16.msra.mxu0 %v3198_v27  ;;  %v1457_v27 = vld [vmem:[#allocation8 + $0x798] sm:$0xff]  ;;  %v2022_v0 = vld [vmem:[#allocation10 + $0x188] sm:$0xff] }
 0x1f6   :  { %3327 = vmatpush1.bf16.msra.mxu1 %v3326_v28  ;;  %3201 = vmatprep.subr.bf16.mxu0 %v3200_v29  ;;  %v1461_v28 = vld [vmem:[#allocation8 + $0x7b8] sm:$0xff]  ;;  %v3218_v29 = vpack.c.bf16 %v1450_v19, %v1446_v17  ;;  %v3490_v17 = vpack.c.bf16 %v1987_v33, %v1983_v9  ;;  %v3364_v19 = vpack.c.bf16 %v1994_v12, %v1990_v11  ;;  %v2025_v9 = vld [vmem:[#allocation10 + $0x1a0] sm:$0xff]  ;;  %v2027_v11 = vld [vmem:[#allocation10 + $0x1b0] sm:$0xff] }
 0x1f7   :  { %3329 = vmatprep.subr.bf16.mxu1 %v3328_v34  ;;  %v1458_v34 = vld [vmem:[#allocation8 + $0x7a0] sm:$0xff]  ;;  %v3348_v36 = vpack.c.bf16 %v1461_v28, %v1457_v27  ;;  %v1998_v27 = vld [vmem:[#allocation10 + $0xc8] sm:$0xff] }
 0x1f8   :  { %v2002_v28 = vld [vmem:[#allocation10 + $0xe8] sm:$0xff] }
 0x1f9   :  { %3203 = vmatpush1.bf16.msra.mxu0 %v3202_v40  ;;  %v1465_v40 = vld [vmem:[#allocation8 + $0x7d8] sm:$0xff]  ;;  %v2030_v12 = vld [vmem:[#allocation10 + $0x1c8] sm:$0xff] }
 0x1fa   :  { %3331 = vmatpush1.bf16.msra.mxu1 %v3330_v41  ;;  %3205 = vmatprep.subr.bf16.mxu0 %v3204_v42  ;;  %v1469_v41 = vld [vmem:[#allocation8 + $0x7f8] sm:$0xff]  ;;  %v3222_v42 = vpack.c.bf16 %v1458_v34, %v1454_v32  ;;  %v3368_v32 = vpack.c.bf16 %v2002_v28, %v1998_v27  ;;  %v1997_v34 = vld [vmem:[#allocation10 + $0xc0] sm:$0xff]  ;;  %v2035_v27 = vld [vmem:[#allocation10 + $0x1f0] sm:$0xff] }
 0x1fb   :  { %3333 = vmatprep.subr.bf16.mxu1 %v3332_v46  ;;  %v1466_v46 = vld [vmem:[#allocation8 + $0x7e0] sm:$0xff]  ;;  %v3352_v48 = vpack.c.bf16 %v1469_v41, %v1465_v40  ;;  %v2010_v40 = vld [vmem:[#allocation10 + $0x128] sm:$0xff]  ;;  %v2008_v41 = vld [vmem:[#allocation10 + $0x118] sm:$0xff] }
 0x1fc   :  { %v2038_v28 = vld [vmem:[#allocation10 + $0x208] sm:$0xff] }
 0x1fd   :  { %3207 = vmatpush1.bf16.msra.mxu0 %v3206_v52  ;;  %v1976_v52 = vld [vmem:[#allocation10 + $0x18] sm:$0xff] }
 0x1fe   :  { %3335 = vmatpush1.bf16.msra.mxu1 %v3334_v53  ;;  %3209 = vmatprep.subr.bf16.mxu0 %v3208_v54  ;;  %v1980_v53 = vld [vmem:[#allocation10 + $0x38] sm:$0xff]  ;;  %v3226_v54 = vpack.c.bf16 %v1466_v46, %v1462_v45  ;;  %v3372_v45 = vpack.c.bf16 %v2010_v40, %v2006_v39  ;;  %v2005_v46 = vld [vmem:[#allocation10 + $0x100] sm:$0xff]  ;;  %v2043_v39 = vld [vmem:[#allocation10 + $0x230] sm:$0xff] }
 0x1ff   :  { %3337 = vmatprep.subr.bf16.mxu1 %v3336_v59  ;;  %v1977_v59 = vld [vmem:[#allocation10 + $0x20] sm:$0xff]  ;;  %v3484_v61 = vpack.c.bf16 %v1980_v53, %v1976_v52  ;;  %v2018_v52 = vld [vmem:[#allocation10 + $0x168] sm:$0xff]  ;;  %v2016_v53 = vld [vmem:[#allocation10 + $0x158] sm:$0xff] }
 0x200   :  { %v2046_v40 = vld [vmem:[#allocation10 + $0x248] sm:$0xff] }
 0x201   :  { %3211 = vmatpush1.bf16.msra.mxu0 %v3210_v1  ;;  %v1984_v1 = vld [vmem:[#allocation10 + $0x58] sm:$0xff] }
 0x202   :  { %3339 = vmatpush1.bf16.msra.mxu1 %v3338_v2  ;;  %3213 = vmatprep.subr.bf16.mxu0 %v3212_v3  ;;  %v1988_v2 = vld [vmem:[#allocation10 + $0x78] sm:$0xff]  ;;  %v3358_v3 = vpack.c.bf16 %v1977_v59, %v1973_v58  ;;  %v3376_v58 = vpack.c.bf16 %v2018_v52, %v2014_v51  ;;  %v2013_v59 = vld [vmem:[#allocation10 + $0x140] sm:$0xff]  ;;  %v2051_v51 = vld [vmem:[#allocation10 + $0x270] sm:$0xff] }
 0x203   :  { %3341 = vmatprep.subr.bf16.mxu1 %v3340_v8  ;;  %v1985_v8 = vld [vmem:[#allocation10 + $0x60] sm:$0xff]  ;;  %v3488_v10 = vpack.c.bf16 %v1988_v2, %v1984_v1  ;;  %v2026_v1 = vld [vmem:[#allocation10 + $0x1a8] sm:$0xff]  ;;  %v2024_v2 = vld [vmem:[#allocation10 + $0x198] sm:$0xff] }
 0x204   :  { %v2054_v52 = vld [vmem:[#allocation10 + $0x288] sm:$0xff] }
 0x205   :  { %3215 = vmatpush1.bf16.msra.mxu0 %v3214_v13  ;;  %v1992_v13 = vld [vmem:[#allocation10 + $0x98] sm:$0xff] }
 0x206   :  { %3343 = vmatpush1.bf16.msra.mxu1 %v3342_v14  ;;  %3217 = vmatprep.subr.bf16.mxu0 %v3216_v15  ;;  %v1996_v14 = vld [vmem:[#allocation10 + $0xb8] sm:$0xff]  ;;  %v3362_v15 = vpack.c.bf16 %v1985_v8, %v1981_v7  ;;  %v3380_v7 = vpack.c.bf16 %v2026_v1, %v2022_v0  ;;  %v2021_v8 = vld [vmem:[#allocation10 + $0x180] sm:$0xff]  ;;  %v2059_v0 = vld [vmem:[#allocation10 + $0x2b0] sm:$0xff] }
 0x207   :  { %3345 = vmatprep.subr.bf16.mxu1 %v3344_v22  ;;  %v1993_v22 = vld [vmem:[#allocation10 + $0xa0] sm:$0xff]  ;;  %v3492_v25 = vpack.c.bf16 %v1996_v14, %v1992_v13  ;;  %v2034_v13 = vld [vmem:[#allocation10 + $0x1e8] sm:$0xff]  ;;  %v2032_v14 = vld [vmem:[#allocation10 + $0x1d8] sm:$0xff] }
 0x208   :  { %v2062_v1 = vld [vmem:[#allocation10 + $0x2c8] sm:$0xff] }
 0x209   :  { %3219 = vmatpush1.bf16.msra.mxu0 %v3218_v29  ;;  %v2000_v29 = vld [vmem:[#allocation10 + $0xd8] sm:$0xff] }
 0x20a   :  { %3347 = vmatpush1.bf16.msra.mxu1 %v3346_v30  ;;  %3221 = vmatprep.subr.bf16.mxu0 %v3220_v31  ;;  %v2004_v30 = vld [vmem:[#allocation10 + $0xf8] sm:$0xff]  ;;  %v3366_v31 = vpack.c.bf16 %v1993_v22, %v1989_v20  ;;  %v3384_v20 = vpack.c.bf16 %v2034_v13, %v2030_v12  ;;  %v2029_v22 = vld [vmem:[#allocation10 + $0x1c0] sm:$0xff]  ;;  %v2067_v12 = vld [vmem:[#allocation10 + $0x2f0] sm:$0xff] }
 0x20b   :  { %3349 = vmatprep.subr.bf16.mxu1 %v3348_v36  ;;  %v1999_v36 = vld [vmem:[#allocation10 + $0xd0] sm:$0xff]  ;;  %v3496_v37 = vpack.c.bf16 %v2004_v30, %v2000_v29  ;;  %v2042_v29 = vld [vmem:[#allocation10 + $0x228] sm:$0xff]  ;;  %v2040_v30 = vld [vmem:[#allocation10 + $0x218] sm:$0xff] }
 0x20d   :  { %3223 = vmatpush1.bf16.msra.mxu0 %v3222_v42  ;;  %v2012_v42 = vld [vmem:[#allocation10 + $0x138] sm:$0xff] }
 0x20e   :  { %3351 = vmatpush1.bf16.msra.mxu1 %v3350_v43  ;;  %3225 = vmatprep.subr.bf16.mxu0 %v3224_v44  ;;  %v3370_v43 = vpack.c.bf16 %v2001_v35, %v1997_v34  ;;  %v3498_v44 = vpack.c.bf16 %v2003_v38, %v1999_v36  ;;  %v3500_v21 = vpack.c.bf16 %v2012_v42, %v2008_v41  ;;  %v2037_v35 = vld [vmem:[#allocation10 + $0x200] sm:$0xff]  ;;  %v2050_v41 = vld [vmem:[#allocation10 + $0x268] sm:$0xff]  ;;  %v2048_v42 = vld [vmem:[#allocation10 + $0x258] sm:$0xff] }
 0x20f   :  { %3353 = vmatprep.subr.bf16.mxu1 %v3352_v48  ;;  %v2007_v48 = vld [vmem:[#allocation10 + $0x110] sm:$0xff]  ;;  %v3388_v34 = vpack.c.bf16 %v2042_v29, %v2038_v28  ;;  %v2041_v36 = vld [vmem:[#allocation10 + $0x220] sm:$0xff] }
 0x210   :  { %v2071_v29 = vld [vmem:[#allocation10 + $0x310] sm:$0xff] }
 0x211   :  { %3227 = vmatpush1.bf16.msra.mxu0 %v3226_v54  ;;  %v2020_v54 = vld [vmem:[#allocation10 + $0x178] sm:$0xff] }
 0x212   :  { %3355 = vmatpush1.bf16.msra.mxu1 %v3354_v55  ;;  %3357 = vmatprep.subr.bf16.mxu0 %v3356_v57  ;;  %v3374_v55 = vpack.c.bf16 %v2009_v47, %v2005_v46  ;;  %v3502_v57 = vpack.c.bf16 %v2011_v50, %v2007_v48  ;;  %v3504_v62 = vpack.c.bf16 %v2020_v54, %v2016_v53  ;;  %v2045_v47 = vld [vmem:[#allocation10 + $0x240] sm:$0xff]  ;;  %v2058_v53 = vld [vmem:[#allocation10 + $0x2a8] sm:$0xff]  ;;  %v2056_v54 = vld [vmem:[#allocation10 + $0x298] sm:$0xff] }
 0x213   :  { %3485 = vmatprep.subr.bf16.mxu1 %v3484_v61  ;;  %v2015_v61 = vld [vmem:[#allocation10 + $0x150] sm:$0xff]  ;;  %v3392_v46 = vpack.c.bf16 %v2050_v41, %v2046_v40  ;;  %v2049_v48 = vld [vmem:[#allocation10 + $0x260] sm:$0xff]  ;;  %v2080_v40 = vld [vmem:[#allocation10 + $0x358] sm:$0xff] }
 0x214   :  { %1628 = vmatmul.mubr.f32.vlgmr.msra.gmra.mrb[4].mxu0 %v4065_v49 }
 0x215   :  { %1770 = vmatmul.mubr.f32.vlgmr.msra.gmra.mrb[4].mxu1 %v4065_v49  ;;  %3359 = vmatpush1.bf16.msra.mxu0 %v3358_v3  ;;  %v3494_v49 = vpack.c.bf16 %v1995_v26, %v1991_v23  ;;  %v2028_v3 = vld [vmem:[#allocation10 + $0x1b8] sm:$0xff]  ;;  %v2033_v23 = vld [vmem:[#allocation10 + $0x1e0] sm:$0xff] }
 0x216   :  { %3487 = vmatpush1.bf16.msra.mxu1 %v3486_v5  ;;  %3361 = vmatprep.subr.bf16.mxu0 %v3360_v6  ;;  %v3378_v5 = vpack.c.bf16 %v2017_v60, %v2013_v59  ;;  %v3506_v6 = vpack.c.bf16 %v2019_v24, %v2015_v61  ;;  %v3508_v33 = vpack.c.bf16 %v2028_v3, %v2024_v2  ;;  %v2053_v60 = vld [vmem:[#allocation10 + $0x280] sm:$0xff]  ;;  %v2066_v2 = vld [vmem:[#allocation10 + $0x2e8] sm:$0xff]  ;;  %v2064_v3 = vld [vmem:[#allocation10 + $0x2d8] sm:$0xff] }
 0x217   :  { %3489 = vmatprep.subr.bf16.mxu1 %v3488_v10  ;;  %v2023_v10 = vld [vmem:[#allocation10 + $0x190] sm:$0xff]  ;;  %v3396_v59 = vpack.c.bf16 %v2058_v53, %v2054_v52  ;;  %v2057_v61 = vld [vmem:[#allocation10 + $0x2a0] sm:$0xff] }
 0x218   :  { %v2079_v52 = vld [vmem:[#allocation10 + $0x350] sm:$0xff] }
 0x219   :  { %3363 = vmatpush1.bf16.msra.mxu0 %v3362_v15  ;;  %v2036_v15 = vld [vmem:[#allocation10 + $0x1f8] sm:$0xff]  ;;  %v2083_v53 = vld [vmem:[#allocation10 + $0x370] sm:$0xff] }
 0x21a   :  { %3491 = vmatpush1.bf16.msra.mxu1 %v3490_v17  ;;  %3365 = vmatprep.subr.bf16.mxu0 %v3364_v19  ;;  %v3382_v17 = vpack.c.bf16 %v2025_v9, %v2021_v8  ;;  %v3510_v19 = vpack.c.bf16 %v2027_v11, %v2023_v10  ;;  %v3512_v26 = vpack.c.bf16 %v2036_v15, %v2032_v14  ;;  %v2061_v9 = vld [vmem:[#allocation10 + $0x2c0] sm:$0xff]  ;;  %v2063_v11 = vld [vmem:[#allocation10 + $0x2d0] sm:$0xff]  ;;  %v2070_v15 = vld [vmem:[#allocation10 + $0x308] sm:$0xff] }
 0x21b   :  { %3493 = vmatprep.subr.bf16.mxu1 %v3492_v25  ;;  %v2031_v25 = vld [vmem:[#allocation10 + $0x1d0] sm:$0xff]  ;;  %v3400_v8 = vpack.c.bf16 %v2066_v2, %v2062_v1  ;;  %v2065_v10 = vld [vmem:[#allocation10 + $0x2e0] sm:$0xff]  ;;  %v3530_v14 = vpack.c.bf16 %v2067_v12, %v2063_v11  ;;  %v2088_v1 = vld [vmem:[#allocation10 + $0x398] sm:$0xff] }
 0x21c   :  { %v3402_v13 = vpack.c.bf16 %v2065_v10, %v2061_v9  ;;  %v2089_v9 = vld [vmem:[#allocation10 + $0x3a0] sm:$0xff] }
 0x21d   :  { %3367 = vmatpush1.bf16.msra.mxu0 %v3366_v31  ;;  %v2044_v31 = vld [vmem:[#allocation10 + $0x238] sm:$0xff] }
 0x21e   :  { %3495 = vmatpush1.bf16.msra.mxu1 %v3494_v49  ;;  %3369 = vmatprep.subr.bf16.mxu0 %v3368_v32  ;;  %v3386_v49 = vpack.c.bf16 %v2033_v23, %v2029_v22  ;;  %v3514_v32 = vpack.c.bf16 %v2035_v27, %v2031_v25  ;;  %v3516_v38 = vpack.c.bf16 %v2044_v31, %v2040_v30  ;;  %v2076_v22 = vld [vmem:[#allocation10 + $0x338] sm:$0xff]  ;;  %v2069_v23 = vld [vmem:[#allocation10 + $0x300] sm:$0xff]  ;;  %v2075_v30 = vld [vmem:[#allocation10 + $0x330] sm:$0xff] }
 0x21f   :  { %3497 = vmatprep.subr.bf16.mxu1 %v3496_v37  ;;  %v2039_v37 = vld [vmem:[#allocation10 + $0x210] sm:$0xff]  ;;  %v2073_v25 = vld [vmem:[#allocation10 + $0x320] sm:$0xff] }
 0x220   :  { %v3406_v28 = vpack.c.bf16 %v2073_v25, %v2069_v23  ;;  %v2098_v23 = vld [vmem:[#allocation10 + $0x3e8] sm:$0xff]  ;;  %v2096_v25 = vld [vmem:[#allocation10 + $0x3d8] sm:$0xff] }
 0x221   :  { %3371 = vmatpush1.bf16.msra.mxu0 %v3370_v43  ;;  %v2052_v43 = vld [vmem:[#allocation10 + $0x278] sm:$0xff] }
 0x222   :  { %3499 = vmatpush1.bf16.msra.mxu1 %v3498_v44  ;;  %3373 = vmatprep.subr.bf16.mxu0 %v3372_v45  ;;  %v3390_v44 = vpack.c.bf16 %v2041_v36, %v2037_v35  ;;  %v3518_v45 = vpack.c.bf16 %v2043_v39, %v2039_v37  ;;  %v3520_v50 = vpack.c.bf16 %v2052_v43, %v2048_v42  ;;  %v2082_v39 = vld [vmem:[#allocation10 + $0x368] sm:$0xff]  ;;  %v4082_v42 = vsub.s32 0, %v4049_v4 }
 0x223   :  { %3501 = vmatprep.subr.bf16.mxu1 %v3500_v21  ;;  %v2047_v21 = vld [vmem:[#allocation10 + $0x250] sm:$0xff] }
 0x225   :  { %3375 = vmatpush1.bf16.msra.mxu0 %v3374_v55  ;;  %v2060_v55 = vld [vmem:[#allocation10 + $0x2b8] sm:$0xff] }
 0x226   :  { %3503 = vmatpush1.bf16.msra.mxu1 %v3502_v57  ;;  %3377 = vmatprep.subr.bf16.mxu0 %v3376_v58  ;;  %v3394_v57 = vpack.c.bf16 %v2049_v48, %v2045_v47  ;;  %v3522_v58 = vpack.c.bf16 %v2051_v51, %v2047_v21  ;;  %v3524_v24 = vpack.c.bf16 %v2060_v55, %v2056_v54  ;;  %v2081_v47 = vld [vmem:[#allocation10 + $0x360] sm:$0xff] }
 0x227   :  { %3505 = vmatprep.subr.bf16.mxu1 %v3504_v62  ;;  %v2055_v62 = vld [vmem:[#allocation10 + $0x290] sm:$0xff]  ;;  %v4084_v55 = vld [vmem:[#allocation11] sm:$0xf] }
 0x229   :  { %3379 = vmatpush1.bf16.msra.mxu0 %v3378_v5  ;;  %v2068_v5 = vld [vmem:[#allocation10 + $0x2f8] sm:$0xff] }
 0x22a   :  { %3507 = vmatpush1.bf16.msra.mxu1 %v3506_v6  ;;  %3381 = vmatprep.subr.bf16.mxu0 %v3380_v7  ;;  %v3398_v6 = vpack.c.bf16 %v2057_v61, %v2053_v60  ;;  %v3526_v7 = vpack.c.bf16 %v2059_v0, %v2055_v62  ;;  %v4090_v62 = vsub.s32 1, %v4049_v4  ;;  %v2090_v0 = vld [vmem:[#allocation10 + $0x3a8] sm:$0xff] }
 0x22b   :  { %3509 = vmatprep.subr.bf16.mxu1 %v3508_v33  ;;  %v3528_v33 = vpack.c.bf16 %v2068_v5, %v2064_v3  ;;  %v4093_v5 = vsub.s32 3, %v4049_v4 }
 0x22d   :  { %3383 = vmatpush1.bf16.msra.mxu0 %v3382_v17  ;;  %v2074_v17 = vld [vmem:[#allocation10 + $0x328] sm:$0xff] }
 0x22e   :  { %3511 = vmatpush1.bf16.msra.mxu1 %v3510_v19  ;;  %3385 = vmatprep.subr.bf16.mxu0 %v3384_v20  ;;  %v2072_v19 = vld [vmem:[#allocation10 + $0x318] sm:$0xff]  ;;  %v3404_v20 = vpack.c.bf16 %v2074_v17, %v2070_v15  ;;  %v1809_v17 = vrot.slane %v4084_v55, %v4082_v42 }
 0x22f   :  { %3513 = vmatprep.subr.bf16.mxu1 %v3512_v26  ;;  %v3532_v27 = vpack.c.bf16 %v2076_v22, %v2072_v19  ;;  %v2094_v22 = vld [vmem:[#allocation10 + $0x3c8] sm:$0xff] }
 0x231   :  { %3387 = vmatpush1.bf16.msra.mxu0 %v3386_v49 }
 0x232   :  { %3515 = vmatpush1.bf16.msra.mxu1 %v3514_v32  ;;  %3389 = vmatprep.subr.bf16.mxu0 %v3388_v34  ;;  %v3534_v34 = vpack.c.bf16 %v2075_v30, %v2071_v29  ;;  %v3416_v29 = vpack.c.bf16 %v2098_v23, %v2094_v22  ;;  %v2100_v30 = vld [vmem:[#allocation10 + $0x3f8] sm:$0xff] }
 0x233   :  { %3517 = vmatprep.subr.bf16.mxu1 %v3516_v38  ;;  %v2078_v38 = vld [vmem:[#allocation10 + $0x348] sm:$0xff] }
 0x235   :  { %3391 = vmatpush1.bf16.msra.mxu0 %v3390_v44  ;;  %v3408_v44 = vpack.c.bf16 %v2082_v39, %v2078_v38  ;;  %v2099_v38 = vld [vmem:[#allocation10 + $0x3f0] sm:$0xff] }
 0x236   :  { %3519 = vmatpush1.bf16.msra.mxu1 %v3518_v45  ;;  %3393 = vmatprep.subr.bf16.mxu0 %v3392_v46  ;;  %v2084_v45 = vld [vmem:[#allocation10 + $0x378] sm:$0xff]  ;;  %v2077_v46 = vld [vmem:[#allocation10 + $0x340] sm:$0xff] }
 0x237   :  { %3521 = vmatprep.subr.bf16.mxu1 %v3520_v50  ;;  %v3536_v50 = vpack.c.bf16 %v2084_v45, %v2080_v40  ;;  %v3410_v51 = vpack.c.bf16 %v2081_v47, %v2077_v46  ;;  %v1821_v46 = vrot.slane %v4084_v55, %v4093_v5 }
 0x239   :  { %3395 = vmatpush1.bf16.msra.mxu0 %v3394_v57  ;;  %v4087_v57 = vsub.s32 2, %v4049_v4 }
 0x23a   :  { %3523 = vmatpush1.bf16.msra.mxu1 %v3522_v58  ;;  %3397 = vmatprep.subr.bf16.mxu0 %v3396_v59  ;;  %v3538_v59 = vpack.c.bf16 %v2083_v53, %v2079_v52 }
 0x23b   :  { %3525 = vmatprep.subr.bf16.mxu1 %v3524_v24  ;;  %v2086_v24 = vld [vmem:[#allocation10 + $0x388] sm:$0xff] }
 0x23d   :  { %3399 = vmatpush1.bf16.msra.mxu0 %v3398_v6  ;;  %v3412_v6 = vpack.c.bf16 %v2090_v0, %v2086_v24 }
 0x23e   :  { %3527 = vmatpush1.bf16.msra.mxu1 %v3526_v7  ;;  %3401 = vmatprep.subr.bf16.mxu0 %v3400_v8  ;;  %v2092_v7 = vld [vmem:[#allocation10 + $0x3b8] sm:$0xff]  ;;  %v2085_v8 = vld [vmem:[#allocation10 + $0x380] sm:$0xff] }
 0x23f   :  { %3529 = vmatprep.subr.bf16.mxu1 %v3528_v33  ;;  %v3540_v11 = vpack.c.bf16 %v2092_v7, %v2088_v1  ;;  %v3414_v12 = vpack.c.bf16 %v2089_v9, %v2085_v8 }
 0x241   :  { %3403 = vmatpush1.bf16.msra.mxu0 %v3402_v13  ;;  %v2087_v13 = vld [vmem:[#allocation10 + $0x390] sm:$0xff] }
 0x242   :  { %3531 = vmatpush1.bf16.msra.mxu1 %v3530_v14  ;;  %3405 = vmatprep.subr.bf16.mxu0 %v3404_v20  ;;  %v2091_v14 = vld [vmem:[#allocation10 + $0x3b0] sm:$0xff] }
 0x243   :  { %3533 = vmatprep.subr.bf16.mxu1 %v3532_v27  ;;  %v3542_v20 = vpack.c.bf16 %v2091_v14, %v2087_v13  ;;  %v1817_v27 = vrot.slane %v4084_v55, %v4087_v57 }
 0x245   :  { %3407 = vmatpush1.bf16.msra.mxu0 %v3406_v28 }
 0x246   :  { %3535 = vmatpush1.bf16.msra.mxu1 %v3534_v34  ;;  %3409 = vmatprep.subr.bf16.mxu0 %v3408_v44 }
 0x247   :  { %3537 = vmatprep.subr.bf16.mxu1 %v3536_v50  ;;  %v2106_v50 = vld [vmem:[#allocation10 + $0x428] sm:$0xff] }
 0x249   :  { %3411 = vmatpush1.bf16.msra.mxu0 %v3410_v51  ;;  %v2104_v51 = vld [vmem:[#allocation10 + $0x418] sm:$0xff] }
 0x24a   :  { %3539 = vmatpush1.bf16.msra.mxu1 %v3538_v59  ;;  %3413 = vmatprep.subr.bf16.mxu0 %v3412_v6  ;;  %v2108_v59 = vld [vmem:[#allocation10 + $0x438] sm:$0xff] }
 0x24b   :  { %3541 = vmatprep.subr.bf16.mxu1 %v3540_v11  ;;  %v3548_v24 = vpack.c.bf16 %v2108_v59, %v2104_v51  ;;  %v3881_v11 = vmov 1966171168   ;;  %v2112_v51 = vld [vmem:[#allocation10 + $0x458] sm:$0xff] }
 0x24d   :  { %3415 = vmatpush1.bf16.msra.mxu0 %v3414_v12  ;;  %v1888_v12 = vunpack.c.l.s4 %v3881_v11  ;;  %v2120_v11 = vld [vmem:[#allocation10 + $0x498] sm:$0xff] }
 0x24e   :  { %3543 = vmatpush1.bf16.msra.mxu1 %v3542_v20  ;;  %3417 = vmatprep.subr.bf16.mxu0 %v3416_v29 }
 0x24f   :  { %v1889_v13 = vunpack.c.0.s8 %v1888_v12 }
 0x267   :  { %v1067_v26 = vpop.f32.mrb[2].mxu0 }
 0x268   :  { %v1776_v31 = vrot.slane %v1067_v26, 4  ;;  %v1209_v49 = vpop.f32.mrb[2].mxu1  ;;  %v1069_v32 = vpop.f32.mrb[3].mxu0 }
 0x269   :  { %v1788_v35 = vrot.slane %v1209_v49, 4  ;;  %v1782_v36 = vrot.slane %v1069_v32, 4  ;;  %v1211_v37 = vpop.f32.mrb[3].mxu1 }
 0x26a   :  { %v1777_v41 = vadd.f32 %v1776_v31, %v1067_v26  ;;  %v1794_v43 = vrot.slane %v1211_v37, 4  ;;  %v2093_v31 = vld [vmem:[#allocation10 + $0x3c0] sm:$0xff] }
 0x26b   :  { %v1789_v48 = vadd.f32 %v1788_v35, %v1209_v49  ;;  %v1783_v21 = vadd.f32 %v1782_v36, %v1069_v32  ;;  %v2097_v49 = vld [vmem:[#allocation10 + $0x3e0] sm:$0xff]  ;;  %v3544_v35 = vpack.c.bf16 %v2100_v30, %v2096_v25 }
 0x26c   :  { %v1778_v54 = vrot.slane %v1777_v41, 2  ;;  %v1795_v58 = vadd.f32 %v1794_v43, %v1211_v37  ;;  %v3418_v36 = vpack.c.bf16 %v2097_v49, %v2093_v31  ;;  %v2095_v37 = vld [vmem:[#allocation10 + $0x3d0] sm:$0xff] }
 0x26d   :  { %v1790_v60 = vrot.slane %v1789_v48, 2  ;;  %v1784_v61 = vrot.slane %v1783_v21, 2  ;;  %v3546_v43 = vpack.c.bf16 %v2099_v38, %v2095_v37  ;;  %3545 = vmatprep.subr.bf16.mxu1 %v3544_v35  ;;  %v2105_v37 = vld [vmem:[#allocation10 + $0x420] sm:$0xff]  ;;  %v2103_v38 = vld [vmem:[#allocation10 + $0x410] sm:$0xff] }
 0x26e   :  { %v1779_v2 = vadd.f32 %v1778_v54, %v1777_v41  ;;  %v1796_v3 = vrot.slane %v1795_v58, 2  ;;  %v1813_v41 = vrot.slane %v4084_v55, %v4090_v62  ;;  %3419 = vmatpush1.bf16.msra.mxu0 %v3418_v36  ;;  %v1855_v54 = vld [vmem:[#allocation13] sm:$0xf] }
 0x26f   :  { %v1791_v10 = vadd.f32 %v1790_v60, %v1789_v48  ;;  %v1785_v33 = vadd.f32 %v1784_v61, %v1783_v21  ;;  %v2102_v21 = vld [vmem:[#allocation10 + $0x408] sm:$0xff]  ;;  %3547 = vmatpush1.bf16.msra.mxu1 %v3546_v43 }
 0x270   :  { %v1780_v15 = vrot.slane %v1779_v2, 1  ;;  %v1797_v19 = vadd.f32 %v1796_v3, %v1795_v58  ;;  %v3420_v58 = vpack.c.bf16 %v2106_v50, %v2102_v21  ;;  %3549 = vmatprep.subr.bf16.mxu1 %v3548_v24  ;;  %v1868_v3 = vrot.slane %v1855_v54, %v4087_v57  ;;  %v2114_v50 = vld [vmem:[#allocation10 + $0x468] sm:$0xff] }
 0x271   :  { %v1792_v26 = vrot.slane %v1791_v10, 1  ;;  %v1786_v28 = vrot.slane %v1785_v33, 1 }
 0x272   :  { %v1781_v32 = vadd.f32 %v1780_v15, %v1779_v2  ;;  %v1798_v34 = vrot.slane %v1797_v19, 1  ;;  %3421 = vmatprep.subr.bf16.mxu0 %v3420_v58  ;;  %v1892_v15 = vsub.s32 %v1889_v13, %v4049_v4 }
 0x273   :  { %v1793_v39 = vadd.f32 %v1792_v26, %v1791_v10  ;;  %v1787_v40 = vadd.f32 %v1786_v28, %v1785_v33 }
 0x274   :  { %v1800_v44 = vmul.f32 0.5, %v1781_v32  ;;  %v1799_v45 = vadd.f32 %v1798_v34, %v1797_v19  ;;  %v2101_v34 = vld [vmem:[#allocation10 + $0x400] sm:$0xff] }
 0x275   :  { %v1802_v47 = vmul.f32 0.5, %v1793_v39  ;;  %v1801_v48 = vmul.f32 0.5, %v1787_v40  ;;  %v2107_v39 = vld [vmem:[#allocation10 + $0x430] sm:$0xff]  ;;  %v3422_v24 = vpack.c.bf16 %v2105_v37, %v2101_v34  ;;  %v2138_v34 = vld [vmem:[#allocation10 + $0x528] sm:$0xff] }
 0x276   :  { %v1826_v52 = vadd.f32 %v1809_v17, %v1800_v44  ;;  %v1803_v53 = vmul.f32 0.5, %v1799_v45 }
 0x277   :  { %v1828_v60 = vadd.f32 %v1817_v27, %v1802_v47  ;;  %v1827_v61 = vadd.f32 %v1813_v41, %v1801_v48  ;;  %v2110_v48 = vld [vmem:[#allocation10 + $0x448] sm:$0xff] }
 0x278   :  { %v1838_v55 = vrot.slane %v1826_v52, %v4082_v42  ;;  %v1829_v0 = vadd.f32 %v1821_v46, %v1803_v53  ;;  %v2116_v52 = vld [vmem:[#allocation10 + $0x478] sm:$0xff] }
 0x279   :  { %v1846_v1 = vrot.slane %v1828_v60, %v4082_v42  ;;  %v1842_v2 = vrot.slane %v1827_v61, %v4082_v42 }
 0x27a   :  { %v1850_v6 = vrot.slane %v1829_v0, %v4082_v42  ;;  %v1851_v7 = vsel %vm1832_vm0, %v4071_v56, %v1838_v55  ;;  %v3550_v55 = vpack.c.bf16 %v2107_v39, %v2103_v38  ;;  %v2109_v0 = vld [vmem:[#allocation10 + $0x440] sm:$0xff] }
 0x27b   :  { %v1852_v8 = vsel %vm1832_vm0, %v4075_v16, %v1842_v2  ;;  %v1853_v9 = vsel %vm1832_vm0, %v4073_v18, %v1846_v1  ;;  %v1864_v16 = vrot.slane %v1855_v54, %v4090_v62  ;;  %v1860_v18 = vrot.slane %v1855_v54, %v4082_v42  ;;  %v2113_v1 = vld [vmem:[#allocation10 + $0x460] sm:$0xff]  ;;  %v2111_v2 = vld [vmem:[#allocation10 + $0x450] sm:$0xff] }
 0x27c   :  { %v1854_v10 = vsel %vm1832_vm0, %v4077_v63, %v1850_v6  ;;  %v1879_v33 = vadd.f32 %v1868_v3, %v1853_v9  ;;  %v1872_v63 = vrot.slane %v1855_v54, %v4093_v5  ;;  %v2115_v3 = vld [vmem:[#allocation10 + $0x470] sm:$0xff]  ;;  %v3424_v6 = vpack.c.bf16 %v2114_v50, %v2110_v48  ;;  %v2133_v39 = vld [vmem:[#allocation10 + $0x500] sm:$0xff]  ;;  %v2144_v48 = vld [vmem:[#allocation10 + $0x558] sm:$0xff] }
 0x27d   :  { %v1878_v30 = vadd.f32 %v1864_v16, %v1852_v8  ;;  %v1877_v31 = vadd.f32 %v1860_v18, %v1851_v7  ;;  %v3552_v7 = vpack.c.bf16 %v2116_v52, %v2112_v51  ;;  %v2118_v8 = vld [vmem:[#allocation10 + $0x488] sm:$0xff]  ;;  %v3426_v12 = vpack.c.bf16 %v2113_v1, %v2109_v0  ;;  %v2128_v16 = vld [vmem:[#allocation10 + $0x4d8] sm:$0xff]  ;;  %v2141_v52 = vld [vmem:[#allocation10 + $0x540] sm:$0xff] }
 0x27e   :  { %v1880_v4 = vadd.f32 %v1872_v63, %v1854_v10  ;;  %v2122_v10 = vld [vmem:[#allocation10 + $0x4a8] sm:$0xff]  ;;  %v3554_v13 = vpack.c.bf16 %v2115_v3, %v2111_v2  ;;  %v2132_v18 = vld [vmem:[#allocation10 + $0x4f8] sm:$0xff] }
 0x27f   :  { %v2150_v0 = vld [vmem:[#allocation10 + $0x588] sm:$0xff]  ;;  %v2152_v2 = vld [vmem:[#allocation10 + $0x598] sm:$0xff] }
 0x280   :  { %v2154_v1 = vld [vmem:[#allocation10 + $0x5a8] sm:$0xff]  ;;  %v2156_v3 = vld [vmem:[#allocation10 + $0x5b8] sm:$0xff] }
 0x2e7   :  { %v1629_v14 = vpop.f32.mrb[4].mxu0 }
 0x2e8   :  { %v1771_v17 = vpop.f32.mrb[4].mxu1  ;;  %v1631_v19 = vpop.f32.mrb[5].mxu0 }
 0x2e9   :  { %v1885_v20 = vcombine.low %v1629_v14, %v1631_v19  ;;  %v1773_v22 = vpop.f32.mrb[5].mxu1  ;;  %v2117_v14 = vld [vmem:[#allocation10 + $0x480] sm:$0xff]  ;;  %v2119_v19 = vld [vmem:[#allocation10 + $0x490] sm:$0xff] }
 0x2ea   :  { %v1886_v23 = vcombine.low %v1771_v17, %v1773_v22  ;;  %v2126_v22 = vld [vmem:[#allocation10 + $0x4c8] sm:$0xff] }
 0x2eb   :  { %v1893_v25 = vrot.slane %v1885_v20, %v1892_v15  ;;  %v2123_v20 = vld [vmem:[#allocation10 + $0x4b0] sm:$0xff] }
 0x2ec   :  { %v1900_v56 = vrot.slane %v1886_v23, %v1892_v15  ;;  %v3428_v23 = vpack.c.bf16 %v2122_v10, %v2118_v8  ;;  %v2149_v8 = vld [vmem:[#allocation10 + $0x580] sm:$0xff]  ;;  %v3444_v10 = vpack.c.bf16 %v2154_v1, %v2150_v0  ;;  %v2183_v1 = vld [vmem:[#allocation10 + $0x690] sm:$0xff] }
 0x2ee   :  { %v1901_v26 = vcombine.low %v1893_v25, %v1900_v56  ;;  %v1902_v27 = vcombine.high %v1893_v25, %v1900_v56  ;;  %v2130_v56 = vld [vmem:[#allocation10 + $0x4e8] sm:$0xff] }
 0x2f0   :  { %v1909_v28 = vrot.slane %v1901_v26, %v1892_v15  ;;  %v1916_v29 = vrot.slane %v1902_v27, %v1892_v15  ;;  %v2121_v15 = vld [vmem:[#allocation10 + $0x4a0] sm:$0xff]  ;;  %v3558_v27 = vpack.c.bf16 %v2123_v20, %v2119_v19 }
 0x2f1   :  { %v3430_v26 = vpack.c.bf16 %v2121_v15, %v2117_v14  ;;  %v2162_v14 = vld [vmem:[#allocation10 + $0x5e8] sm:$0xff]  ;;  %v2160_v15 = vld [vmem:[#allocation10 + $0x5d8] sm:$0xff] }
 0x2f2   :  { %v1924_v49 = vrot.slane %v1909_v28, %v4090_v62  ;;  %v1920_v32 = vrot.slane %v1909_v28, %v4082_v42  ;;  %v1940_v35 = vrot.slane %v1916_v29, %v4090_v62  ;;  %v1936_v36 = vrot.slane %v1916_v29, %v4082_v42 }
 0x2f3   :  { %v1932_v40 = vrot.slane %v1909_v28, %v4093_v5  ;;  %v1928_v41 = vrot.slane %v1909_v28, %v4087_v57  ;;  %v1948_v43 = vrot.slane %v1916_v29, %v4093_v5  ;;  %v1944_v44 = vrot.slane %v1916_v29, %v4087_v57  ;;  %v2125_v28 = vld [vmem:[#allocation10 + $0x4c0] sm:$0xff] }
 0x2f4   :  { %v1958_v45 = vadd.f32 %v1924_v49, %v1878_v30  ;;  %v1957_v46 = vadd.f32 %v1920_v32, %v1877_v31  ;;  %v1962_v47 = vadd.f32 %v1940_v35, %v1878_v30  ;;  %v1961_v21 = vadd.f32 %v1936_v36, %v1877_v31  ;;  %v2129_v29 = vld [vmem:[#allocation10 + $0x4e0] sm:$0xff]  ;;  %v2131_v49 = vld [vmem:[#allocation10 + $0x4f0] sm:$0xff]  ;;  %v2134_v32 = vld [vmem:[#allocation10 + $0x508] sm:$0xff] }
 0x2f5   :  { %v1960_v53 = vadd.f32 %v1932_v40, %v1880_v4  ;;  %v4125_v54 = vadd.f32 %v1928_v41, %v1879_v33  ;;  %v4127_v58 = vadd.f32 %v1948_v43, %v1880_v4  ;;  %v4129_v59 = vadd.f32 %v1944_v44, %v1879_v33  ;;  %v2124_v33 = vld [vmem:[#allocation10 + $0x4b8] sm:$0xff]  ;;  %v2127_v4 = vld [vmem:[#allocation10 + $0x4d0] sm:$0xff]  ;;  %v2137_v40 = vld [vmem:[#allocation10 + $0x520] sm:$0xff] }
 0x2f6   :  { %v1966_v60 = vmax.f32 %v1958_v45, 0.0  ;;  %v1965_v61 = vmax.f32 %v1957_v46, 0.0  ;;  %v1970_v9 = vmax.f32 %v1962_v47, 0.0  ;;  %v1969_v17 = vmax.f32 %v1961_v21, 0.0  ;;  %v2136_v35 = vld [vmem:[#allocation10 + $0x518] sm:$0xff]  ;;  %v2135_v44 = vld [vmem:[#allocation10 + $0x510] sm:$0xff] }
 0x2f7   :  { %v3556_v25 = vpack.c.bf16 %v2124_v33, %v2120_v11  ;;  %v1968_v63 = vmax.f32 %v1960_v53, 0.0  ;;  %v3432_v30 = vpack.c.bf16 %v2130_v56, %v2126_v22  ;;  %v3560_v31 = vpack.c.bf16 %v2132_v18, %v2128_v16  ;;  %v2140_v36 = vld [vmem:[#allocation10 + $0x538] sm:$0xff]  ;;  %v2139_v45 = vld [vmem:[#allocation10 + $0x530] sm:$0xff]  ;;  %v2142_v46 = vld [vmem:[#allocation10 + $0x548] sm:$0xff] }
 0x2f8   :  { %2315 = vmatprep.mubr.f32.mxu0 %v1966_v60  ;;  %2469 = vmatprep.mubr.f32.mxu1 %v1966_v60  ;;  %v3434_v37 = vpack.c.bf16 %v2129_v29, %v2125_v28  ;;  %v3562_v38 = vpack.c.bf16 %v2131_v49, %v2127_v4  ;;  %v3436_v41 = vpack.c.bf16 %v2138_v34, %v2134_v32  ;;  %v2146_v47 = vld [vmem:[#allocation10 + $0x568] sm:$0xff]  ;;  %v2148_v21 = vld [vmem:[#allocation10 + $0x578] sm:$0xff]  ;;  %v2145_v53 = vld [vmem:[#allocation10 + $0x560] sm:$0xff] }
 0x2f9   :  { %2316 = vmatmul.mubr.f32.vlgmr.msra.gmra.mrb[6].mxu0 %v1965_v61  ;;  %2470 = vmatmul.mubr.f32.vlgmr.msra.gmra.mrb[6].mxu1 %v1965_v61  ;;  %v3564_v43 = vpack.c.bf16 %v2140_v36, %v2136_v35  ;;  %v3438_v50 = vpack.c.bf16 %v2137_v40, %v2133_v39  ;;  %v3566_v51 = vpack.c.bf16 %v2139_v45, %v2135_v44  ;;  %v2151_v33 = vld [vmem:[#allocation10 + $0x590] sm:$0xff]  ;;  %v2157_v22 = vld [vmem:[#allocation10 + $0x5c0] sm:$0xff]  ;;  %v2172_v28 = vld [vmem:[#allocation10 + $0x638] sm:$0xff] }
 0x2fa   :  { %3423 = vmatpush1.bf16.msra.mxu0 %v3422_v24  ;;  %3551 = vmatpush1.bf16.msra.mxu1 %v3550_v55  ;;  %v3440_v60 = vpack.c.bf16 %v2146_v47, %v2142_v46  ;;  %v3568_v61 = vpack.c.bf16 %v2148_v21, %v2144_v48  ;;  %v2143_v24 = vld [vmem:[#allocation10 + $0x550] sm:$0xff]  ;;  %v3572_v11 = vpack.c.bf16 %v2156_v3, %v2152_v2  ;;  %v2169_v4 = vld [vmem:[#allocation10 + $0x620] sm:$0xff]  ;;  %v2174_v36 = vld [vmem:[#allocation10 + $0x648] sm:$0xff] }
 0x2fb   :  { %2321 = vmatprep.mubr.f32.mxu0 %v1970_v9  ;;  %2475 = vmatprep.mubr.f32.mxu1 %v1970_v9  ;;  %v2147_v55 = vld [vmem:[#allocation10 + $0x570] sm:$0xff]  ;;  %v2153_v9 = vld [vmem:[#allocation10 + $0x5a0] sm:$0xff]  ;;  %v2180_v39 = vld [vmem:[#allocation10 + $0x678] sm:$0xff] }
 0x2fc   :  { %3425 = vmatprep.subr.bf16.mxu0 %v3424_v6  ;;  %3553 = vmatprep.subr.bf16.mxu1 %v3552_v7  ;;  %v3442_v6 = vpack.c.bf16 %v2145_v53, %v2141_v52  ;;  %v3570_v7 = vpack.c.bf16 %v2147_v55, %v2143_v24  ;;  %v3446_v19 = vpack.c.bf16 %v2153_v9, %v2149_v8  ;;  %v2159_v16 = vld [vmem:[#allocation10 + $0x5d0] sm:$0xff]  ;;  %v2177_v44 = vld [vmem:[#allocation10 + $0x660] sm:$0xff]  ;;  %v2182_v21 = vld [vmem:[#allocation10 + $0x688] sm:$0xff] }
 0x2fd   :  { %2322 = vmatmul.mubr.f32.gmra.mrb[8].mxu0 %v1969_v17  ;;  %2476 = vmatmul.mubr.f32.gmra.mrb[8].mxu1 %v1969_v17  ;;  %v2164_v17 = vld [vmem:[#allocation10 + $0x5f8] sm:$0xff]  ;;  %v2163_v18 = vld [vmem:[#allocation10 + $0x5f0] sm:$0xff]  ;;  %v2185_v24 = vld [vmem:[#allocation10 + $0x6a0] sm:$0xff] }
 0x2fe   :  { %3427 = vmatpush1.bf16.msra.mxu0 %v3426_v12  ;;  %3555 = vmatpush1.bf16.msra.mxu1 %v3554_v13  ;;  %v2155_v12 = vld [vmem:[#allocation10 + $0x5b0] sm:$0xff]  ;;  %v2158_v13 = vld [vmem:[#allocation10 + $0x5c8] sm:$0xff]  ;;  %v3576_v56 = vpack.c.bf16 %v2164_v17, %v2160_v15  ;;  %v2188_v52 = vld [vmem:[#allocation10 + $0x6b8] sm:$0xff] }
 0x2ff   :  { %2392 = vmatprep.mubr.f32.mxu0 %v1968_v63  ;;  %2546 = vmatprep.mubr.f32.mxu1 %v1968_v63  ;;  %v3574_v20 = vpack.c.bf16 %v2155_v12, %v2151_v33  ;;  %v2166_v63 = vld [vmem:[#allocation10 + $0x608] sm:$0xff]  ;;  %v2167_v34 = vld [vmem:[#allocation10 + $0x610] sm:$0xff]  ;;  %v2196_v8 = vld [vmem:[#allocation10 + $0x6f8] sm:$0xff] }
 0x300   :  { %3429 = vmatprep.subr.bf16.mxu0 %v3428_v23  ;;  %3557 = vmatprep.subr.bf16.mxu1 %v3556_v25  ;;  %v2161_v23 = vld [vmem:[#allocation10 + $0x5e0] sm:$0xff]  ;;  %v3448_v25 = vpack.c.bf16 %v2162_v14, %v2158_v13  ;;  %v2171_v35 = vld [vmem:[#allocation10 + $0x630] sm:$0xff]  ;;  %v2190_v3 = vld [vmem:[#allocation10 + $0x6c8] sm:$0xff] }
 0x301   :  { %v3450_v29 = vpack.c.bf16 %v2161_v23, %v2157_v22  ;;  %v2175_v47 = vld [vmem:[#allocation10 + $0x650] sm:$0xff]  ;;  %v2193_v33 = vld [vmem:[#allocation10 + $0x6e0] sm:$0xff]  ;;  %v2198_v17 = vld [vmem:[#allocation10 + $0x708] sm:$0xff] }
 0x302   :  { %3431 = vmatpush1.bf16.msra.mxu0 %v3430_v26  ;;  %3559 = vmatpush1.bf16.msra.mxu1 %v3558_v27  ;;  %v2170_v26 = vld [vmem:[#allocation10 + $0x628] sm:$0xff]  ;;  %v2168_v27 = vld [vmem:[#allocation10 + $0x618] sm:$0xff]  ;;  %v2179_v48 = vld [vmem:[#allocation10 + $0x670] sm:$0xff] }
 0x303   :  { %3433 = vmatprep.subr.bf16.mxu0 %v3432_v30  ;;  %3561 = vmatprep.subr.bf16.mxu1 %v3560_v31  ;;  %v3578_v30 = vpack.c.bf16 %v2163_v18, %v2159_v16  ;;  %v2165_v31 = vld [vmem:[#allocation10 + $0x600] sm:$0xff]  ;;  %v3452_v49 = vpack.c.bf16 %v2170_v26, %v2166_v63  ;;  %v3580_v32 = vpack.c.bf16 %v2172_v28, %v2168_v27  ;;  %v2187_v2 = vld [vmem:[#allocation10 + $0x6b0] sm:$0xff]  ;;  %v2204_v22 = vld [vmem:[#allocation10 + $0x738] sm:$0xff] }
 0x304   :  { %v3454_v40 = vpack.c.bf16 %v2169_v4, %v2165_v31  ;;  %v2191_v14 = vld [vmem:[#allocation10 + $0x6d0] sm:$0xff]  ;;  %v2201_v16 = vld [vmem:[#allocation10 + $0x720] sm:$0xff]  ;;  %v2206_v28 = vld [vmem:[#allocation10 + $0x748] sm:$0xff] }
 0x305   :  { %v2195_v15 = vld [vmem:[#allocation10 + $0x6f0] sm:$0xff]  ;;  %v2212_v31 = vld [vmem:[#allocation10 + $0x778] sm:$0xff] }
 0x306   :  { %3435 = vmatpush1.bf16.msra.mxu0 %v3434_v37  ;;  %3563 = vmatpush1.bf16.msra.mxu1 %v3562_v38  ;;  %v2178_v37 = vld [vmem:[#allocation10 + $0x668] sm:$0xff]  ;;  %v2176_v38 = vld [vmem:[#allocation10 + $0x658] sm:$0xff]  ;;  %v2199_v26 = vld [vmem:[#allocation10 + $0x710] sm:$0xff] }
 0x307   :  { %3437 = vmatprep.subr.bf16.mxu0 %v3436_v41  ;;  %3565 = vmatprep.subr.bf16.mxu1 %v3564_v43  ;;  %v3582_v41 = vpack.c.bf16 %v2171_v35, %v2167_v34  ;;  %v2173_v43 = vld [vmem:[#allocation10 + $0x640] sm:$0xff]  ;;  %v3456_v45 = vpack.c.bf16 %v2178_v37, %v2174_v36  ;;  %v3584_v46 = vpack.c.bf16 %v2180_v39, %v2176_v38  ;;  %v2203_v27 = vld [vmem:[#allocation10 + $0x730] sm:$0xff]  ;;  %v2214_v39 = vld [vmem:[#allocation10 + $0x788] sm:$0xff] }
 0x308   :  { %v3458_v53 = vpack.c.bf16 %v2177_v44, %v2173_v43  ;;  %v2209_v34 = vld [vmem:[#allocation10 + $0x760] sm:$0xff]  ;;  %v2207_v37 = vld [vmem:[#allocation10 + $0x750] sm:$0xff]  ;;  %v2220_v43 = vld [vmem:[#allocation10 + $0x7b8] sm:$0xff] }
 0x309   :  { %v2211_v38 = vld [vmem:[#allocation10 + $0x770] sm:$0xff] }
 0x30a   :  { %3439 = vmatpush1.bf16.msra.mxu0 %v3438_v50  ;;  %3567 = vmatpush1.bf16.msra.mxu1 %v3566_v51  ;;  %v2186_v50 = vld [vmem:[#allocation10 + $0x6a8] sm:$0xff]  ;;  %v2184_v51 = vld [vmem:[#allocation10 + $0x698] sm:$0xff] }
 0x30b   :  { %3441 = vmatprep.subr.bf16.mxu0 %v3440_v60  ;;  %3569 = vmatprep.subr.bf16.mxu1 %v3568_v61  ;;  %v3586_v60 = vpack.c.bf16 %v2179_v48, %v2175_v47  ;;  %v2181_v61 = vld [vmem:[#allocation10 + $0x680] sm:$0xff]  ;;  %v3460_v55 = vpack.c.bf16 %v2186_v50, %v2182_v21  ;;  %v3588_v0 = vpack.c.bf16 %v2188_v52, %v2184_v51  ;;  %v2215_v50 = vld [vmem:[#allocation10 + $0x790] sm:$0xff]  ;;  %v2222_v52 = vld [vmem:[#allocation10 + $0x7c8] sm:$0xff] }
 0x30c   :  { %v3462_v9 = vpack.c.bf16 %v2185_v24, %v2181_v61  ;;  %v2217_v47 = vld [vmem:[#allocation10 + $0x7a0] sm:$0xff]  ;;  %v2219_v51 = vld [vmem:[#allocation10 + $0x7b0] sm:$0xff]  ;;  %v2228_v61 = vld [vmem:[#allocation10 + $0x7f8] sm:$0xff] }
 0x30e   :  { %3443 = vmatpush1.bf16.msra.mxu0 %v3442_v6  ;;  %3571 = vmatpush1.bf16.msra.mxu1 %v3570_v7  ;;  %v2194_v6 = vld [vmem:[#allocation10 + $0x6e8] sm:$0xff]  ;;  %v2192_v7 = vld [vmem:[#allocation10 + $0x6d8] sm:$0xff] }
 0x30f   :  { %3445 = vmatprep.subr.bf16.mxu0 %v3444_v10  ;;  %3573 = vmatprep.subr.bf16.mxu1 %v3572_v11  ;;  %v3590_v10 = vpack.c.bf16 %v2187_v2, %v2183_v1  ;;  %v2189_v11 = vld [vmem:[#allocation10 + $0x6c0] sm:$0xff]  ;;  %v3464_v12 = vpack.c.bf16 %v2194_v6, %v2190_v3  ;;  %v3592_v13 = vpack.c.bf16 %v2196_v8, %v2192_v7  ;;  %v2223_v6 = vld [vmem:[#allocation10 + $0x7d0] sm:$0xff] }
 0x310   :  { %v3466_v23 = vpack.c.bf16 %v2193_v33, %v2189_v11  ;;  %v2225_v3 = vld [vmem:[#allocation10 + $0x7e0] sm:$0xff]  ;;  %v2227_v7 = vld [vmem:[#allocation10 + $0x7f0] sm:$0xff]  ;;  %v1972_v11 = vmax.f32 %v4127_v58, 0.0  ;;  %v1971_v33 = vmax.f32 %v4129_v59, 0.0 }
 0x312   :  { %3447 = vmatpush1.bf16.msra.mxu0 %v3446_v19  ;;  %3575 = vmatpush1.bf16.msra.mxu1 %v3574_v20  ;;  %v2202_v19 = vld [vmem:[#allocation10 + $0x728] sm:$0xff]  ;;  %v2200_v20 = vld [vmem:[#allocation10 + $0x718] sm:$0xff] }
 0x313   :  { %3449 = vmatprep.subr.bf16.mxu0 %v3448_v25  ;;  %3577 = vmatprep.subr.bf16.mxu1 %v3576_v56  ;;  %v3594_v25 = vpack.c.bf16 %v2195_v15, %v2191_v14  ;;  %v2197_v56 = vld [vmem:[#allocation10 + $0x700] sm:$0xff]  ;;  %v3468_v18 = vpack.c.bf16 %v2202_v19, %v2198_v17  ;;  %v3596_v63 = vpack.c.bf16 %v2204_v22, %v2200_v20 }
 0x314   :  { %v3470_v4 = vpack.c.bf16 %v2201_v16, %v2197_v56 }
 0x316   :  { %3451 = vmatpush1.bf16.msra.mxu0 %v3450_v29  ;;  %3579 = vmatpush1.bf16.msra.mxu1 %v3578_v30  ;;  %v2210_v29 = vld [vmem:[#allocation10 + $0x768] sm:$0xff]  ;;  %v2208_v30 = vld [vmem:[#allocation10 + $0x758] sm:$0xff] }
 0x317   :  { %3453 = vmatprep.subr.bf16.mxu0 %v3452_v49  ;;  %3581 = vmatprep.subr.bf16.mxu1 %v3580_v32  ;;  %v3598_v49 = vpack.c.bf16 %v2203_v27, %v2199_v26  ;;  %v2205_v32 = vld [vmem:[#allocation10 + $0x740] sm:$0xff]  ;;  %v3472_v35 = vpack.c.bf16 %v2210_v29, %v2206_v28  ;;  %v3600_v36 = vpack.c.bf16 %v2212_v31, %v2208_v30 }
 0x318   :  { %v3474_v44 = vpack.c.bf16 %v2209_v34, %v2205_v32 }
 0x31a   :  { %3455 = vmatpush1.bf16.msra.mxu0 %v3454_v40  ;;  %3583 = vmatpush1.bf16.msra.mxu1 %v3582_v41  ;;  %v2218_v40 = vld [vmem:[#allocation10 + $0x7a8] sm:$0xff]  ;;  %v2216_v41 = vld [vmem:[#allocation10 + $0x798] sm:$0xff] }
 0x31b   :  { %3457 = vmatprep.subr.bf16.mxu0 %v3456_v45  ;;  %3585 = vmatprep.subr.bf16.mxu1 %v3584_v46  ;;  %v3602_v45 = vpack.c.bf16 %v2211_v38, %v2207_v37  ;;  %v2213_v46 = vld [vmem:[#allocation10 + $0x780] sm:$0xff]  ;;  %v3476_v48 = vpack.c.bf16 %v2218_v40, %v2214_v39  ;;  %v3604_v21 = vpack.c.bf16 %v2220_v43, %v2216_v41 }
 0x31c   :  { %v3478_v24 = vpack.c.bf16 %v2217_v47, %v2213_v46 }
 0x31e   :  { %3459 = vmatpush1.bf16.msra.mxu0 %v3458_v53  ;;  %3587 = vmatpush1.bf16.msra.mxu1 %v3586_v60  ;;  %v2226_v53 = vld [vmem:[#allocation10 + $0x7e8] sm:$0xff]  ;;  %v2224_v60 = vld [vmem:[#allocation10 + $0x7d8] sm:$0xff] }
 0x31f   :  { %3461 = vmatprep.subr.bf16.mxu0 %v3460_v55  ;;  %3589 = vmatprep.subr.bf16.mxu1 %v3588_v0  ;;  %v3606_v55 = vpack.c.bf16 %v2219_v51, %v2215_v50  ;;  %v2221_v0 = vld [vmem:[#allocation10 + $0x7c0] sm:$0xff]  ;;  %v3480_v1 = vpack.c.bf16 %v2226_v53, %v2222_v52  ;;  %v3608_v2 = vpack.c.bf16 %v2228_v61, %v2224_v60 }
 0x320   :  { %v3482_v8 = vpack.c.bf16 %v2225_v3, %v2221_v0 }
 0x322   :  { %3463 = vmatpush1.bf16.msra.mxu0 %v3462_v9  ;;  %3591 = vmatpush1.bf16.msra.mxu1 %v3590_v10  ;;  %v3610_v9 = vpack.c.bf16 %v2227_v7, %v2223_v6  ;;  %v1967_v10 = vmax.f32 %v4125_v54, 0.0 }
 0x323   :  { %3465 = vmatprep.subr.bf16.mxu0 %v3464_v12  ;;  %3593 = vmatprep.subr.bf16.mxu1 %v3592_v13  ;;  %v2229_v12 = vld [vmem:[#allocation14] sm:$0xf] }
 0x324   :  { %v2234_v13 = vrot.slane %v2229_v12, %v4082_v42  ;;  %v2242_v14 = vrot.slane %v2229_v12, %v4087_v57  ;;  %v2238_v15 = vrot.slane %v2229_v12, %v4090_v62  ;;  %v2246_v17 = vrot.slane %v2229_v12, %v4093_v5 }
 0x326   :  { %3467 = vmatpush1.bf16.msra.mxu0 %v3466_v23  ;;  %3595 = vmatpush1.bf16.msra.mxu1 %v3594_v25 }
 0x327   :  { %3469 = vmatprep.subr.bf16.mxu0 %v3468_v18  ;;  %3597 = vmatprep.subr.bf16.mxu1 %v3596_v63 }
 0x32a   :  { %3471 = vmatpush1.bf16.msra.mxu0 %v3470_v4  ;;  %3599 = vmatpush1.bf16.msra.mxu1 %v3598_v49 }
 0x32b   :  { %3473 = vmatprep.subr.bf16.mxu0 %v3472_v35  ;;  %3601 = vmatprep.subr.bf16.mxu1 %v3600_v36 }
 0x32e   :  { %3475 = vmatpush1.bf16.msra.mxu0 %v3474_v44  ;;  %3603 = vmatpush1.bf16.msra.mxu1 %v3602_v45 }
 0x32f   :  { %3477 = vmatprep.subr.bf16.mxu0 %v3476_v48  ;;  %3605 = vmatprep.subr.bf16.mxu1 %v3604_v21 }
 0x332   :  { %3479 = vmatpush1.bf16.msra.mxu0 %v3478_v24  ;;  %3607 = vmatpush1.bf16.msra.mxu1 %v3606_v55 }
 0x333   :  { %3481 = vmatprep.subr.bf16.mxu0 %v3480_v1  ;;  %3609 = vmatprep.subr.bf16.mxu1 %v3608_v2 }
 0x336   :  { %3483 = vmatpush1.bf16.msra.mxu0 %v3482_v8  ;;  %3611 = vmatpush1.bf16.msra.mxu1 %v3610_v9 }
 0x339   :  { %2393 = vmatmul.mubr.f32.vlgmr.msra.gmra.mrb[6].mxu0 %v1967_v10  ;;  %2547 = vmatmul.mubr.f32.vlgmr.msra.gmra.mrb[6].mxu1 %v1967_v10 }
 0x33a   :  { %2398 = vmatprep.mubr.f32.mxu0 %v1972_v11  ;;  %2552 = vmatprep.mubr.f32.mxu1 %v1972_v11 }
 0x33d   :  { %2399 = vmatmul.mubr.f32.gmra.mrb[8].mxu0 %v1971_v33  ;;  %2553 = vmatmul.mubr.f32.gmra.mrb[8].mxu1 %v1971_v33 }
 0x40c   :  { %v2394_v54 = vpop.f32.mrb[6].mxu0  ;;  %v2548_v19 = vpop.f32.mrb[6].mxu1 }
 0x40d   :  { %v3612_v58 = vadd.f32 %v2394_v54, %v2234_v13  ;;  %v3616_v20 = vadd.f32 %v2548_v19, %v2242_v14  ;;  %v2396_v22 = vpop.f32.mrb[7].mxu0  ;;  %v2550_v23 = vpop.f32.mrb[7].mxu1 }
 0x40e   :  { %v3613_v25 = vadd.f32 %v2396_v22, %v2238_v15  ;;  %v3617_v56 = vadd.f32 %v2550_v23, %v2246_v17 }
 0x40f   :  { %2559 = vst [vmem:[#allocation16] sm:$0xff] %v3612_v58  ;;  %2561 = vst [vmem:[#allocation16 + $0x10] sm:$0xff] %v3616_v20 }
 0x410   :  { %2560 = vst [vmem:[#allocation16 + $0x8] sm:$0xff] %v3613_v25  ;;  %2562 = vst [vmem:[#allocation16 + $0x18] sm:$0xff] %v3617_v56  ;;  %v2400_v42 = vpop.f32.mrb[8].mxu0  ;;  %v2554_v57 = vpop.f32.mrb[8].mxu1 }
 0x411   :  { %v3614_v59 = vadd.f32 %v2400_v42, %v2234_v13  ;;  %v3618_v62 = vadd.f32 %v2554_v57, %v2242_v14  ;;  %v2402_v16 = vpop.f32.mrb[9].mxu0  ;;  %v2556_v5 = vpop.f32.mrb[9].mxu1 }
 0x412   :  { %v3615_v18 = vadd.f32 %v2402_v16, %v2238_v15  ;;  %v3619_v63 = vadd.f32 %v2556_v5, %v2246_v17 }
 0x413   :  { %2563 = vst [vmem:[#allocation16 + $0x20] sm:$0xff] %v3614_v59  ;;  %2565 = vst [vmem:[#allocation16 + $0x30] sm:$0xff] %v3618_v62 }
 0x414   :  { %2564 = vst [vmem:[#allocation16 + $0x28] sm:$0xff] %v3615_v18  ;;  %2566 = vst [vmem:[#allocation16 + $0x38] sm:$0xff] %v3619_v63 }
 0x415   :  { %3845 = shalt.err (!%p3842_p12)
}
 0x416   :  { %s3846_s13 = scalar_lea.hbm %s4161_s8, 1024 }
 0x417   :  { %p3847_p13 = scmp.ne.s32.totalorder %s4161_s8, %s3846_s13  ;;  %p3850_p0 = scmp.lt.u32.totalorder %s3846_s13, %s4161_s8 }
 0x419   :  { %p3852_p1 = pnand %p3850_p0, %p3847_p13 }
 0x41b   :  { %3855 = shalt.err (!%p3852_p1)
}
 0x41c   :  { %2578 = dma.vmem_to_hbm [thread:$0]  %s2573_s9, 1024, %s4161_s8, [#allocation4], %s3870_s1, %s3870_s1, %s3871_s27  }
 0x41d   :  { %3866 = dma.done.wait [#allocation4], 1024  }
 0x41e   :  { %3867 = vsyncadd [#allocation4], 4294966272 }
 0x41f   :  { %2582 = vsyncpa [#allocation3], 1 }
 0x420   :  { %2583 = vsyncpa [#allocation6], 1 }
 0x421   :  { %2584 = vsyncpa [#allocation9], 1 }
 0x422   :  { %2585 = vsyncpa [#allocation12], 1 }
 0x423   :  { %2586 = vsyncpa [#allocation15], 1 }
 0x424   :  { %2587 = vsyncpa [#allocation4], 1 }

</bundles_post_ra>
